<compile_context>
chip_gen: v6e
topology: v6e:2x2x1
jax: 0.10.0
libtpu: 0.0.40
codegen_flags: <defaults>
</compile_context>

<pallas_src>
import jax
import jax.numpy as jnp
from jax.experimental import pallas as pl
from jax.experimental.pallas import tpu as pltpu

# ----------------------------- configuration --------------------------------
BATCH = 2
SEQ = 8
HIDDEN = 32
HEADS = 4
HEAD_DIM = HIDDEN // HEADS
LAYERS = 2
INTERMEDIATE = 64
VOCAB = 64
MAX_POS = 16
SEGMENTS = 2
CATEGORIES = 8
LN_EPS = 1e-12
ROWS = SEQ * BATCH


# ------------------------------ fused kernel --------------------------------
def _fused_forward_kernel(
        x_ref, mask_ref, eln_g_ref, eln_b_ref,
        wqkv_ref, bqkv_ref, wo_ref, bo_ref,
        ln1_g_ref, ln1_b_ref, w1_ref, b1_ref, w2_ref, b2_ref,
        ln2_g_ref, ln2_b_ref,
        cls_w_ref, cls_b_ref,
        wih_pad_ref, whh_pack_ref, bih_pack_ref, bhh_pack_ref,
        fc_w_ref, fc_b_ref,
        o_ref, hf_ref, hb_ref):
    f32 = jnp.float32
    bf16 = jnp.bfloat16

    def mm(a, w_bf):
        # bf16 MXU operands (weights are pre-cast host-side), f32 accumulation
        return jnp.dot(a.astype(bf16), w_bf, preferred_element_type=f32)

    def layer_norm(v, g, b):
        mu = jnp.mean(v, axis=-1, keepdims=True)
        var = jnp.mean(jnp.square(v - mu), axis=-1, keepdims=True)
        return (v - mu) * jax.lax.rsqrt(var + LN_EPS) * g + b

    def gelu(v):
        # BERT tanh-approximate gelu
        return 0.5 * v * (1.0 + jnp.tanh(
            0.7978845608028654 * (v + 0.044715 * v * v * v)))

    mask = mask_ref[...]                                        # (R, R) additive
    x = layer_norm(x_ref[...], eln_g_ref[...], eln_b_ref[...])  # (R, H) f32
    scale = 1.0 / float(HEAD_DIM) ** 0.5

    # ---------------------- transformer layers (unrolled) --------------------
    for l in range(LAYERS):
        # fused QKV projection: single (R,H)@(H,3H) bf16 matmul
        qkv = mm(x, wqkv_ref[l]) + bqkv_ref[l]                  # (R, 3H) f32
        qkv_bf = qkv.astype(bf16)                               # one cast, reused
        wo_l = wo_ref[l]                                        # (H, H) bf16
        terms = []
        for h in range(HEADS):
            lo = h * HEAD_DIM
            q = qkv_bf[:, lo:lo + HEAD_DIM]
            k = qkv_bf[:, HIDDEN + lo:HIDDEN + lo + HEAD_DIM]
            v = qkv_bf[:, 2 * HIDDEN + lo:2 * HIDDEN + lo + HEAD_DIM]
            # scores = q @ k^T via contracting dims (bf16 operands, f32 acc)
            s = jax.lax.dot_general(q, k, (((1,), (1,)), ((), ())),
                                    preferred_element_type=f32)
            s = s * scale + mask
            s = s - jnp.max(s, axis=-1, keepdims=True)
            p = jnp.exp(s)
            p = p * pl.reciprocal(jnp.sum(p, axis=-1, keepdims=True), approx=True)
            ctx_h = jnp.dot(p.astype(bf16), v, preferred_element_type=f32)
            # output projection decomposed per head (sublane slice of Wo)
            terms.append(mm(ctx_h, wo_l[lo:lo + HEAD_DIM, :]))
        # balanced pairwise sum: dependent-add depth 2 instead of 4
        while len(terms) > 1:
            terms = [terms[i] + terms[i + 1] if i + 1 < len(terms) else terms[i]
                     for i in range(0, len(terms), 2)]
        attn = terms[0] + bo_ref[l]
        x = layer_norm(x + attn, ln1_g_ref[l], ln1_b_ref[l])

        ffn = mm(x, w1_ref[l]) + b1_ref[l]
        ffn = gelu(ffn)
        ffn = mm(ffn, w2_ref[l]) + b2_ref[l]
        x = layer_norm(x + ffn, ln2_g_ref[l], ln2_b_ref[l])

    # ---------------------- Classify (VMEM resident) -------------------------
    # rows are time-major: row = t*BATCH + b
    logits = mm(x, cls_w_ref[...]) + cls_b_ref[...]             # (R, C) f32
    logits_bf = logits.astype(bf16)

    # ---------------------- bidirectional GRU (direction-fused) --------------
    C = CATEGORIES
    C2 = 2 * C
    # Input projections hoisted out of the recurrence.  Weights are zero-padded
    # host-side so direction d's gates land in their own lane block of the
    # packed (r_f|r_b|z_f|z_b|n_f|n_b) layout -> per step only a (B,6C) add.
    gi_f = jnp.dot(logits_bf, wih_pad_ref[0],
                   preferred_element_type=f32) + bih_pack_ref[...]   # (R, 6C)
    gi_b = jnp.dot(logits_bf, wih_pad_ref[1],
                   preferred_element_type=f32)                       # (R, 6C)
    whh_p = whh_pack_ref[...]          # (2C, 6C) bf16 block-diagonal over dirs
    bhh_p = bhh_pack_ref[...]          # (1, 6C) f32

    h_p = jnp.zeros((BATCH, C2), f32)  # packed hidden [h_fwd | h_bwd]
    for t in range(SEQ):               # fully unrolled (S = 8, fixed)
        rf = t * BATCH                 # forward reads input time t
        rb = (SEQ - 1 - t) * BATCH     # backward reads input time S-1-t
        gi = gi_f[rf:rf + BATCH, :] + gi_b[rb:rb + BATCH, :]         # (B, 6C)
        # single fused recurrent matmul: both directions, all 3 gates
        gh = jnp.dot(h_p.astype(bf16), whh_p,
                     preferred_element_type=f32) + bhh_p             # (B, 6C)
        r = jax.nn.sigmoid(gi[:, 0:C2] + gh[:, 0:C2])
        z = jax.nn.sigmoid(gi[:, C2:2 * C2] + gh[:, C2:2 * C2])
        n = jnp.tanh(gi[:, 2 * C2:3 * C2] + r * gh[:, 2 * C2:3 * C2])
        h_p = (1.0 - z) * n + z * h_p
        # stage hidden states for the batched fc (forward at row rf, backward
        # output belongs to time S-1-t => row rb)
        hf_ref[rf:rf + BATCH, :] = h_p[:, 0:C]
        hb_ref[rb:rb + BATCH, :] = h_p[:, C:C2]

    # fc(concat(H_f, H_b)) == H_f @ W_f + H_b @ W_b, batched over all timesteps,
    # single output store.
    out = (mm(hf_ref[...], fc_w_ref[0])
           + mm(hb_ref[...], fc_w_ref[1])
           + fc_b_ref[...])
    o_ref[...] = out


# ------------------------- host-side weight packing ---------------------------
def _pack_gru_params(p):
    """Pack BiGRU weights for the direction-fused recurrence.

    Packed lane layout (6C lanes): [r_f | r_b | z_f | z_b | n_f | n_b].
    """
    C = CATEGORIES
    zc = jnp.zeros((C, C), jnp.float32)

    def pad_cols(w, d):
        # w: (C, 3C) gate-major (r,z,n) -> (C, 6C) with only direction-d lanes filled
        blocks = []
        for g in range(3):
            wg = w[:, g * C:(g + 1) * C]
            blocks.extend([wg, zc] if d == 0 else [zc, wg])
        return jnp.concatenate(blocks, axis=1)

    def pack_bias(b):
        # b: (2, 1, 3C) -> (1, 6C) interleaved [fwd | bwd] per gate
        blocks = []
        for g in range(3):
            blocks.append(b[0, :, g * C:(g + 1) * C])
            blocks.append(b[1, :, g * C:(g + 1) * C])
        return jnp.concatenate(blocks, axis=1)

    wih_pad = jnp.stack([pad_cols(p["gru_wih"][0], 0),
                         pad_cols(p["gru_wih"][1], 1)], axis=0)      # (2, C, 6C)
    whh_pack = jnp.concatenate([pad_cols(p["gru_whh"][0], 0),
                                pad_cols(p["gru_whh"][1], 1)], axis=0)  # (2C, 6C)
    bih_pack = pack_bias(p["gru_bih"])                                # (1, 6C)
    bhh_pack = pack_bias(p["gru_bhh"])                                # (1, 6C)
    fc_w_split = jnp.stack([p["fc_w"][:C, :], p["fc_w"][C:, :]], axis=0)  # (2, C, C)
    return wih_pad, whh_pack, bih_pack, bhh_pack, fc_w_split


def _fused_forward(x_tm, mask_full, p):
    rows = x_tm.shape[0]
    bf16 = jnp.bfloat16
    wih_pad, whh_pack, bih_pack, bhh_pack, fc_w_split = _pack_gru_params(p)

    inputs = (
        x_tm, mask_full,
        p["emb_ln_g"], p["emb_ln_b"],
        p["wqkv"].astype(bf16), p["bqkv"], p["wo"].astype(bf16), p["bo"],
        p["ln1_g"], p["ln1_b"],
        p["w1"].astype(bf16), p["b1"], p["w2"].astype(bf16), p["b2"],
        p["ln2_g"], p["ln2_b"],
        p["cls_w"].astype(bf16), p["cls_b"],
        wih_pad.astype(bf16), whh_pack.astype(bf16), bih_pack, bhh_pack,
        fc_w_split.astype(bf16), p["fc_b"],
    )
    vmem_spec = pl.BlockSpec(memory_space=pltpu.MemorySpace.VMEM)
    return pl.pallas_call(
        _fused_forward_kernel,
        out_shape=jax.ShapeDtypeStruct((rows, CATEGORIES), jnp.float32),
        in_specs=[vmem_spec] * len(inputs),
        out_specs=vmem_spec,
        scratch_shapes=[pltpu.VMEM((rows, CATEGORIES), jnp.float32),
                        pltpu.VMEM((rows, CATEGORIES), jnp.float32)],
        compiler_params=pltpu.CompilerParams(vmem_limit_bytes=16 * 1024 * 1024),
    )(*inputs)


# ------------------------------- full forward --------------------------------
def bert_ner_bi_rnn_crf_forward(params, input_token, position_ids,
                                segment_ids, attention_mask):
    B, S = input_token.shape
    # embedding gathers stay in plain JAX (glue); everything else is one kernel
    tok = jnp.take(params["tok_emb"], input_token, axis=0)
    pos = jnp.take(params["pos_emb"], position_ids, axis=0)
    seg = jnp.take(params["seg_emb"], segment_ids, axis=0)
    emb = (tok + pos + seg).astype(jnp.float32)                 # (B, S, H)

    # time-major rows (row = t*B + b): GRU timesteps are contiguous slices
    x_tm = emb.transpose(1, 0, 2).reshape(S * B, HIDDEN)

    # (R, R) additive attention mask: key-padding mask + cross-batch blocking
    mask_add = (1.0 - attention_mask.astype(jnp.float32)) * -10000.0    # (B, S)
    key_mask_tm = mask_add.T.reshape(S * B)                             # per key row j
    batch_of_row = jnp.arange(S * B, dtype=jnp.int32) % B
    same_batch = batch_of_row[:, None] == batch_of_row[None, :]
    mask_full = jnp.where(same_batch, key_mask_tm[None, :],
                          jnp.float32(-1e9))                            # (R, R)

    out_tm = _fused_forward(x_tm, mask_full, params)                    # (S*B, C)
    # back to batch-major (B, S, C)
    return out_tm.reshape(S, B, CATEGORIES).transpose(1, 0, 2)
    # TODO(synk): CRF is built in __init__ but never applied in forward(); omitted.


# ------------------------------- parameters ----------------------------------
def init_params(key):
    ks = iter(jax.random.split(key, 64))

    def nrm(shape, scale=0.02):
        return (scale * jax.random.normal(next(ks), shape)).astype(jnp.float32)

    L, H, I, C = LAYERS, HIDDEN, INTERMEDIATE, CATEGORIES
    return {
        "tok_emb": nrm((VOCAB, H)),
        "pos_emb": nrm((MAX_POS, H)),
        "seg_emb": nrm((SEGMENTS, H)),
        "emb_ln_g": jnp.ones((1, H), jnp.float32),
        "emb_ln_b": jnp.zeros((1, H), jnp.float32),
        # per-layer weights stacked along a leading layer axis; QKV fused [q|k|v]
        "wqkv": nrm((L, H, 3 * H)),
        "bqkv": nrm((L, 1, 3 * H)),
        "wo": nrm((L, H, H)),
        "bo": nrm((L, 1, H)),
        "ln1_g": jnp.ones((L, 1, H), jnp.float32),
        "ln1_b": jnp.zeros((L, 1, H), jnp.float32),
        "w1": nrm((L, H, I)),
        "b1": nrm((L, 1, I)),
        "w2": nrm((L, I, H)),
        "b2": nrm((L, 1, H)),
        "ln2_g": jnp.ones((L, 1, H), jnp.float32),
        "ln2_b": jnp.zeros((L, 1, H), jnp.float32),
        "cls_w": nrm((H, C)),
        "cls_b": nrm((1, C)),
        # BiGRU weights stored transposed (in_features, 3*hidden), gate order (r,z,n),
        # stacked over directions [forward, backward]
        "gru_wih": nrm((2, C, 3 * C)),
        "gru_whh": nrm((2, C, 3 * C)),
        "gru_bih": nrm((2, 1, 3 * C)),
        "gru_bhh": nrm((2, 1, 3 * C)),
        "fc_w": nrm((2 * C, C)),
        "fc_b": nrm((1, C)),
    }


# ---------------------------------- main --------------------------------------
if __name__ == "__main__":
    key = jax.random.PRNGKey(0)
    pkey, dkey = jax.random.split(key)
    params = init_params(pkey)

    input_token = jax.random.randint(dkey, (BATCH, SEQ), 0, VOCAB, dtype=jnp.int32)
    position_ids = jnp.broadcast_to(jnp.arange(SEQ, dtype=jnp.int32), (BATCH, SEQ))
    segment_ids = jnp.zeros((BATCH, SEQ), dtype=jnp.int32)
    attention_mask = jnp.ones((BATCH, SEQ), dtype=jnp.int32).at[1, SEQ - 2:].set(0)

    fwd = jax.jit(bert_ner_bi_rnn_crf_forward)
    out = fwd(params, input_token, position_ids, segment_ids, attention_mask)
    jax.block_until_ready(out)

    assert out.shape == (BATCH, SEQ, CATEGORIES), out.shape
    assert out.dtype == jnp.float32
    assert bool(jnp.all(jnp.isfinite(out)))
    print("KERNEL_OK")
</pallas_src>

<mosaic_0001>
module attributes {stable_mosaic.version = 11 : i64} {
  func.func @_fused_forward_kernel(%arg0: memref<16x32xf32, #tpu.memory_space<vmem>>, %arg1: memref<16x16xf32, #tpu.memory_space<vmem>>, %arg2: memref<1x32xf32, #tpu.memory_space<vmem>>, %arg3: memref<1x32xf32, #tpu.memory_space<vmem>>, %arg4: memref<2x32x96xbf16, #tpu.memory_space<vmem>>, %arg5: memref<2x1x96xf32, #tpu.memory_space<vmem>>, %arg6: memref<2x32x32xbf16, #tpu.memory_space<vmem>>, %arg7: memref<2x1x32xf32, #tpu.memory_space<vmem>>, %arg8: memref<2x1x32xf32, #tpu.memory_space<vmem>>, %arg9: memref<2x1x32xf32, #tpu.memory_space<vmem>>, %arg10: memref<2x32x64xbf16, #tpu.memory_space<vmem>>, %arg11: memref<2x1x64xf32, #tpu.memory_space<vmem>>, %arg12: memref<2x64x32xbf16, #tpu.memory_space<vmem>>, %arg13: memref<2x1x32xf32, #tpu.memory_space<vmem>>, %arg14: memref<2x1x32xf32, #tpu.memory_space<vmem>>, %arg15: memref<2x1x32xf32, #tpu.memory_space<vmem>>, %arg16: memref<32x8xbf16, #tpu.memory_space<vmem>>, %arg17: memref<1x8xf32, #tpu.memory_space<vmem>>, %arg18: memref<2x8x48xbf16, #tpu.memory_space<vmem>>, %arg19: memref<16x48xbf16, #tpu.memory_space<vmem>>, %arg20: memref<1x48xf32, #tpu.memory_space<vmem>>, %arg21: memref<1x48xf32, #tpu.memory_space<vmem>>, %arg22: memref<2x8x8xbf16, #tpu.memory_space<vmem>>, %arg23: memref<1x8xf32, #tpu.memory_space<vmem>>, %arg24: memref<16x8xf32, #tpu.memory_space<vmem>>, %arg25: memref<16x8xf32, #tpu.memory_space<vmem>>, %arg26: memref<16x8xf32, #tpu.memory_space<vmem>>) attributes {dimension_semantics = [], scalar_prefetch = 0 : i64, scratch_operands = 2 : i64, tpu.core_type = #tpu.core_type<tc>} {
    %c0 = arith.constant 0 : index
    %c0_0 = arith.constant 0 : index
    %0 = vector.load %arg1[%c0, %c0_0] : memref<16x16xf32, #tpu.memory_space<vmem>>, vector<16x16xf32>
    %c0_1 = arith.constant 0 : index
    %c0_2 = arith.constant 0 : index
    %1 = vector.load %arg0[%c0_1, %c0_2] : memref<16x32xf32, #tpu.memory_space<vmem>>, vector<16x32xf32>
    %c0_3 = arith.constant 0 : index
    %c0_4 = arith.constant 0 : index
    %2 = vector.load %arg2[%c0_3, %c0_4] : memref<1x32xf32, #tpu.memory_space<vmem>>, vector<1x32xf32>
    %c0_5 = arith.constant 0 : index
    %c0_6 = arith.constant 0 : index
    %3 = vector.load %arg3[%c0_5, %c0_6] : memref<1x32xf32, #tpu.memory_space<vmem>>, vector<1x32xf32>
    %cst = arith.constant dense<0.000000e+00> : vector<16xf32>
    %4 = vector.multi_reduction <add>, %1, %cst [1] : vector<16x32xf32> to vector<16xf32>
    %5 = vector.shape_cast %4 : vector<16xf32> to vector<16x1xf32>
    %cst_7 = arith.constant 3.200000e+01 : f32
    %6 = vector.broadcast %cst_7 : f32 to vector<16x1xf32>
    %7 = arith.divf %5, %6 : vector<16x1xf32>
    %8 = vector.broadcast %7 : vector<16x1xf32> to vector<16x32xf32>
    %9 = arith.subf %1, %8 : vector<16x32xf32>
    %10 = arith.mulf %9, %9 : vector<16x32xf32>
    %cst_8 = arith.constant dense<0.000000e+00> : vector<16xf32>
    %11 = vector.multi_reduction <add>, %10, %cst_8 [1] : vector<16x32xf32> to vector<16xf32>
    %12 = vector.shape_cast %11 : vector<16xf32> to vector<16x1xf32>
    %cst_9 = arith.constant 3.200000e+01 : f32
    %13 = vector.broadcast %cst_9 : f32 to vector<16x1xf32>
    %14 = arith.divf %12, %13 : vector<16x1xf32>
    %15 = vector.broadcast %7 : vector<16x1xf32> to vector<16x32xf32>
    %16 = arith.subf %1, %15 : vector<16x32xf32>
    %cst_10 = arith.constant 9.99999996E-13 : f32
    %17 = vector.broadcast %cst_10 : f32 to vector<16x1xf32>
    %18 = arith.addf %14, %17 : vector<16x1xf32>
    %19 = math.rsqrt %18 : vector<16x1xf32>
    %20 = vector.broadcast %19 : vector<16x1xf32> to vector<16x32xf32>
    %21 = arith.mulf %16, %20 : vector<16x32xf32>
    %22 = vector.broadcast %2 : vector<1x32xf32> to vector<16x32xf32>
    %23 = arith.mulf %21, %22 : vector<16x32xf32>
    %24 = vector.broadcast %3 : vector<1x32xf32> to vector<16x32xf32>
    %25 = arith.addf %23, %24 : vector<16x32xf32>
    %c0_11 = arith.constant 0 : index
    %c0_12 = arith.constant 0 : index
    %c0_13 = arith.constant 0 : index
    %26 = vector.load %arg4[%c0_11, %c0_12, %c0_13] : memref<2x32x96xbf16, #tpu.memory_space<vmem>>, vector<1x32x96xbf16>
    %27 = vector.shape_cast %26 : vector<1x32x96xbf16> to vector<32x96xbf16>
    %28 = arith.truncf %25 : vector<16x32xf32> to vector<16x32xbf16>
    %cst_14 = arith.constant dense<0.000000e+00> : vector<16x96xf32>
    %29 = tpu.matmul %28, %27, %cst_14 {dimension_numbers = #tpu.dot_dimension_numbers<[1], [0], [0], [1], [0, 0, 1, 1], [], []>} : vector<16x32xbf16>, vector<32x96xbf16>, vector<16x96xf32> -> vector<16x96xf32>
    %c0_15 = arith.constant 0 : index
    %c0_16 = arith.constant 0 : index
    %c0_17 = arith.constant 0 : index
    %30 = vector.load %arg5[%c0_15, %c0_16, %c0_17] : memref<2x1x96xf32, #tpu.memory_space<vmem>>, vector<1x1x96xf32>
    %31 = vector.shape_cast %30 : vector<1x1x96xf32> to vector<1x96xf32>
    %32 = vector.broadcast %31 : vector<1x96xf32> to vector<16x96xf32>
    %33 = arith.addf %29, %32 : vector<16x96xf32>
    %34 = arith.truncf %33 : vector<16x96xf32> to vector<16x96xbf16>
    %c0_18 = arith.constant 0 : index
    %c0_19 = arith.constant 0 : index
    %c0_20 = arith.constant 0 : index
    %35 = vector.load %arg6[%c0_18, %c0_19, %c0_20] : memref<2x32x32xbf16, #tpu.memory_space<vmem>>, vector<1x32x32xbf16>
    %36 = vector.shape_cast %35 : vector<1x32x32xbf16> to vector<32x32xbf16>
    %37 = vector.extract_strided_slice %34 {offsets = [0, 0], sizes = [16, 8], strides = [1, 1]} : vector<16x96xbf16> to vector<16x8xbf16>
    %38 = vector.extract_strided_slice %34 {offsets = [0, 32], sizes = [16, 8], strides = [1, 1]} : vector<16x96xbf16> to vector<16x8xbf16>
    %39 = vector.extract_strided_slice %34 {offsets = [0, 64], sizes = [16, 8], strides = [1, 1]} : vector<16x96xbf16> to vector<16x8xbf16>
    %cst_21 = arith.constant dense<0.000000e+00> : vector<16x16xf32>
    %40 = tpu.matmul %37, %38, %cst_21 {dimension_numbers = #tpu.dot_dimension_numbers<[1], [1], [0], [0], [0, 0, 1, 0], [], []>} : vector<16x8xbf16>, vector<16x8xbf16>, vector<16x16xf32> -> vector<16x16xf32>
    %cst_22 = arith.constant 0.353553385 : f32
    %41 = vector.broadcast %cst_22 : f32 to vector<16x16xf32>
    %42 = arith.mulf %40, %41 : vector<16x16xf32>
    %43 = arith.addf %42, %0 : vector<16x16xf32>
    %cst_23 = arith.constant dense<0xFF800000> : vector<16xf32>
    %44 = vector.multi_reduction <maximumf>, %43, %cst_23 [1] : vector<16x16xf32> to vector<16xf32>
    %45 = vector.shape_cast %44 : vector<16xf32> to vector<16x1xf32>
    %46 = vector.broadcast %45 : vector<16x1xf32> to vector<16x16xf32>
    %47 = arith.subf %43, %46 : vector<16x16xf32>
    %48 = math.exp %47 : vector<16x16xf32>
    %cst_24 = arith.constant dense<0.000000e+00> : vector<16xf32>
    %49 = vector.multi_reduction <add>, %48, %cst_24 [1] : vector<16x16xf32> to vector<16xf32>
    %50 = vector.shape_cast %49 : vector<16xf32> to vector<16x1xf32>
    %51 = tpu.reciprocal %50 {approx = true} : vector<16x1xf32> -> vector<16x1xf32>
    %52 = vector.broadcast %51 : vector<16x1xf32> to vector<16x16xf32>
    %53 = arith.mulf %48, %52 : vector<16x16xf32>
    %54 = arith.truncf %53 : vector<16x16xf32> to vector<16x16xbf16>
    %cst_25 = arith.constant dense<0.000000e+00> : vector<16x8xf32>
    %55 = tpu.matmul %54, %39, %cst_25 {dimension_numbers = #tpu.dot_dimension_numbers<[1], [0], [0], [1], [0, 0, 1, 1], [], []>} : vector<16x16xbf16>, vector<16x8xbf16>, vector<16x8xf32> -> vector<16x8xf32>
    %56 = vector.extract_strided_slice %36 {offsets = [0, 0], sizes = [8, 32], strides = [1, 1]} : vector<32x32xbf16> to vector<8x32xbf16>
    %57 = arith.truncf %55 : vector<16x8xf32> to vector<16x8xbf16>
    %cst_26 = arith.constant dense<0.000000e+00> : vector<16x32xf32>
    %58 = tpu.matmul %57, %56, %cst_26 {dimension_numbers = #tpu.dot_dimension_numbers<[1], [0], [0], [1], [0, 0, 1, 1], [], []>} : vector<16x8xbf16>, vector<8x32xbf16>, vector<16x32xf32> -> vector<16x32xf32>
    %59 = vector.extract_strided_slice %34 {offsets = [0, 8], sizes = [16, 8], strides = [1, 1]} : vector<16x96xbf16> to vector<16x8xbf16>
    %60 = vector.extract_strided_slice %34 {offsets = [0, 40], sizes = [16, 8], strides = [1, 1]} : vector<16x96xbf16> to vector<16x8xbf16>
    %61 = vector.extract_strided_slice %34 {offsets = [0, 72], sizes = [16, 8], strides = [1, 1]} : vector<16x96xbf16> to vector<16x8xbf16>
    %cst_27 = arith.constant dense<0.000000e+00> : vector<16x16xf32>
    %62 = tpu.matmul %59, %60, %cst_27 {dimension_numbers = #tpu.dot_dimension_numbers<[1], [1], [0], [0], [0, 0, 1, 0], [], []>} : vector<16x8xbf16>, vector<16x8xbf16>, vector<16x16xf32> -> vector<16x16xf32>
    %cst_28 = arith.constant 0.353553385 : f32
    %63 = vector.broadcast %cst_28 : f32 to vector<16x16xf32>
    %64 = arith.mulf %62, %63 : vector<16x16xf32>
    %65 = arith.addf %64, %0 : vector<16x16xf32>
    %cst_29 = arith.constant dense<0xFF800000> : vector<16xf32>
    %66 = vector.multi_reduction <maximumf>, %65, %cst_29 [1] : vector<16x16xf32> to vector<16xf32>
    %67 = vector.shape_cast %66 : vector<16xf32> to vector<16x1xf32>
    %68 = vector.broadcast %67 : vector<16x1xf32> to vector<16x16xf32>
    %69 = arith.subf %65, %68 : vector<16x16xf32>
    %70 = math.exp %69 : vector<16x16xf32>
    %cst_30 = arith.constant dense<0.000000e+00> : vector<16xf32>
    %71 = vector.multi_reduction <add>, %70, %cst_30 [1] : vector<16x16xf32> to vector<16xf32>
    %72 = vector.shape_cast %71 : vector<16xf32> to vector<16x1xf32>
    %73 = tpu.reciprocal %72 {approx = true} : vector<16x1xf32> -> vector<16x1xf32>
    %74 = vector.broadcast %73 : vector<16x1xf32> to vector<16x16xf32>
    %75 = arith.mulf %70, %74 : vector<16x16xf32>
    %76 = arith.truncf %75 : vector<16x16xf32> to vector<16x16xbf16>
    %cst_31 = arith.constant dense<0.000000e+00> : vector<16x8xf32>
    %77 = tpu.matmul %76, %61, %cst_31 {dimension_numbers = #tpu.dot_dimension_numbers<[1], [0], [0], [1], [0, 0, 1, 1], [], []>} : vector<16x16xbf16>, vector<16x8xbf16>, vector<16x8xf32> -> vector<16x8xf32>
    %78 = vector.extract_strided_slice %36 {offsets = [8, 0], sizes = [8, 32], strides = [1, 1]} : vector<32x32xbf16> to vector<8x32xbf16>
    %79 = arith.truncf %77 : vector<16x8xf32> to vector<16x8xbf16>
    %cst_32 = arith.constant dense<0.000000e+00> : vector<16x32xf32>
    %80 = tpu.matmul %79, %78, %cst_32 {dimension_numbers = #tpu.dot_dimension_numbers<[1], [0], [0], [1], [0, 0, 1, 1], [], []>} : vector<16x8xbf16>, vector<8x32xbf16>, vector<16x32xf32> -> vector<16x32xf32>
    %81 = vector.extract_strided_slice %34 {offsets = [0, 16], sizes = [16, 8], strides = [1, 1]} : vector<16x96xbf16> to vector<16x8xbf16>
    %82 = vector.extract_strided_slice %34 {offsets = [0, 48], sizes = [16, 8], strides = [1, 1]} : vector<16x96xbf16> to vector<16x8xbf16>
    %83 = vector.extract_strided_slice %34 {offsets = [0, 80], sizes = [16, 8], strides = [1, 1]} : vector<16x96xbf16> to vector<16x8xbf16>
    %cst_33 = arith.constant dense<0.000000e+00> : vector<16x16xf32>
    %84 = tpu.matmul %81, %82, %cst_33 {dimension_numbers = #tpu.dot_dimension_numbers<[1], [1], [0], [0], [0, 0, 1, 0], [], []>} : vector<16x8xbf16>, vector<16x8xbf16>, vector<16x16xf32> -> vector<16x16xf32>
    %cst_34 = arith.constant 0.353553385 : f32
    %85 = vector.broadcast %cst_34 : f32 to vector<16x16xf32>
    %86 = arith.mulf %84, %85 : vector<16x16xf32>
    %87 = arith.addf %86, %0 : vector<16x16xf32>
    %cst_35 = arith.constant dense<0xFF800000> : vector<16xf32>
    %88 = vector.multi_reduction <maximumf>, %87, %cst_35 [1] : vector<16x16xf32> to vector<16xf32>
    %89 = vector.shape_cast %88 : vector<16xf32> to vector<16x1xf32>
    %90 = vector.broadcast %89 : vector<16x1xf32> to vector<16x16xf32>
    %91 = arith.subf %87, %90 : vector<16x16xf32>
    %92 = math.exp %91 : vector<16x16xf32>
    %cst_36 = arith.constant dense<0.000000e+00> : vector<16xf32>
    %93 = vector.multi_reduction <add>, %92, %cst_36 [1] : vector<16x16xf32> to vector<16xf32>
    %94 = vector.shape_cast %93 : vector<16xf32> to vector<16x1xf32>
    %95 = tpu.reciprocal %94 {approx = true} : vector<16x1xf32> -> vector<16x1xf32>
    %96 = vector.broadcast %95 : vector<16x1xf32> to vector<16x16xf32>
    %97 = arith.mulf %92, %96 : vector<16x16xf32>
    %98 = arith.truncf %97 : vector<16x16xf32> to vector<16x16xbf16>
    %cst_37 = arith.constant dense<0.000000e+00> : vector<16x8xf32>
    %99 = tpu.matmul %98, %83, %cst_37 {dimension_numbers = #tpu.dot_dimension_numbers<[1], [0], [0], [1], [0, 0, 1, 1], [], []>} : vector<16x16xbf16>, vector<16x8xbf16>, vector<16x8xf32> -> vector<16x8xf32>
    %100 = vector.extract_strided_slice %36 {offsets = [16, 0], sizes = [8, 32], strides = [1, 1]} : vector<32x32xbf16> to vector<8x32xbf16>
    %101 = arith.truncf %99 : vector<16x8xf32> to vector<16x8xbf16>
    %cst_38 = arith.constant dense<0.000000e+00> : vector<16x32xf32>
    %102 = tpu.matmul %101, %100, %cst_38 {dimension_numbers = #tpu.dot_dimension_numbers<[1], [0], [0], [1], [0, 0, 1, 1], [], []>} : vector<16x8xbf16>, vector<8x32xbf16>, vector<16x32xf32> -> vector<16x32xf32>
    %103 = vector.extract_strided_slice %34 {offsets = [0, 24], sizes = [16, 8], strides = [1, 1]} : vector<16x96xbf16> to vector<16x8xbf16>
    %104 = vector.extract_strided_slice %34 {offsets = [0, 56], sizes = [16, 8], strides = [1, 1]} : vector<16x96xbf16> to vector<16x8xbf16>
    %105 = vector.extract_strided_slice %34 {offsets = [0, 88], sizes = [16, 8], strides = [1, 1]} : vector<16x96xbf16> to vector<16x8xbf16>
    %cst_39 = arith.constant dense<0.000000e+00> : vector<16x16xf32>
    %106 = tpu.matmul %103, %104, %cst_39 {dimension_numbers = #tpu.dot_dimension_numbers<[1], [1], [0], [0], [0, 0, 1, 0], [], []>} : vector<16x8xbf16>, vector<16x8xbf16>, vector<16x16xf32> -> vector<16x16xf32>
    %cst_40 = arith.constant 0.353553385 : f32
    %107 = vector.broadcast %cst_40 : f32 to vector<16x16xf32>
    %108 = arith.mulf %106, %107 : vector<16x16xf32>
    %109 = arith.addf %108, %0 : vector<16x16xf32>
    %cst_41 = arith.constant dense<0xFF800000> : vector<16xf32>
    %110 = vector.multi_reduction <maximumf>, %109, %cst_41 [1] : vector<16x16xf32> to vector<16xf32>
    %111 = vector.shape_cast %110 : vector<16xf32> to vector<16x1xf32>
    %112 = vector.broadcast %111 : vector<16x1xf32> to vector<16x16xf32>
    %113 = arith.subf %109, %112 : vector<16x16xf32>
    %114 = math.exp %113 : vector<16x16xf32>
    %cst_42 = arith.constant dense<0.000000e+00> : vector<16xf32>
    %115 = vector.multi_reduction <add>, %114, %cst_42 [1] : vector<16x16xf32> to vector<16xf32>
    %116 = vector.shape_cast %115 : vector<16xf32> to vector<16x1xf32>
    %117 = tpu.reciprocal %116 {approx = true} : vector<16x1xf32> -> vector<16x1xf32>
    %118 = vector.broadcast %117 : vector<16x1xf32> to vector<16x16xf32>
    %119 = arith.mulf %114, %118 : vector<16x16xf32>
    %120 = arith.truncf %119 : vector<16x16xf32> to vector<16x16xbf16>
    %cst_43 = arith.constant dense<0.000000e+00> : vector<16x8xf32>
    %121 = tpu.matmul %120, %105, %cst_43 {dimension_numbers = #tpu.dot_dimension_numbers<[1], [0], [0], [1], [0, 0, 1, 1], [], []>} : vector<16x16xbf16>, vector<16x8xbf16>, vector<16x8xf32> -> vector<16x8xf32>
    %122 = vector.extract_strided_slice %36 {offsets = [24, 0], sizes = [8, 32], strides = [1, 1]} : vector<32x32xbf16> to vector<8x32xbf16>
    %123 = arith.truncf %121 : vector<16x8xf32> to vector<16x8xbf16>
    %cst_44 = arith.constant dense<0.000000e+00> : vector<16x32xf32>
    %124 = tpu.matmul %123, %122, %cst_44 {dimension_numbers = #tpu.dot_dimension_numbers<[1], [0], [0], [1], [0, 0, 1, 1], [], []>} : vector<16x8xbf16>, vector<8x32xbf16>, vector<16x32xf32> -> vector<16x32xf32>
    %125 = arith.addf %58, %80 : vector<16x32xf32>
    %126 = arith.addf %102, %124 : vector<16x32xf32>
    %127 = arith.addf %125, %126 : vector<16x32xf32>
    %c0_45 = arith.constant 0 : index
    %c0_46 = arith.constant 0 : index
    %c0_47 = arith.constant 0 : index
    %128 = vector.load %arg7[%c0_45, %c0_46, %c0_47] : memref<2x1x32xf32, #tpu.memory_space<vmem>>, vector<1x1x32xf32>
    %129 = vector.shape_cast %128 : vector<1x1x32xf32> to vector<1x32xf32>
    %130 = vector.broadcast %129 : vector<1x32xf32> to vector<16x32xf32>
    %131 = arith.addf %127, %130 : vector<16x32xf32>
    %132 = arith.addf %25, %131 : vector<16x32xf32>
    %c0_48 = arith.constant 0 : index
    %c0_49 = arith.constant 0 : index
    %c0_50 = arith.constant 0 : index
    %133 = vector.load %arg8[%c0_48, %c0_49, %c0_50] : memref<2x1x32xf32, #tpu.memory_space<vmem>>, vector<1x1x32xf32>
    %134 = vector.shape_cast %133 : vector<1x1x32xf32> to vector<1x32xf32>
    %c0_51 = arith.constant 0 : index
    %c0_52 = arith.constant 0 : index
    %c0_53 = arith.constant 0 : index
    %135 = vector.load %arg9[%c0_51, %c0_52, %c0_53] : memref<2x1x32xf32, #tpu.memory_space<vmem>>, vector<1x1x32xf32>
    %136 = vector.shape_cast %135 : vector<1x1x32xf32> to vector<1x32xf32>
    %cst_54 = arith.constant dense<0.000000e+00> : vector<16xf32>
    %137 = vector.multi_reduction <add>, %132, %cst_54 [1] : vector<16x32xf32> to vector<16xf32>
    %138 = vector.shape_cast %137 : vector<16xf32> to vector<16x1xf32>
    %cst_55 = arith.constant 3.200000e+01 : f32
    %139 = vector.broadcast %cst_55 : f32 to vector<16x1xf32>
    %140 = arith.divf %138, %139 : vector<16x1xf32>
    %141 = vector.broadcast %140 : vector<16x1xf32> to vector<16x32xf32>
    %142 = arith.subf %132, %141 : vector<16x32xf32>
    %143 = arith.mulf %142, %142 : vector<16x32xf32>
    %cst_56 = arith.constant dense<0.000000e+00> : vector<16xf32>
    %144 = vector.multi_reduction <add>, %143, %cst_56 [1] : vector<16x32xf32> to vector<16xf32>
    %145 = vector.shape_cast %144 : vector<16xf32> to vector<16x1xf32>
    %cst_57 = arith.constant 3.200000e+01 : f32
    %146 = vector.broadcast %cst_57 : f32 to vector<16x1xf32>
    %147 = arith.divf %145, %146 : vector<16x1xf32>
    %148 = vector.broadcast %140 : vector<16x1xf32> to vector<16x32xf32>
    %149 = arith.subf %132, %148 : vector<16x32xf32>
    %cst_58 = arith.constant 9.99999996E-13 : f32
    %150 = vector.broadcast %cst_58 : f32 to vector<16x1xf32>
    %151 = arith.addf %147, %150 : vector<16x1xf32>
    %152 = math.rsqrt %151 : vector<16x1xf32>
    %153 = vector.broadcast %152 : vector<16x1xf32> to vector<16x32xf32>
    %154 = arith.mulf %149, %153 : vector<16x32xf32>
    %155 = vector.broadcast %134 : vector<1x32xf32> to vector<16x32xf32>
    %156 = arith.mulf %154, %155 : vector<16x32xf32>
    %157 = vector.broadcast %136 : vector<1x32xf32> to vector<16x32xf32>
    %158 = arith.addf %156, %157 : vector<16x32xf32>
    %c0_59 = arith.constant 0 : index
    %c0_60 = arith.constant 0 : index
    %c0_61 = arith.constant 0 : index
    %159 = vector.load %arg10[%c0_59, %c0_60, %c0_61] : memref<2x32x64xbf16, #tpu.memory_space<vmem>>, vector<1x32x64xbf16>
    %160 = vector.shape_cast %159 : vector<1x32x64xbf16> to vector<32x64xbf16>
    %161 = arith.truncf %158 : vector<16x32xf32> to vector<16x32xbf16>
    %cst_62 = arith.constant dense<0.000000e+00> : vector<16x64xf32>
    %162 = tpu.matmul %161, %160, %cst_62 {dimension_numbers = #tpu.dot_dimension_numbers<[1], [0], [0], [1], [0, 0, 1, 1], [], []>} : vector<16x32xbf16>, vector<32x64xbf16>, vector<16x64xf32> -> vector<16x64xf32>
    %c0_63 = arith.constant 0 : index
    %c0_64 = arith.constant 0 : index
    %c0_65 = arith.constant 0 : index
    %163 = vector.load %arg11[%c0_63, %c0_64, %c0_65] : memref<2x1x64xf32, #tpu.memory_space<vmem>>, vector<1x1x64xf32>
    %164 = vector.shape_cast %163 : vector<1x1x64xf32> to vector<1x64xf32>
    %165 = vector.broadcast %164 : vector<1x64xf32> to vector<16x64xf32>
    %166 = arith.addf %162, %165 : vector<16x64xf32>
    %cst_66 = arith.constant 5.000000e-01 : f32
    %167 = vector.broadcast %cst_66 : f32 to vector<16x64xf32>
    %168 = arith.mulf %167, %166 : vector<16x64xf32>
    %cst_67 = arith.constant 4.471500e-02 : f32
    %169 = vector.broadcast %cst_67 : f32 to vector<16x64xf32>
    %170 = arith.mulf %169, %166 : vector<16x64xf32>
    %171 = arith.mulf %170, %166 : vector<16x64xf32>
    %172 = arith.mulf %171, %166 : vector<16x64xf32>
    %173 = arith.addf %166, %172 : vector<16x64xf32>
    %cst_68 = arith.constant 0.797884583 : f32
    %174 = vector.broadcast %cst_68 : f32 to vector<16x64xf32>
    %175 = arith.mulf %174, %173 : vector<16x64xf32>
    %176 = math.tanh %175 : vector<16x64xf32>
    %cst_69 = arith.constant 1.000000e+00 : f32
    %177 = vector.broadcast %cst_69 : f32 to vector<16x64xf32>
    %178 = arith.addf %177, %176 : vector<16x64xf32>
    %179 = arith.mulf %168, %178 : vector<16x64xf32>
    %c0_70 = arith.constant 0 : index
    %c0_71 = arith.constant 0 : index
    %c0_72 = arith.constant 0 : index
    %180 = vector.load %arg12[%c0_70, %c0_71, %c0_72] : memref<2x64x32xbf16, #tpu.memory_space<vmem>>, vector<1x64x32xbf16>
    %181 = vector.shape_cast %180 : vector<1x64x32xbf16> to vector<64x32xbf16>
    %182 = arith.truncf %179 : vector<16x64xf32> to vector<16x64xbf16>
    %cst_73 = arith.constant dense<0.000000e+00> : vector<16x32xf32>
    %183 = tpu.matmul %182, %181, %cst_73 {dimension_numbers = #tpu.dot_dimension_numbers<[1], [0], [0], [1], [0, 0, 1, 1], [], []>} : vector<16x64xbf16>, vector<64x32xbf16>, vector<16x32xf32> -> vector<16x32xf32>
    %c0_74 = arith.constant 0 : index
    %c0_75 = arith.constant 0 : index
    %c0_76 = arith.constant 0 : index
    %184 = vector.load %arg13[%c0_74, %c0_75, %c0_76] : memref<2x1x32xf32, #tpu.memory_space<vmem>>, vector<1x1x32xf32>
    %185 = vector.shape_cast %184 : vector<1x1x32xf32> to vector<1x32xf32>
    %186 = vector.broadcast %185 : vector<1x32xf32> to vector<16x32xf32>
    %187 = arith.addf %183, %186 : vector<16x32xf32>
    %188 = arith.addf %158, %187 : vector<16x32xf32>
    %c0_77 = arith.constant 0 : index
    %c0_78 = arith.constant 0 : index
    %c0_79 = arith.constant 0 : index
    %189 = vector.load %arg14[%c0_77, %c0_78, %c0_79] : memref<2x1x32xf32, #tpu.memory_space<vmem>>, vector<1x1x32xf32>
    %190 = vector.shape_cast %189 : vector<1x1x32xf32> to vector<1x32xf32>
    %c0_80 = arith.constant 0 : index
    %c0_81 = arith.constant 0 : index
    %c0_82 = arith.constant 0 : index
    %191 = vector.load %arg15[%c0_80, %c0_81, %c0_82] : memref<2x1x32xf32, #tpu.memory_space<vmem>>, vector<1x1x32xf32>
    %192 = vector.shape_cast %191 : vector<1x1x32xf32> to vector<1x32xf32>
    %cst_83 = arith.constant dense<0.000000e+00> : vector<16xf32>
    %193 = vector.multi_reduction <add>, %188, %cst_83 [1] : vector<16x32xf32> to vector<16xf32>
    %194 = vector.shape_cast %193 : vector<16xf32> to vector<16x1xf32>
    %cst_84 = arith.constant 3.200000e+01 : f32
    %195 = vector.broadcast %cst_84 : f32 to vector<16x1xf32>
    %196 = arith.divf %194, %195 : vector<16x1xf32>
    %197 = vector.broadcast %196 : vector<16x1xf32> to vector<16x32xf32>
    %198 = arith.subf %188, %197 : vector<16x32xf32>
    %199 = arith.mulf %198, %198 : vector<16x32xf32>
    %cst_85 = arith.constant dense<0.000000e+00> : vector<16xf32>
    %200 = vector.multi_reduction <add>, %199, %cst_85 [1] : vector<16x32xf32> to vector<16xf32>
    %201 = vector.shape_cast %200 : vector<16xf32> to vector<16x1xf32>
    %cst_86 = arith.constant 3.200000e+01 : f32
    %202 = vector.broadcast %cst_86 : f32 to vector<16x1xf32>
    %203 = arith.divf %201, %202 : vector<16x1xf32>
    %204 = vector.broadcast %196 : vector<16x1xf32> to vector<16x32xf32>
    %205 = arith.subf %188, %204 : vector<16x32xf32>
    %cst_87 = arith.constant 9.99999996E-13 : f32
    %206 = vector.broadcast %cst_87 : f32 to vector<16x1xf32>
    %207 = arith.addf %203, %206 : vector<16x1xf32>
    %208 = math.rsqrt %207 : vector<16x1xf32>
    %209 = vector.broadcast %208 : vector<16x1xf32> to vector<16x32xf32>
    %210 = arith.mulf %205, %209 : vector<16x32xf32>
    %211 = vector.broadcast %190 : vector<1x32xf32> to vector<16x32xf32>
    %212 = arith.mulf %210, %211 : vector<16x32xf32>
    %213 = vector.broadcast %192 : vector<1x32xf32> to vector<16x32xf32>
    %214 = arith.addf %212, %213 : vector<16x32xf32>
    %c1 = arith.constant 1 : index
    %c0_88 = arith.constant 0 : index
    %c0_89 = arith.constant 0 : index
    %215 = vector.load %arg4[%c1, %c0_88, %c0_89] : memref<2x32x96xbf16, #tpu.memory_space<vmem>>, vector<1x32x96xbf16>
    %216 = vector.shape_cast %215 : vector<1x32x96xbf16> to vector<32x96xbf16>
    %217 = arith.truncf %214 : vector<16x32xf32> to vector<16x32xbf16>
    %cst_90 = arith.constant dense<0.000000e+00> : vector<16x96xf32>
    %218 = tpu.matmul %217, %216, %cst_90 {dimension_numbers = #tpu.dot_dimension_numbers<[1], [0], [0], [1], [0, 0, 1, 1], [], []>} : vector<16x32xbf16>, vector<32x96xbf16>, vector<16x96xf32> -> vector<16x96xf32>
    %c1_91 = arith.constant 1 : index
    %c0_92 = arith.constant 0 : index
    %c0_93 = arith.constant 0 : index
    %219 = vector.load %arg5[%c1_91, %c0_92, %c0_93] : memref<2x1x96xf32, #tpu.memory_space<vmem>>, vector<1x1x96xf32>
    %220 = vector.shape_cast %219 : vector<1x1x96xf32> to vector<1x96xf32>
    %221 = vector.broadcast %220 : vector<1x96xf32> to vector<16x96xf32>
    %222 = arith.addf %218, %221 : vector<16x96xf32>
    %223 = arith.truncf %222 : vector<16x96xf32> to vector<16x96xbf16>
    %c1_94 = arith.constant 1 : index
    %c0_95 = arith.constant 0 : index
    %c0_96 = arith.constant 0 : index
    %224 = vector.load %arg6[%c1_94, %c0_95, %c0_96] : memref<2x32x32xbf16, #tpu.memory_space<vmem>>, vector<1x32x32xbf16>
    %225 = vector.shape_cast %224 : vector<1x32x32xbf16> to vector<32x32xbf16>
    %226 = vector.extract_strided_slice %223 {offsets = [0, 0], sizes = [16, 8], strides = [1, 1]} : vector<16x96xbf16> to vector<16x8xbf16>
    %227 = vector.extract_strided_slice %223 {offsets = [0, 32], sizes = [16, 8], strides = [1, 1]} : vector<16x96xbf16> to vector<16x8xbf16>
    %228 = vector.extract_strided_slice %223 {offsets = [0, 64], sizes = [16, 8], strides = [1, 1]} : vector<16x96xbf16> to vector<16x8xbf16>
    %cst_97 = arith.constant dense<0.000000e+00> : vector<16x16xf32>
    %229 = tpu.matmul %226, %227, %cst_97 {dimension_numbers = #tpu.dot_dimension_numbers<[1], [1], [0], [0], [0, 0, 1, 0], [], []>} : vector<16x8xbf16>, vector<16x8xbf16>, vector<16x16xf32> -> vector<16x16xf32>
    %cst_98 = arith.constant 0.353553385 : f32
    %230 = vector.broadcast %cst_98 : f32 to vector<16x16xf32>
    %231 = arith.mulf %229, %230 : vector<16x16xf32>
    %232 = arith.addf %231, %0 : vector<16x16xf32>
    %cst_99 = arith.constant dense<0xFF800000> : vector<16xf32>
    %233 = vector.multi_reduction <maximumf>, %232, %cst_99 [1] : vector<16x16xf32> to vector<16xf32>
    %234 = vector.shape_cast %233 : vector<16xf32> to vector<16x1xf32>
    %235 = vector.broadcast %234 : vector<16x1xf32> to vector<16x16xf32>
    %236 = arith.subf %232, %235 : vector<16x16xf32>
    %237 = math.exp %236 : vector<16x16xf32>
    %cst_100 = arith.constant dense<0.000000e+00> : vector<16xf32>
    %238 = vector.multi_reduction <add>, %237, %cst_100 [1] : vector<16x16xf32> to vector<16xf32>
    %239 = vector.shape_cast %238 : vector<16xf32> to vector<16x1xf32>
    %240 = tpu.reciprocal %239 {approx = true} : vector<16x1xf32> -> vector<16x1xf32>
    %241 = vector.broadcast %240 : vector<16x1xf32> to vector<16x16xf32>
    %242 = arith.mulf %237, %241 : vector<16x16xf32>
    %243 = arith.truncf %242 : vector<16x16xf32> to vector<16x16xbf16>
    %cst_101 = arith.constant dense<0.000000e+00> : vector<16x8xf32>
    %244 = tpu.matmul %243, %228, %cst_101 {dimension_numbers = #tpu.dot_dimension_numbers<[1], [0], [0], [1], [0, 0, 1, 1], [], []>} : vector<16x16xbf16>, vector<16x8xbf16>, vector<16x8xf32> -> vector<16x8xf32>
    %245 = vector.extract_strided_slice %225 {offsets = [0, 0], sizes = [8, 32], strides = [1, 1]} : vector<32x32xbf16> to vector<8x32xbf16>
    %246 = arith.truncf %244 : vector<16x8xf32> to vector<16x8xbf16>
    %cst_102 = arith.constant dense<0.000000e+00> : vector<16x32xf32>
    %247 = tpu.matmul %246, %245, %cst_102 {dimension_numbers = #tpu.dot_dimension_numbers<[1], [0], [0], [1], [0, 0, 1, 1], [], []>} : vector<16x8xbf16>, vector<8x32xbf16>, vector<16x32xf32> -> vector<16x32xf32>
    %248 = vector.extract_strided_slice %223 {offsets = [0, 8], sizes = [16, 8], strides = [1, 1]} : vector<16x96xbf16> to vector<16x8xbf16>
    %249 = vector.extract_strided_slice %223 {offsets = [0, 40], sizes = [16, 8], strides = [1, 1]} : vector<16x96xbf16> to vector<16x8xbf16>
    %250 = vector.extract_strided_slice %223 {offsets = [0, 72], sizes = [16, 8], strides = [1, 1]} : vector<16x96xbf16> to vector<16x8xbf16>
    %cst_103 = arith.constant dense<0.000000e+00> : vector<16x16xf32>
    %251 = tpu.matmul %248, %249, %cst_103 {dimension_numbers = #tpu.dot_dimension_numbers<[1], [1], [0], [0], [0, 0, 1, 0], [], []>} : vector<16x8xbf16>, vector<16x8xbf16>, vector<16x16xf32> -> vector<16x16xf32>
    %cst_104 = arith.constant 0.353553385 : f32
    %252 = vector.broadcast %cst_104 : f32 to vector<16x16xf32>
    %253 = arith.mulf %251, %252 : vector<16x16xf32>
    %254 = arith.addf %253, %0 : vector<16x16xf32>
    %cst_105 = arith.constant dense<0xFF800000> : vector<16xf32>
    %255 = vector.multi_reduction <maximumf>, %254, %cst_105 [1] : vector<16x16xf32> to vector<16xf32>
    %256 = vector.shape_cast %255 : vector<16xf32> to vector<16x1xf32>
    %257 = vector.broadcast %256 : vector<16x1xf32> to vector<16x16xf32>
    %258 = arith.subf %254, %257 : vector<16x16xf32>
    %259 = math.exp %258 : vector<16x16xf32>
    %cst_106 = arith.constant dense<0.000000e+00> : vector<16xf32>
    %260 = vector.multi_reduction <add>, %259, %cst_106 [1] : vector<16x16xf32> to vector<16xf32>
    %261 = vector.shape_cast %260 : vector<16xf32> to vector<16x1xf32>
    %262 = tpu.reciprocal %261 {approx = true} : vector<16x1xf32> -> vector<16x1xf32>
    %263 = vector.broadcast %262 : vector<16x1xf32> to vector<16x16xf32>
    %264 = arith.mulf %259, %263 : vector<16x16xf32>
    %265 = arith.truncf %264 : vector<16x16xf32> to vector<16x16xbf16>
    %cst_107 = arith.constant dense<0.000000e+00> : vector<16x8xf32>
    %266 = tpu.matmul %265, %250, %cst_107 {dimension_numbers = #tpu.dot_dimension_numbers<[1], [0], [0], [1], [0, 0, 1, 1], [], []>} : vector<16x16xbf16>, vector<16x8xbf16>, vector<16x8xf32> -> vector<16x8xf32>
    %267 = vector.extract_strided_slice %225 {offsets = [8, 0], sizes = [8, 32], strides = [1, 1]} : vector<32x32xbf16> to vector<8x32xbf16>
    %268 = arith.truncf %266 : vector<16x8xf32> to vector<16x8xbf16>
    %cst_108 = arith.constant dense<0.000000e+00> : vector<16x32xf32>
    %269 = tpu.matmul %268, %267, %cst_108 {dimension_numbers = #tpu.dot_dimension_numbers<[1], [0], [0], [1], [0, 0, 1, 1], [], []>} : vector<16x8xbf16>, vector<8x32xbf16>, vector<16x32xf32> -> vector<16x32xf32>
    %270 = vector.extract_strided_slice %223 {offsets = [0, 16], sizes = [16, 8], strides = [1, 1]} : vector<16x96xbf16> to vector<16x8xbf16>
    %271 = vector.extract_strided_slice %223 {offsets = [0, 48], sizes = [16, 8], strides = [1, 1]} : vector<16x96xbf16> to vector<16x8xbf16>
    %272 = vector.extract_strided_slice %223 {offsets = [0, 80], sizes = [16, 8], strides = [1, 1]} : vector<16x96xbf16> to vector<16x8xbf16>
    %cst_109 = arith.constant dense<0.000000e+00> : vector<16x16xf32>
    %273 = tpu.matmul %270, %271, %cst_109 {dimension_numbers = #tpu.dot_dimension_numbers<[1], [1], [0], [0], [0, 0, 1, 0], [], []>} : vector<16x8xbf16>, vector<16x8xbf16>, vector<16x16xf32> -> vector<16x16xf32>
    %cst_110 = arith.constant 0.353553385 : f32
    %274 = vector.broadcast %cst_110 : f32 to vector<16x16xf32>
    %275 = arith.mulf %273, %274 : vector<16x16xf32>
    %276 = arith.addf %275, %0 : vector<16x16xf32>
    %cst_111 = arith.constant dense<0xFF800000> : vector<16xf32>
    %277 = vector.multi_reduction <maximumf>, %276, %cst_111 [1] : vector<16x16xf32> to vector<16xf32>
    %278 = vector.shape_cast %277 : vector<16xf32> to vector<16x1xf32>
    %279 = vector.broadcast %278 : vector<16x1xf32> to vector<16x16xf32>
    %280 = arith.subf %276, %279 : vector<16x16xf32>
    %281 = math.exp %280 : vector<16x16xf32>
    %cst_112 = arith.constant dense<0.000000e+00> : vector<16xf32>
    %282 = vector.multi_reduction <add>, %281, %cst_112 [1] : vector<16x16xf32> to vector<16xf32>
    %283 = vector.shape_cast %282 : vector<16xf32> to vector<16x1xf32>
    %284 = tpu.reciprocal %283 {approx = true} : vector<16x1xf32> -> vector<16x1xf32>
    %285 = vector.broadcast %284 : vector<16x1xf32> to vector<16x16xf32>
    %286 = arith.mulf %281, %285 : vector<16x16xf32>
    %287 = arith.truncf %286 : vector<16x16xf32> to vector<16x16xbf16>
    %cst_113 = arith.constant dense<0.000000e+00> : vector<16x8xf32>
    %288 = tpu.matmul %287, %272, %cst_113 {dimension_numbers = #tpu.dot_dimension_numbers<[1], [0], [0], [1], [0, 0, 1, 1], [], []>} : vector<16x16xbf16>, vector<16x8xbf16>, vector<16x8xf32> -> vector<16x8xf32>
    %289 = vector.extract_strided_slice %225 {offsets = [16, 0], sizes = [8, 32], strides = [1, 1]} : vector<32x32xbf16> to vector<8x32xbf16>
    %290 = arith.truncf %288 : vector<16x8xf32> to vector<16x8xbf16>
    %cst_114 = arith.constant dense<0.000000e+00> : vector<16x32xf32>
    %291 = tpu.matmul %290, %289, %cst_114 {dimension_numbers = #tpu.dot_dimension_numbers<[1], [0], [0], [1], [0, 0, 1, 1], [], []>} : vector<16x8xbf16>, vector<8x32xbf16>, vector<16x32xf32> -> vector<16x32xf32>
    %292 = vector.extract_strided_slice %223 {offsets = [0, 24], sizes = [16, 8], strides = [1, 1]} : vector<16x96xbf16> to vector<16x8xbf16>
    %293 = vector.extract_strided_slice %223 {offsets = [0, 56], sizes = [16, 8], strides = [1, 1]} : vector<16x96xbf16> to vector<16x8xbf16>
    %294 = vector.extract_strided_slice %223 {offsets = [0, 88], sizes = [16, 8], strides = [1, 1]} : vector<16x96xbf16> to vector<16x8xbf16>
    %cst_115 = arith.constant dense<0.000000e+00> : vector<16x16xf32>
    %295 = tpu.matmul %292, %293, %cst_115 {dimension_numbers = #tpu.dot_dimension_numbers<[1], [1], [0], [0], [0, 0, 1, 0], [], []>} : vector<16x8xbf16>, vector<16x8xbf16>, vector<16x16xf32> -> vector<16x16xf32>
    %cst_116 = arith.constant 0.353553385 : f32
    %296 = vector.broadcast %cst_116 : f32 to vector<16x16xf32>
    %297 = arith.mulf %295, %296 : vector<16x16xf32>
    %298 = arith.addf %297, %0 : vector<16x16xf32>
    %cst_117 = arith.constant dense<0xFF800000> : vector<16xf32>
    %299 = vector.multi_reduction <maximumf>, %298, %cst_117 [1] : vector<16x16xf32> to vector<16xf32>
    %300 = vector.shape_cast %299 : vector<16xf32> to vector<16x1xf32>
    %301 = vector.broadcast %300 : vector<16x1xf32> to vector<16x16xf32>
    %302 = arith.subf %298, %301 : vector<16x16xf32>
    %303 = math.exp %302 : vector<16x16xf32>
    %cst_118 = arith.constant dense<0.000000e+00> : vector<16xf32>
    %304 = vector.multi_reduction <add>, %303, %cst_118 [1] : vector<16x16xf32> to vector<16xf32>
    %305 = vector.shape_cast %304 : vector<16xf32> to vector<16x1xf32>
    %306 = tpu.reciprocal %305 {approx = true} : vector<16x1xf32> -> vector<16x1xf32>
    %307 = vector.broadcast %306 : vector<16x1xf32> to vector<16x16xf32>
    %308 = arith.mulf %303, %307 : vector<16x16xf32>
    %309 = arith.truncf %308 : vector<16x16xf32> to vector<16x16xbf16>
    %cst_119 = arith.constant dense<0.000000e+00> : vector<16x8xf32>
    %310 = tpu.matmul %309, %294, %cst_119 {dimension_numbers = #tpu.dot_dimension_numbers<[1], [0], [0], [1], [0, 0, 1, 1], [], []>} : vector<16x16xbf16>, vector<16x8xbf16>, vector<16x8xf32> -> vector<16x8xf32>
    %311 = vector.extract_strided_slice %225 {offsets = [24, 0], sizes = [8, 32], strides = [1, 1]} : vector<32x32xbf16> to vector<8x32xbf16>
    %312 = arith.truncf %310 : vector<16x8xf32> to vector<16x8xbf16>
    %cst_120 = arith.constant dense<0.000000e+00> : vector<16x32xf32>
    %313 = tpu.matmul %312, %311, %cst_120 {dimension_numbers = #tpu.dot_dimension_numbers<[1], [0], [0], [1], [0, 0, 1, 1], [], []>} : vector<16x8xbf16>, vector<8x32xbf16>, vector<16x32xf32> -> vector<16x32xf32>
    %314 = arith.addf %247, %269 : vector<16x32xf32>
    %315 = arith.addf %291, %313 : vector<16x32xf32>
    %316 = arith.addf %314, %315 : vector<16x32xf32>
    %c1_121 = arith.constant 1 : index
    %c0_122 = arith.constant 0 : index
    %c0_123 = arith.constant 0 : index
    %317 = vector.load %arg7[%c1_121, %c0_122, %c0_123] : memref<2x1x32xf32, #tpu.memory_space<vmem>>, vector<1x1x32xf32>
    %318 = vector.shape_cast %317 : vector<1x1x32xf32> to vector<1x32xf32>
    %319 = vector.broadcast %318 : vector<1x32xf32> to vector<16x32xf32>
    %320 = arith.addf %316, %319 : vector<16x32xf32>
    %321 = arith.addf %214, %320 : vector<16x32xf32>
    %c1_124 = arith.constant 1 : index
    %c0_125 = arith.constant 0 : index
    %c0_126 = arith.constant 0 : index
    %322 = vector.load %arg8[%c1_124, %c0_125, %c0_126] : memref<2x1x32xf32, #tpu.memory_space<vmem>>, vector<1x1x32xf32>
    %323 = vector.shape_cast %322 : vector<1x1x32xf32> to vector<1x32xf32>
    %c1_127 = arith.constant 1 : index
    %c0_128 = arith.constant 0 : index
    %c0_129 = arith.constant 0 : index
    %324 = vector.load %arg9[%c1_127, %c0_128, %c0_129] : memref<2x1x32xf32, #tpu.memory_space<vmem>>, vector<1x1x32xf32>
    %325 = vector.shape_cast %324 : vector<1x1x32xf32> to vector<1x32xf32>
    %cst_130 = arith.constant dense<0.000000e+00> : vector<16xf32>
    %326 = vector.multi_reduction <add>, %321, %cst_130 [1] : vector<16x32xf32> to vector<16xf32>
    %327 = vector.shape_cast %326 : vector<16xf32> to vector<16x1xf32>
    %cst_131 = arith.constant 3.200000e+01 : f32
    %328 = vector.broadcast %cst_131 : f32 to vector<16x1xf32>
    %329 = arith.divf %327, %328 : vector<16x1xf32>
    %330 = vector.broadcast %329 : vector<16x1xf32> to vector<16x32xf32>
    %331 = arith.subf %321, %330 : vector<16x32xf32>
    %332 = arith.mulf %331, %331 : vector<16x32xf32>
    %cst_132 = arith.constant dense<0.000000e+00> : vector<16xf32>
    %333 = vector.multi_reduction <add>, %332, %cst_132 [1] : vector<16x32xf32> to vector<16xf32>
    %334 = vector.shape_cast %333 : vector<16xf32> to vector<16x1xf32>
    %cst_133 = arith.constant 3.200000e+01 : f32
    %335 = vector.broadcast %cst_133 : f32 to vector<16x1xf32>
    %336 = arith.divf %334, %335 : vector<16x1xf32>
    %337 = vector.broadcast %329 : vector<16x1xf32> to vector<16x32xf32>
    %338 = arith.subf %321, %337 : vector<16x32xf32>
    %cst_134 = arith.constant 9.99999996E-13 : f32
    %339 = vector.broadcast %cst_134 : f32 to vector<16x1xf32>
    %340 = arith.addf %336, %339 : vector<16x1xf32>
    %341 = math.rsqrt %340 : vector<16x1xf32>
    %342 = vector.broadcast %341 : vector<16x1xf32> to vector<16x32xf32>
    %343 = arith.mulf %338, %342 : vector<16x32xf32>
    %344 = vector.broadcast %323 : vector<1x32xf32> to vector<16x32xf32>
    %345 = arith.mulf %343, %344 : vector<16x32xf32>
    %346 = vector.broadcast %325 : vector<1x32xf32> to vector<16x32xf32>
    %347 = arith.addf %345, %346 : vector<16x32xf32>
    %c1_135 = arith.constant 1 : index
    %c0_136 = arith.constant 0 : index
    %c0_137 = arith.constant 0 : index
    %348 = vector.load %arg10[%c1_135, %c0_136, %c0_137] : memref<2x32x64xbf16, #tpu.memory_space<vmem>>, vector<1x32x64xbf16>
    %349 = vector.shape_cast %348 : vector<1x32x64xbf16> to vector<32x64xbf16>
    %350 = arith.truncf %347 : vector<16x32xf32> to vector<16x32xbf16>
    %cst_138 = arith.constant dense<0.000000e+00> : vector<16x64xf32>
    %351 = tpu.matmul %350, %349, %cst_138 {dimension_numbers = #tpu.dot_dimension_numbers<[1], [0], [0], [1], [0, 0, 1, 1], [], []>} : vector<16x32xbf16>, vector<32x64xbf16>, vector<16x64xf32> -> vector<16x64xf32>
    %c1_139 = arith.constant 1 : index
    %c0_140 = arith.constant 0 : index
    %c0_141 = arith.constant 0 : index
    %352 = vector.load %arg11[%c1_139, %c0_140, %c0_141] : memref<2x1x64xf32, #tpu.memory_space<vmem>>, vector<1x1x64xf32>
    %353 = vector.shape_cast %352 : vector<1x1x64xf32> to vector<1x64xf32>
    %354 = vector.broadcast %353 : vector<1x64xf32> to vector<16x64xf32>
    %355 = arith.addf %351, %354 : vector<16x64xf32>
    %cst_142 = arith.constant 5.000000e-01 : f32
    %356 = vector.broadcast %cst_142 : f32 to vector<16x64xf32>
    %357 = arith.mulf %356, %355 : vector<16x64xf32>
    %cst_143 = arith.constant 4.471500e-02 : f32
    %358 = vector.broadcast %cst_143 : f32 to vector<16x64xf32>
    %359 = arith.mulf %358, %355 : vector<16x64xf32>
    %360 = arith.mulf %359, %355 : vector<16x64xf32>
    %361 = arith.mulf %360, %355 : vector<16x64xf32>
    %362 = arith.addf %355, %361 : vector<16x64xf32>
    %cst_144 = arith.constant 0.797884583 : f32
    %363 = vector.broadcast %cst_144 : f32 to vector<16x64xf32>
    %364 = arith.mulf %363, %362 : vector<16x64xf32>
    %365 = math.tanh %364 : vector<16x64xf32>
    %cst_145 = arith.constant 1.000000e+00 : f32
    %366 = vector.broadcast %cst_145 : f32 to vector<16x64xf32>
    %367 = arith.addf %366, %365 : vector<16x64xf32>
    %368 = arith.mulf %357, %367 : vector<16x64xf32>
    %c1_146 = arith.constant 1 : index
    %c0_147 = arith.constant 0 : index
    %c0_148 = arith.constant 0 : index
    %369 = vector.load %arg12[%c1_146, %c0_147, %c0_148] : memref<2x64x32xbf16, #tpu.memory_space<vmem>>, vector<1x64x32xbf16>
    %370 = vector.shape_cast %369 : vector<1x64x32xbf16> to vector<64x32xbf16>
    %371 = arith.truncf %368 : vector<16x64xf32> to vector<16x64xbf16>
    %cst_149 = arith.constant dense<0.000000e+00> : vector<16x32xf32>
    %372 = tpu.matmul %371, %370, %cst_149 {dimension_numbers = #tpu.dot_dimension_numbers<[1], [0], [0], [1], [0, 0, 1, 1], [], []>} : vector<16x64xbf16>, vector<64x32xbf16>, vector<16x32xf32> -> vector<16x32xf32>
    %c1_150 = arith.constant 1 : index
    %c0_151 = arith.constant 0 : index
    %c0_152 = arith.constant 0 : index
    %373 = vector.load %arg13[%c1_150, %c0_151, %c0_152] : memref<2x1x32xf32, #tpu.memory_space<vmem>>, vector<1x1x32xf32>
    %374 = vector.shape_cast %373 : vector<1x1x32xf32> to vector<1x32xf32>
    %375 = vector.broadcast %374 : vector<1x32xf32> to vector<16x32xf32>
    %376 = arith.addf %372, %375 : vector<16x32xf32>
    %377 = arith.addf %347, %376 : vector<16x32xf32>
    %c1_153 = arith.constant 1 : index
    %c0_154 = arith.constant 0 : index
    %c0_155 = arith.constant 0 : index
    %378 = vector.load %arg14[%c1_153, %c0_154, %c0_155] : memref<2x1x32xf32, #tpu.memory_space<vmem>>, vector<1x1x32xf32>
    %379 = vector.shape_cast %378 : vector<1x1x32xf32> to vector<1x32xf32>
    %c1_156 = arith.constant 1 : index
    %c0_157 = arith.constant 0 : index
    %c0_158 = arith.constant 0 : index
    %380 = vector.load %arg15[%c1_156, %c0_157, %c0_158] : memref<2x1x32xf32, #tpu.memory_space<vmem>>, vector<1x1x32xf32>
    %381 = vector.shape_cast %380 : vector<1x1x32xf32> to vector<1x32xf32>
    %cst_159 = arith.constant dense<0.000000e+00> : vector<16xf32>
    %382 = vector.multi_reduction <add>, %377, %cst_159 [1] : vector<16x32xf32> to vector<16xf32>
    %383 = vector.shape_cast %382 : vector<16xf32> to vector<16x1xf32>
    %cst_160 = arith.constant 3.200000e+01 : f32
    %384 = vector.broadcast %cst_160 : f32 to vector<16x1xf32>
    %385 = arith.divf %383, %384 : vector<16x1xf32>
    %386 = vector.broadcast %385 : vector<16x1xf32> to vector<16x32xf32>
    %387 = arith.subf %377, %386 : vector<16x32xf32>
    %388 = arith.mulf %387, %387 : vector<16x32xf32>
    %cst_161 = arith.constant dense<0.000000e+00> : vector<16xf32>
    %389 = vector.multi_reduction <add>, %388, %cst_161 [1] : vector<16x32xf32> to vector<16xf32>
    %390 = vector.shape_cast %389 : vector<16xf32> to vector<16x1xf32>
    %cst_162 = arith.constant 3.200000e+01 : f32
    %391 = vector.broadcast %cst_162 : f32 to vector<16x1xf32>
    %392 = arith.divf %390, %391 : vector<16x1xf32>
    %393 = vector.broadcast %385 : vector<16x1xf32> to vector<16x32xf32>
    %394 = arith.subf %377, %393 : vector<16x32xf32>
    %cst_163 = arith.constant 9.99999996E-13 : f32
    %395 = vector.broadcast %cst_163 : f32 to vector<16x1xf32>
    %396 = arith.addf %392, %395 : vector<16x1xf32>
    %397 = math.rsqrt %396 : vector<16x1xf32>
    %398 = vector.broadcast %397 : vector<16x1xf32> to vector<16x32xf32>
    %399 = arith.mulf %394, %398 : vector<16x32xf32>
    %400 = vector.broadcast %379 : vector<1x32xf32> to vector<16x32xf32>
    %401 = arith.mulf %399, %400 : vector<16x32xf32>
    %402 = vector.broadcast %381 : vector<1x32xf32> to vector<16x32xf32>
    %403 = arith.addf %401, %402 : vector<16x32xf32>
    %c0_164 = arith.constant 0 : index
    %c0_165 = arith.constant 0 : index
    %404 = vector.load %arg16[%c0_164, %c0_165] : memref<32x8xbf16, #tpu.memory_space<vmem>>, vector<32x8xbf16>
    %405 = arith.truncf %403 : vector<16x32xf32> to vector<16x32xbf16>
    %cst_166 = arith.constant dense<0.000000e+00> : vector<16x8xf32>
    %406 = tpu.matmul %405, %404, %cst_166 {dimension_numbers = #tpu.dot_dimension_numbers<[1], [0], [0], [1], [0, 0, 1, 1], [], []>} : vector<16x32xbf16>, vector<32x8xbf16>, vector<16x8xf32> -> vector<16x8xf32>
    %c0_167 = arith.constant 0 : index
    %c0_168 = arith.constant 0 : index
    %407 = vector.load %arg17[%c0_167, %c0_168] : memref<1x8xf32, #tpu.memory_space<vmem>>, vector<1x8xf32>
    %408 = vector.broadcast %407 : vector<1x8xf32> to vector<16x8xf32>
    %409 = arith.addf %406, %408 : vector<16x8xf32>
    %410 = arith.truncf %409 : vector<16x8xf32> to vector<16x8xbf16>
    %c0_169 = arith.constant 0 : index
    %c0_170 = arith.constant 0 : index
    %c0_171 = arith.constant 0 : index
    %411 = vector.load %arg18[%c0_169, %c0_170, %c0_171] : memref<2x8x48xbf16, #tpu.memory_space<vmem>>, vector<1x8x48xbf16>
    %412 = vector.shape_cast %411 : vector<1x8x48xbf16> to vector<8x48xbf16>
    %cst_172 = arith.constant dense<0.000000e+00> : vector<16x48xf32>
    %413 = tpu.matmul %410, %412, %cst_172 {dimension_numbers = #tpu.dot_dimension_numbers<[1], [0], [0], [1], [0, 0, 1, 1], [], []>} : vector<16x8xbf16>, vector<8x48xbf16>, vector<16x48xf32> -> vector<16x48xf32>
    %c0_173 = arith.constant 0 : index
    %c0_174 = arith.constant 0 : index
    %414 = vector.load %arg20[%c0_173, %c0_174] : memref<1x48xf32, #tpu.memory_space<vmem>>, vector<1x48xf32>
    %415 = vector.broadcast %414 : vector<1x48xf32> to vector<16x48xf32>
    %416 = arith.addf %413, %415 : vector<16x48xf32>
    %c1_175 = arith.constant 1 : index
    %c0_176 = arith.constant 0 : index
    %c0_177 = arith.constant 0 : index
    %417 = vector.load %arg18[%c1_175, %c0_176, %c0_177] : memref<2x8x48xbf16, #tpu.memory_space<vmem>>, vector<1x8x48xbf16>
    %418 = vector.shape_cast %417 : vector<1x8x48xbf16> to vector<8x48xbf16>
    %cst_178 = arith.constant dense<0.000000e+00> : vector<16x48xf32>
    %419 = tpu.matmul %410, %418, %cst_178 {dimension_numbers = #tpu.dot_dimension_numbers<[1], [0], [0], [1], [0, 0, 1, 1], [], []>} : vector<16x8xbf16>, vector<8x48xbf16>, vector<16x48xf32> -> vector<16x48xf32>
    %c0_179 = arith.constant 0 : index
    %c0_180 = arith.constant 0 : index
    %420 = vector.load %arg19[%c0_179, %c0_180] : memref<16x48xbf16, #tpu.memory_space<vmem>>, vector<16x48xbf16>
    %c0_181 = arith.constant 0 : index
    %c0_182 = arith.constant 0 : index
    %421 = vector.load %arg21[%c0_181, %c0_182] : memref<1x48xf32, #tpu.memory_space<vmem>>, vector<1x48xf32>
    %cst_183 = arith.constant 0.000000e+00 : f32
    %422 = vector.broadcast %cst_183 : f32 to vector<2x16xf32>
    %423 = vector.extract_strided_slice %416 {offsets = [0, 0], sizes = [2, 48], strides = [1, 1]} : vector<16x48xf32> to vector<2x48xf32>
    %424 = vector.extract_strided_slice %419 {offsets = [14, 0], sizes = [2, 48], strides = [1, 1]} : vector<16x48xf32> to vector<2x48xf32>
    %425 = arith.addf %423, %424 : vector<2x48xf32>
    %426 = arith.truncf %422 : vector<2x16xf32> to vector<2x16xbf16>
    %cst_184 = arith.constant dense<0.000000e+00> : vector<2x48xf32>
    %427 = tpu.matmul %426, %420, %cst_184 {dimension_numbers = #tpu.dot_dimension_numbers<[1], [0], [0], [1], [0, 0, 1, 1], [], []>} : vector<2x16xbf16>, vector<16x48xbf16>, vector<2x48xf32> -> vector<2x48xf32>
    %428 = vector.broadcast %421 : vector<1x48xf32> to vector<2x48xf32>
    %429 = arith.addf %427, %428 : vector<2x48xf32>
    %430 = vector.extract_strided_slice %425 {offsets = [0, 0], sizes = [2, 16], strides = [1, 1]} : vector<2x48xf32> to vector<2x16xf32>
    %431 = vector.extract_strided_slice %429 {offsets = [0, 0], sizes = [2, 16], strides = [1, 1]} : vector<2x48xf32> to vector<2x16xf32>
    %432 = arith.addf %430, %431 : vector<2x16xf32>
    %433 = arith.negf %432 : vector<2x16xf32>
    %434 = math.exp %433 : vector<2x16xf32>
    %cst_185 = arith.constant 1.000000e+00 : f32
    %435 = vector.broadcast %cst_185 : f32 to vector<2x16xf32>
    %436 = arith.addf %435, %434 : vector<2x16xf32>
    %437 = arith.divf %435, %436 : vector<2x16xf32>
    %438 = vector.extract_strided_slice %425 {offsets = [0, 16], sizes = [2, 16], strides = [1, 1]} : vector<2x48xf32> to vector<2x16xf32>
    %439 = vector.extract_strided_slice %429 {offsets = [0, 16], sizes = [2, 16], strides = [1, 1]} : vector<2x48xf32> to vector<2x16xf32>
    %440 = arith.addf %438, %439 : vector<2x16xf32>
    %441 = arith.negf %440 : vector<2x16xf32>
    %442 = math.exp %441 : vector<2x16xf32>
    %cst_186 = arith.constant 1.000000e+00 : f32
    %443 = vector.broadcast %cst_186 : f32 to vector<2x16xf32>
    %444 = arith.addf %443, %442 : vector<2x16xf32>
    %445 = arith.divf %443, %444 : vector<2x16xf32>
    %446 = vector.extract_strided_slice %425 {offsets = [0, 32], sizes = [2, 16], strides = [1, 1]} : vector<2x48xf32> to vector<2x16xf32>
    %447 = vector.extract_strided_slice %429 {offsets = [0, 32], sizes = [2, 16], strides = [1, 1]} : vector<2x48xf32> to vector<2x16xf32>
    %448 = arith.mulf %437, %447 : vector<2x16xf32>
    %449 = arith.addf %446, %448 : vector<2x16xf32>
    %450 = math.tanh %449 : vector<2x16xf32>
    %cst_187 = arith.constant 1.000000e+00 : f32
    %451 = vector.broadcast %cst_187 : f32 to vector<2x16xf32>
    %452 = arith.subf %451, %445 : vector<2x16xf32>
    %453 = arith.mulf %452, %450 : vector<2x16xf32>
    %454 = arith.mulf %445, %422 : vector<2x16xf32>
    %455 = arith.addf %453, %454 : vector<2x16xf32>
    %456 = vector.extract_strided_slice %455 {offsets = [0, 0], sizes = [2, 8], strides = [1, 1]} : vector<2x16xf32> to vector<2x8xf32>
    %c0_188 = arith.constant 0 : index
    %c0_189 = arith.constant 0 : index
    %457 = vector.load %arg25[%c0_188, %c0_189] : memref<16x8xf32, #tpu.memory_space<vmem>>, vector<2x8xf32>
    tpu.vector_store %arg25[%c0_188, %c0_189], %456 {strides = array<i32>} : memref<16x8xf32, #tpu.memory_space<vmem>>, vector<2x8xf32>,
    %458 = vector.extract_strided_slice %455 {offsets = [0, 8], sizes = [2, 8], strides = [1, 1]} : vector<2x16xf32> to vector<2x8xf32>
    %c14 = arith.constant 14 : index
    %c0_190 = arith.constant 0 : index
    %459 = vector.load %arg26[%c14, %c0_190] : memref<16x8xf32, #tpu.memory_space<vmem>>, vector<2x8xf32>
    tpu.vector_store %arg26[%c14, %c0_190], %458 {strides = array<i32>} : memref<16x8xf32, #tpu.memory_space<vmem>>, vector<2x8xf32>,
    %460 = vector.extract_strided_slice %416 {offsets = [2, 0], sizes = [2, 48], strides = [1, 1]} : vector<16x48xf32> to vector<2x48xf32>
    %461 = vector.extract_strided_slice %419 {offsets = [12, 0], sizes = [2, 48], strides = [1, 1]} : vector<16x48xf32> to vector<2x48xf32>
    %462 = arith.addf %460, %461 : vector<2x48xf32>
    %463 = arith.truncf %455 : vector<2x16xf32> to vector<2x16xbf16>
    %cst_191 = arith.constant dense<0.000000e+00> : vector<2x48xf32>
    %464 = tpu.matmul %463, %420, %cst_191 {dimension_numbers = #tpu.dot_dimension_numbers<[1], [0], [0], [1], [0, 0, 1, 1], [], []>} : vector<2x16xbf16>, vector<16x48xbf16>, vector<2x48xf32> -> vector<2x48xf32>
    %465 = vector.broadcast %421 : vector<1x48xf32> to vector<2x48xf32>
    %466 = arith.addf %464, %465 : vector<2x48xf32>
    %467 = vector.extract_strided_slice %462 {offsets = [0, 0], sizes = [2, 16], strides = [1, 1]} : vector<2x48xf32> to vector<2x16xf32>
    %468 = vector.extract_strided_slice %466 {offsets = [0, 0], sizes = [2, 16], strides = [1, 1]} : vector<2x48xf32> to vector<2x16xf32>
    %469 = arith.addf %467, %468 : vector<2x16xf32>
    %470 = arith.negf %469 : vector<2x16xf32>
    %471 = math.exp %470 : vector<2x16xf32>
    %cst_192 = arith.constant 1.000000e+00 : f32
    %472 = vector.broadcast %cst_192 : f32 to vector<2x16xf32>
    %473 = arith.addf %472, %471 : vector<2x16xf32>
    %474 = arith.divf %472, %473 : vector<2x16xf32>
    %475 = vector.extract_strided_slice %462 {offsets = [0, 16], sizes = [2, 16], strides = [1, 1]} : vector<2x48xf32> to vector<2x16xf32>
    %476 = vector.extract_strided_slice %466 {offsets = [0, 16], sizes = [2, 16], strides = [1, 1]} : vector<2x48xf32> to vector<2x16xf32>
    %477 = arith.addf %475, %476 : vector<2x16xf32>
    %478 = arith.negf %477 : vector<2x16xf32>
    %479 = math.exp %478 : vector<2x16xf32>
    %cst_193 = arith.constant 1.000000e+00 : f32
    %480 = vector.broadcast %cst_193 : f32 to vector<2x16xf32>
    %481 = arith.addf %480, %479 : vector<2x16xf32>
    %482 = arith.divf %480, %481 : vector<2x16xf32>
    %483 = vector.extract_strided_slice %462 {offsets = [0, 32], sizes = [2, 16], strides = [1, 1]} : vector<2x48xf32> to vector<2x16xf32>
    %484 = vector.extract_strided_slice %466 {offsets = [0, 32], sizes = [2, 16], strides = [1, 1]} : vector<2x48xf32> to vector<2x16xf32>
    %485 = arith.mulf %474, %484 : vector<2x16xf32>
    %486 = arith.addf %483, %485 : vector<2x16xf32>
    %487 = math.tanh %486 : vector<2x16xf32>
    %cst_194 = arith.constant 1.000000e+00 : f32
    %488 = vector.broadcast %cst_194 : f32 to vector<2x16xf32>
    %489 = arith.subf %488, %482 : vector<2x16xf32>
    %490 = arith.mulf %489, %487 : vector<2x16xf32>
    %491 = arith.mulf %482, %455 : vector<2x16xf32>
    %492 = arith.addf %490, %491 : vector<2x16xf32>
    %493 = vector.extract_strided_slice %492 {offsets = [0, 0], sizes = [2, 8], strides = [1, 1]} : vector<2x16xf32> to vector<2x8xf32>
    %c2 = arith.constant 2 : index
    %c0_195 = arith.constant 0 : index
    %494 = vector.load %arg25[%c2, %c0_195] : memref<16x8xf32, #tpu.memory_space<vmem>>, vector<2x8xf32>
    tpu.vector_store %arg25[%c2, %c0_195], %493 {strides = array<i32>} : memref<16x8xf32, #tpu.memory_space<vmem>>, vector<2x8xf32>,
    %495 = vector.extract_strided_slice %492 {offsets = [0, 8], sizes = [2, 8], strides = [1, 1]} : vector<2x16xf32> to vector<2x8xf32>
    %c12 = arith.constant 12 : index
    %c0_196 = arith.constant 0 : index
    %496 = vector.load %arg26[%c12, %c0_196] : memref<16x8xf32, #tpu.memory_space<vmem>>, vector<2x8xf32>
    tpu.vector_store %arg26[%c12, %c0_196], %495 {strides = array<i32>} : memref<16x8xf32, #tpu.memory_space<vmem>>, vector<2x8xf32>,
    %497 = vector.extract_strided_slice %416 {offsets = [4, 0], sizes = [2, 48], strides = [1, 1]} : vector<16x48xf32> to vector<2x48xf32>
    %498 = vector.extract_strided_slice %419 {offsets = [10, 0], sizes = [2, 48], strides = [1, 1]} : vector<16x48xf32> to vector<2x48xf32>
    %499 = arith.addf %497, %498 : vector<2x48xf32>
    %500 = arith.truncf %492 : vector<2x16xf32> to vector<2x16xbf16>
    %cst_197 = arith.constant dense<0.000000e+00> : vector<2x48xf32>
    %501 = tpu.matmul %500, %420, %cst_197 {dimension_numbers = #tpu.dot_dimension_numbers<[1], [0], [0], [1], [0, 0, 1, 1], [], []>} : vector<2x16xbf16>, vector<16x48xbf16>, vector<2x48xf32> -> vector<2x48xf32>
    %502 = vector.broadcast %421 : vector<1x48xf32> to vector<2x48xf32>
    %503 = arith.addf %501, %502 : vector<2x48xf32>
    %504 = vector.extract_strided_slice %499 {offsets = [0, 0], sizes = [2, 16], strides = [1, 1]} : vector<2x48xf32> to vector<2x16xf32>
    %505 = vector.extract_strided_slice %503 {offsets = [0, 0], sizes = [2, 16], strides = [1, 1]} : vector<2x48xf32> to vector<2x16xf32>
    %506 = arith.addf %504, %505 : vector<2x16xf32>
    %507 = arith.negf %506 : vector<2x16xf32>
    %508 = math.exp %507 : vector<2x16xf32>
    %cst_198 = arith.constant 1.000000e+00 : f32
    %509 = vector.broadcast %cst_198 : f32 to vector<2x16xf32>
    %510 = arith.addf %509, %508 : vector<2x16xf32>
    %511 = arith.divf %509, %510 : vector<2x16xf32>
    %512 = vector.extract_strided_slice %499 {offsets = [0, 16], sizes = [2, 16], strides = [1, 1]} : vector<2x48xf32> to vector<2x16xf32>
    %513 = vector.extract_strided_slice %503 {offsets = [0, 16], sizes = [2, 16], strides = [1, 1]} : vector<2x48xf32> to vector<2x16xf32>
    %514 = arith.addf %512, %513 : vector<2x16xf32>
    %515 = arith.negf %514 : vector<2x16xf32>
    %516 = math.exp %515 : vector<2x16xf32>
    %cst_199 = arith.constant 1.000000e+00 : f32
    %517 = vector.broadcast %cst_199 : f32 to vector<2x16xf32>
    %518 = arith.addf %517, %516 : vector<2x16xf32>
    %519 = arith.divf %517, %518 : vector<2x16xf32>
    %520 = vector.extract_strided_slice %499 {offsets = [0, 32], sizes = [2, 16], strides = [1, 1]} : vector<2x48xf32> to vector<2x16xf32>
    %521 = vector.extract_strided_slice %503 {offsets = [0, 32], sizes = [2, 16], strides = [1, 1]} : vector<2x48xf32> to vector<2x16xf32>
    %522 = arith.mulf %511, %521 : vector<2x16xf32>
    %523 = arith.addf %520, %522 : vector<2x16xf32>
    %524 = math.tanh %523 : vector<2x16xf32>
    %cst_200 = arith.constant 1.000000e+00 : f32
    %525 = vector.broadcast %cst_200 : f32 to vector<2x16xf32>
    %526 = arith.subf %525, %519 : vector<2x16xf32>
    %527 = arith.mulf %526, %524 : vector<2x16xf32>
    %528 = arith.mulf %519, %492 : vector<2x16xf32>
    %529 = arith.addf %527, %528 : vector<2x16xf32>
    %530 = vector.extract_strided_slice %529 {offsets = [0, 0], sizes = [2, 8], strides = [1, 1]} : vector<2x16xf32> to vector<2x8xf32>
    %c4 = arith.constant 4 : index
    %c0_201 = arith.constant 0 : index
    %531 = vector.load %arg25[%c4, %c0_201] : memref<16x8xf32, #tpu.memory_space<vmem>>, vector<2x8xf32>
    tpu.vector_store %arg25[%c4, %c0_201], %530 {strides = array<i32>} : memref<16x8xf32, #tpu.memory_space<vmem>>, vector<2x8xf32>,
    %532 = vector.extract_strided_slice %529 {offsets = [0, 8], sizes = [2, 8], strides = [1, 1]} : vector<2x16xf32> to vector<2x8xf32>
    %c10 = arith.constant 10 : index
    %c0_202 = arith.constant 0 : index
    %533 = vector.load %arg26[%c10, %c0_202] : memref<16x8xf32, #tpu.memory_space<vmem>>, vector<2x8xf32>
    tpu.vector_store %arg26[%c10, %c0_202], %532 {strides = array<i32>} : memref<16x8xf32, #tpu.memory_space<vmem>>, vector<2x8xf32>,
    %534 = vector.extract_strided_slice %416 {offsets = [6, 0], sizes = [2, 48], strides = [1, 1]} : vector<16x48xf32> to vector<2x48xf32>
    %535 = vector.extract_strided_slice %419 {offsets = [8, 0], sizes = [2, 48], strides = [1, 1]} : vector<16x48xf32> to vector<2x48xf32>
    %536 = arith.addf %534, %535 : vector<2x48xf32>
    %537 = arith.truncf %529 : vector<2x16xf32> to vector<2x16xbf16>
    %cst_203 = arith.constant dense<0.000000e+00> : vector<2x48xf32>
    %538 = tpu.matmul %537, %420, %cst_203 {dimension_numbers = #tpu.dot_dimension_numbers<[1], [0], [0], [1], [0, 0, 1, 1], [], []>} : vector<2x16xbf16>, vector<16x48xbf16>, vector<2x48xf32> -> vector<2x48xf32>
    %539 = vector.broadcast %421 : vector<1x48xf32> to vector<2x48xf32>
    %540 = arith.addf %538, %539 : vector<2x48xf32>
    %541 = vector.extract_strided_slice %536 {offsets = [0, 0], sizes = [2, 16], strides = [1, 1]} : vector<2x48xf32> to vector<2x16xf32>
    %542 = vector.extract_strided_slice %540 {offsets = [0, 0], sizes = [2, 16], strides = [1, 1]} : vector<2x48xf32> to vector<2x16xf32>
    %543 = arith.addf %541, %542 : vector<2x16xf32>
    %544 = arith.negf %543 : vector<2x16xf32>
    %545 = math.exp %544 : vector<2x16xf32>
    %cst_204 = arith.constant 1.000000e+00 : f32
    %546 = vector.broadcast %cst_204 : f32 to vector<2x16xf32>
    %547 = arith.addf %546, %545 : vector<2x16xf32>
    %548 = arith.divf %546, %547 : vector<2x16xf32>
    %549 = vector.extract_strided_slice %536 {offsets = [0, 16], sizes = [2, 16], strides = [1, 1]} : vector<2x48xf32> to vector<2x16xf32>
    %550 = vector.extract_strided_slice %540 {offsets = [0, 16], sizes = [2, 16], strides = [1, 1]} : vector<2x48xf32> to vector<2x16xf32>
    %551 = arith.addf %549, %550 : vector<2x16xf32>
    %552 = arith.negf %551 : vector<2x16xf32>
    %553 = math.exp %552 : vector<2x16xf32>
    %cst_205 = arith.constant 1.000000e+00 : f32
    %554 = vector.broadcast %cst_205 : f32 to vector<2x16xf32>
    %555 = arith.addf %554, %553 : vector<2x16xf32>
    %556 = arith.divf %554, %555 : vector<2x16xf32>
    %557 = vector.extract_strided_slice %536 {offsets = [0, 32], sizes = [2, 16], strides = [1, 1]} : vector<2x48xf32> to vector<2x16xf32>
    %558 = vector.extract_strided_slice %540 {offsets = [0, 32], sizes = [2, 16], strides = [1, 1]} : vector<2x48xf32> to vector<2x16xf32>
    %559 = arith.mulf %548, %558 : vector<2x16xf32>
    %560 = arith.addf %557, %559 : vector<2x16xf32>
    %561 = math.tanh %560 : vector<2x16xf32>
    %cst_206 = arith.constant 1.000000e+00 : f32
    %562 = vector.broadcast %cst_206 : f32 to vector<2x16xf32>
    %563 = arith.subf %562, %556 : vector<2x16xf32>
    %564 = arith.mulf %563, %561 : vector<2x16xf32>
    %565 = arith.mulf %556, %529 : vector<2x16xf32>
    %566 = arith.addf %564, %565 : vector<2x16xf32>
    %567 = vector.extract_strided_slice %566 {offsets = [0, 0], sizes = [2, 8], strides = [1, 1]} : vector<2x16xf32> to vector<2x8xf32>
    %c6 = arith.constant 6 : index
    %c0_207 = arith.constant 0 : index
    %568 = vector.load %arg25[%c6, %c0_207] : memref<16x8xf32, #tpu.memory_space<vmem>>, vector<2x8xf32>
    tpu.vector_store %arg25[%c6, %c0_207], %567 {strides = array<i32>} : memref<16x8xf32, #tpu.memory_space<vmem>>, vector<2x8xf32>,
    %569 = vector.extract_strided_slice %566 {offsets = [0, 8], sizes = [2, 8], strides = [1, 1]} : vector<2x16xf32> to vector<2x8xf32>
    %c8 = arith.constant 8 : index
    %c0_208 = arith.constant 0 : index
    %570 = vector.load %arg26[%c8, %c0_208] : memref<16x8xf32, #tpu.memory_space<vmem>>, vector<2x8xf32>
    tpu.vector_store %arg26[%c8, %c0_208], %569 {strides = array<i32>} : memref<16x8xf32, #tpu.memory_space<vmem>>, vector<2x8xf32>,
    %571 = vector.extract_strided_slice %416 {offsets = [8, 0], sizes = [2, 48], strides = [1, 1]} : vector<16x48xf32> to vector<2x48xf32>
    %572 = vector.extract_strided_slice %419 {offsets = [6, 0], sizes = [2, 48], strides = [1, 1]} : vector<16x48xf32> to vector<2x48xf32>
    %573 = arith.addf %571, %572 : vector<2x48xf32>
    %574 = arith.truncf %566 : vector<2x16xf32> to vector<2x16xbf16>
    %cst_209 = arith.constant dense<0.000000e+00> : vector<2x48xf32>
    %575 = tpu.matmul %574, %420, %cst_209 {dimension_numbers = #tpu.dot_dimension_numbers<[1], [0], [0], [1], [0, 0, 1, 1], [], []>} : vector<2x16xbf16>, vector<16x48xbf16>, vector<2x48xf32> -> vector<2x48xf32>
    %576 = vector.broadcast %421 : vector<1x48xf32> to vector<2x48xf32>
    %577 = arith.addf %575, %576 : vector<2x48xf32>
    %578 = vector.extract_strided_slice %573 {offsets = [0, 0], sizes = [2, 16], strides = [1, 1]} : vector<2x48xf32> to vector<2x16xf32>
    %579 = vector.extract_strided_slice %577 {offsets = [0, 0], sizes = [2, 16], strides = [1, 1]} : vector<2x48xf32> to vector<2x16xf32>
    %580 = arith.addf %578, %579 : vector<2x16xf32>
    %581 = arith.negf %580 : vector<2x16xf32>
    %582 = math.exp %581 : vector<2x16xf32>
    %cst_210 = arith.constant 1.000000e+00 : f32
    %583 = vector.broadcast %cst_210 : f32 to vector<2x16xf32>
    %584 = arith.addf %583, %582 : vector<2x16xf32>
    %585 = arith.divf %583, %584 : vector<2x16xf32>
    %586 = vector.extract_strided_slice %573 {offsets = [0, 16], sizes = [2, 16], strides = [1, 1]} : vector<2x48xf32> to vector<2x16xf32>
    %587 = vector.extract_strided_slice %577 {offsets = [0, 16], sizes = [2, 16], strides = [1, 1]} : vector<2x48xf32> to vector<2x16xf32>
    %588 = arith.addf %586, %587 : vector<2x16xf32>
    %589 = arith.negf %588 : vector<2x16xf32>
    %590 = math.exp %589 : vector<2x16xf32>
    %cst_211 = arith.constant 1.000000e+00 : f32
    %591 = vector.broadcast %cst_211 : f32 to vector<2x16xf32>
    %592 = arith.addf %591, %590 : vector<2x16xf32>
    %593 = arith.divf %591, %592 : vector<2x16xf32>
    %594 = vector.extract_strided_slice %573 {offsets = [0, 32], sizes = [2, 16], strides = [1, 1]} : vector<2x48xf32> to vector<2x16xf32>
    %595 = vector.extract_strided_slice %577 {offsets = [0, 32], sizes = [2, 16], strides = [1, 1]} : vector<2x48xf32> to vector<2x16xf32>
    %596 = arith.mulf %585, %595 : vector<2x16xf32>
    %597 = arith.addf %594, %596 : vector<2x16xf32>
    %598 = math.tanh %597 : vector<2x16xf32>
    %cst_212 = arith.constant 1.000000e+00 : f32
    %599 = vector.broadcast %cst_212 : f32 to vector<2x16xf32>
    %600 = arith.subf %599, %593 : vector<2x16xf32>
    %601 = arith.mulf %600, %598 : vector<2x16xf32>
    %602 = arith.mulf %593, %566 : vector<2x16xf32>
    %603 = arith.addf %601, %602 : vector<2x16xf32>
    %604 = vector.extract_strided_slice %603 {offsets = [0, 0], sizes = [2, 8], strides = [1, 1]} : vector<2x16xf32> to vector<2x8xf32>
    %c8_213 = arith.constant 8 : index
    %c0_214 = arith.constant 0 : index
    %605 = vector.load %arg25[%c8_213, %c0_214] : memref<16x8xf32, #tpu.memory_space<vmem>>, vector<2x8xf32>
    tpu.vector_store %arg25[%c8_213, %c0_214], %604 {strides = array<i32>} : memref<16x8xf32, #tpu.memory_space<vmem>>, vector<2x8xf32>,
    %606 = vector.extract_strided_slice %603 {offsets = [0, 8], sizes = [2, 8], strides = [1, 1]} : vector<2x16xf32> to vector<2x8xf32>
    %c6_215 = arith.constant 6 : index
    %c0_216 = arith.constant 0 : index
    %607 = vector.load %arg26[%c6_215, %c0_216] : memref<16x8xf32, #tpu.memory_space<vmem>>, vector<2x8xf32>
    tpu.vector_store %arg26[%c6_215, %c0_216], %606 {strides = array<i32>} : memref<16x8xf32, #tpu.memory_space<vmem>>, vector<2x8xf32>,
    %608 = vector.extract_strided_slice %416 {offsets = [10, 0], sizes = [2, 48], strides = [1, 1]} : vector<16x48xf32> to vector<2x48xf32>
    %609 = vector.extract_strided_slice %419 {offsets = [4, 0], sizes = [2, 48], strides = [1, 1]} : vector<16x48xf32> to vector<2x48xf32>
    %610 = arith.addf %608, %609 : vector<2x48xf32>
    %611 = arith.truncf %603 : vector<2x16xf32> to vector<2x16xbf16>
    %cst_217 = arith.constant dense<0.000000e+00> : vector<2x48xf32>
    %612 = tpu.matmul %611, %420, %cst_217 {dimension_numbers = #tpu.dot_dimension_numbers<[1], [0], [0], [1], [0, 0, 1, 1], [], []>} : vector<2x16xbf16>, vector<16x48xbf16>, vector<2x48xf32> -> vector<2x48xf32>
    %613 = vector.broadcast %421 : vector<1x48xf32> to vector<2x48xf32>
    %614 = arith.addf %612, %613 : vector<2x48xf32>
    %615 = vector.extract_strided_slice %610 {offsets = [0, 0], sizes = [2, 16], strides = [1, 1]} : vector<2x48xf32> to vector<2x16xf32>
    %616 = vector.extract_strided_slice %614 {offsets = [0, 0], sizes = [2, 16], strides = [1, 1]} : vector<2x48xf32> to vector<2x16xf32>
    %617 = arith.addf %615, %616 : vector<2x16xf32>
    %618 = arith.negf %617 : vector<2x16xf32>
    %619 = math.exp %618 : vector<2x16xf32>
    %cst_218 = arith.constant 1.000000e+00 : f32
    %620 = vector.broadcast %cst_218 : f32 to vector<2x16xf32>
    %621 = arith.addf %620, %619 : vector<2x16xf32>
    %622 = arith.divf %620, %621 : vector<2x16xf32>
    %623 = vector.extract_strided_slice %610 {offsets = [0, 16], sizes = [2, 16], strides = [1, 1]} : vector<2x48xf32> to vector<2x16xf32>
    %624 = vector.extract_strided_slice %614 {offsets = [0, 16], sizes = [2, 16], strides = [1, 1]} : vector<2x48xf32> to vector<2x16xf32>
    %625 = arith.addf %623, %624 : vector<2x16xf32>
    %626 = arith.negf %625 : vector<2x16xf32>
    %627 = math.exp %626 : vector<2x16xf32>
    %cst_219 = arith.constant 1.000000e+00 : f32
    %628 = vector.broadcast %cst_219 : f32 to vector<2x16xf32>
    %629 = arith.addf %628, %627 : vector<2x16xf32>
    %630 = arith.divf %628, %629 : vector<2x16xf32>
    %631 = vector.extract_strided_slice %610 {offsets = [0, 32], sizes = [2, 16], strides = [1, 1]} : vector<2x48xf32> to vector<2x16xf32>
    %632 = vector.extract_strided_slice %614 {offsets = [0, 32], sizes = [2, 16], strides = [1, 1]} : vector<2x48xf32> to vector<2x16xf32>
    %633 = arith.mulf %622, %632 : vector<2x16xf32>
    %634 = arith.addf %631, %633 : vector<2x16xf32>
    %635 = math.tanh %634 : vector<2x16xf32>
    %cst_220 = arith.constant 1.000000e+00 : f32
    %636 = vector.broadcast %cst_220 : f32 to vector<2x16xf32>
    %637 = arith.subf %636, %630 : vector<2x16xf32>
    %638 = arith.mulf %637, %635 : vector<2x16xf32>
    %639 = arith.mulf %630, %603 : vector<2x16xf32>
    %640 = arith.addf %638, %639 : vector<2x16xf32>
    %641 = vector.extract_strided_slice %640 {offsets = [0, 0], sizes = [2, 8], strides = [1, 1]} : vector<2x16xf32> to vector<2x8xf32>
    %c10_221 = arith.constant 10 : index
    %c0_222 = arith.constant 0 : index
    %642 = vector.load %arg25[%c10_221, %c0_222] : memref<16x8xf32, #tpu.memory_space<vmem>>, vector<2x8xf32>
    tpu.vector_store %arg25[%c10_221, %c0_222], %641 {strides = array<i32>} : memref<16x8xf32, #tpu.memory_space<vmem>>, vector<2x8xf32>,
    %643 = vector.extract_strided_slice %640 {offsets = [0, 8], sizes = [2, 8], strides = [1, 1]} : vector<2x16xf32> to vector<2x8xf32>
    %c4_223 = arith.constant 4 : index
    %c0_224 = arith.constant 0 : index
    %644 = vector.load %arg26[%c4_223, %c0_224] : memref<16x8xf32, #tpu.memory_space<vmem>>, vector<2x8xf32>
    tpu.vector_store %arg26[%c4_223, %c0_224], %643 {strides = array<i32>} : memref<16x8xf32, #tpu.memory_space<vmem>>, vector<2x8xf32>,
    %645 = vector.extract_strided_slice %416 {offsets = [12, 0], sizes = [2, 48], strides = [1, 1]} : vector<16x48xf32> to vector<2x48xf32>
    %646 = vector.extract_strided_slice %419 {offsets = [2, 0], sizes = [2, 48], strides = [1, 1]} : vector<16x48xf32> to vector<2x48xf32>
    %647 = arith.addf %645, %646 : vector<2x48xf32>
    %648 = arith.truncf %640 : vector<2x16xf32> to vector<2x16xbf16>
    %cst_225 = arith.constant dense<0.000000e+00> : vector<2x48xf32>
    %649 = tpu.matmul %648, %420, %cst_225 {dimension_numbers = #tpu.dot_dimension_numbers<[1], [0], [0], [1], [0, 0, 1, 1], [], []>} : vector<2x16xbf16>, vector<16x48xbf16>, vector<2x48xf32> -> vector<2x48xf32>
    %650 = vector.broadcast %421 : vector<1x48xf32> to vector<2x48xf32>
    %651 = arith.addf %649, %650 : vector<2x48xf32>
    %652 = vector.extract_strided_slice %647 {offsets = [0, 0], sizes = [2, 16], strides = [1, 1]} : vector<2x48xf32> to vector<2x16xf32>
    %653 = vector.extract_strided_slice %651 {offsets = [0, 0], sizes = [2, 16], strides = [1, 1]} : vector<2x48xf32> to vector<2x16xf32>
    %654 = arith.addf %652, %653 : vector<2x16xf32>
    %655 = arith.negf %654 : vector<2x16xf32>
    %656 = math.exp %655 : vector<2x16xf32>
    %cst_226 = arith.constant 1.000000e+00 : f32
    %657 = vector.broadcast %cst_226 : f32 to vector<2x16xf32>
    %658 = arith.addf %657, %656 : vector<2x16xf32>
    %659 = arith.divf %657, %658 : vector<2x16xf32>
    %660 = vector.extract_strided_slice %647 {offsets = [0, 16], sizes = [2, 16], strides = [1, 1]} : vector<2x48xf32> to vector<2x16xf32>
    %661 = vector.extract_strided_slice %651 {offsets = [0, 16], sizes = [2, 16], strides = [1, 1]} : vector<2x48xf32> to vector<2x16xf32>
    %662 = arith.addf %660, %661 : vector<2x16xf32>
    %663 = arith.negf %662 : vector<2x16xf32>
    %664 = math.exp %663 : vector<2x16xf32>
    %cst_227 = arith.constant 1.000000e+00 : f32
    %665 = vector.broadcast %cst_227 : f32 to vector<2x16xf32>
    %666 = arith.addf %665, %664 : vector<2x16xf32>
    %667 = arith.divf %665, %666 : vector<2x16xf32>
    %668 = vector.extract_strided_slice %647 {offsets = [0, 32], sizes = [2, 16], strides = [1, 1]} : vector<2x48xf32> to vector<2x16xf32>
    %669 = vector.extract_strided_slice %651 {offsets = [0, 32], sizes = [2, 16], strides = [1, 1]} : vector<2x48xf32> to vector<2x16xf32>
    %670 = arith.mulf %659, %669 : vector<2x16xf32>
    %671 = arith.addf %668, %670 : vector<2x16xf32>
    %672 = math.tanh %671 : vector<2x16xf32>
    %cst_228 = arith.constant 1.000000e+00 : f32
    %673 = vector.broadcast %cst_228 : f32 to vector<2x16xf32>
    %674 = arith.subf %673, %667 : vector<2x16xf32>
    %675 = arith.mulf %674, %672 : vector<2x16xf32>
    %676 = arith.mulf %667, %640 : vector<2x16xf32>
    %677 = arith.addf %675, %676 : vector<2x16xf32>
    %678 = vector.extract_strided_slice %677 {offsets = [0, 0], sizes = [2, 8], strides = [1, 1]} : vector<2x16xf32> to vector<2x8xf32>
    %c12_229 = arith.constant 12 : index
    %c0_230 = arith.constant 0 : index
    %679 = vector.load %arg25[%c12_229, %c0_230] : memref<16x8xf32, #tpu.memory_space<vmem>>, vector<2x8xf32>
    tpu.vector_store %arg25[%c12_229, %c0_230], %678 {strides = array<i32>} : memref<16x8xf32, #tpu.memory_space<vmem>>, vector<2x8xf32>,
    %680 = vector.extract_strided_slice %677 {offsets = [0, 8], sizes = [2, 8], strides = [1, 1]} : vector<2x16xf32> to vector<2x8xf32>
    %c2_231 = arith.constant 2 : index
    %c0_232 = arith.constant 0 : index
    %681 = vector.load %arg26[%c2_231, %c0_232] : memref<16x8xf32, #tpu.memory_space<vmem>>, vector<2x8xf32>
    tpu.vector_store %arg26[%c2_231, %c0_232], %680 {strides = array<i32>} : memref<16x8xf32, #tpu.memory_space<vmem>>, vector<2x8xf32>,
    %682 = vector.extract_strided_slice %416 {offsets = [14, 0], sizes = [2, 48], strides = [1, 1]} : vector<16x48xf32> to vector<2x48xf32>
    %683 = vector.extract_strided_slice %419 {offsets = [0, 0], sizes = [2, 48], strides = [1, 1]} : vector<16x48xf32> to vector<2x48xf32>
    %684 = arith.addf %682, %683 : vector<2x48xf32>
    %685 = arith.truncf %677 : vector<2x16xf32> to vector<2x16xbf16>
    %cst_233 = arith.constant dense<0.000000e+00> : vector<2x48xf32>
    %686 = tpu.matmul %685, %420, %cst_233 {dimension_numbers = #tpu.dot_dimension_numbers<[1], [0], [0], [1], [0, 0, 1, 1], [], []>} : vector<2x16xbf16>, vector<16x48xbf16>, vector<2x48xf32> -> vector<2x48xf32>
    %687 = vector.broadcast %421 : vector<1x48xf32> to vector<2x48xf32>
    %688 = arith.addf %686, %687 : vector<2x48xf32>
    %689 = vector.extract_strided_slice %684 {offsets = [0, 0], sizes = [2, 16], strides = [1, 1]} : vector<2x48xf32> to vector<2x16xf32>
    %690 = vector.extract_strided_slice %688 {offsets = [0, 0], sizes = [2, 16], strides = [1, 1]} : vector<2x48xf32> to vector<2x16xf32>
    %691 = arith.addf %689, %690 : vector<2x16xf32>
    %692 = arith.negf %691 : vector<2x16xf32>
    %693 = math.exp %692 : vector<2x16xf32>
    %cst_234 = arith.constant 1.000000e+00 : f32
    %694 = vector.broadcast %cst_234 : f32 to vector<2x16xf32>
    %695 = arith.addf %694, %693 : vector<2x16xf32>
    %696 = arith.divf %694, %695 : vector<2x16xf32>
    %697 = vector.extract_strided_slice %684 {offsets = [0, 16], sizes = [2, 16], strides = [1, 1]} : vector<2x48xf32> to vector<2x16xf32>
    %698 = vector.extract_strided_slice %688 {offsets = [0, 16], sizes = [2, 16], strides = [1, 1]} : vector<2x48xf32> to vector<2x16xf32>
    %699 = arith.addf %697, %698 : vector<2x16xf32>
    %700 = arith.negf %699 : vector<2x16xf32>
    %701 = math.exp %700 : vector<2x16xf32>
    %cst_235 = arith.constant 1.000000e+00 : f32
    %702 = vector.broadcast %cst_235 : f32 to vector<2x16xf32>
    %703 = arith.addf %702, %701 : vector<2x16xf32>
    %704 = arith.divf %702, %703 : vector<2x16xf32>
    %705 = vector.extract_strided_slice %684 {offsets = [0, 32], sizes = [2, 16], strides = [1, 1]} : vector<2x48xf32> to vector<2x16xf32>
    %706 = vector.extract_strided_slice %688 {offsets = [0, 32], sizes = [2, 16], strides = [1, 1]} : vector<2x48xf32> to vector<2x16xf32>
    %707 = arith.mulf %696, %706 : vector<2x16xf32>
    %708 = arith.addf %705, %707 : vector<2x16xf32>
    %709 = math.tanh %708 : vector<2x16xf32>
    %cst_236 = arith.constant 1.000000e+00 : f32
    %710 = vector.broadcast %cst_236 : f32 to vector<2x16xf32>
    %711 = arith.subf %710, %704 : vector<2x16xf32>
    %712 = arith.mulf %711, %709 : vector<2x16xf32>
    %713 = arith.mulf %704, %677 : vector<2x16xf32>
    %714 = arith.addf %712, %713 : vector<2x16xf32>
    %715 = vector.extract_strided_slice %714 {offsets = [0, 0], sizes = [2, 8], strides = [1, 1]} : vector<2x16xf32> to vector<2x8xf32>
    %c14_237 = arith.constant 14 : index
    %c0_238 = arith.constant 0 : index
    %716 = vector.load %arg25[%c14_237, %c0_238] : memref<16x8xf32, #tpu.memory_space<vmem>>, vector<2x8xf32>
    tpu.vector_store %arg25[%c14_237, %c0_238], %715 {strides = array<i32>} : memref<16x8xf32, #tpu.memory_space<vmem>>, vector<2x8xf32>,
    %717 = vector.extract_strided_slice %714 {offsets = [0, 8], sizes = [2, 8], strides = [1, 1]} : vector<2x16xf32> to vector<2x8xf32>
    %c0_239 = arith.constant 0 : index
    %c0_240 = arith.constant 0 : index
    %718 = vector.load %arg26[%c0_239, %c0_240] : memref<16x8xf32, #tpu.memory_space<vmem>>, vector<2x8xf32>
    tpu.vector_store %arg26[%c0_239, %c0_240], %717 {strides = array<i32>} : memref<16x8xf32, #tpu.memory_space<vmem>>, vector<2x8xf32>,
    %c0_241 = arith.constant 0 : index
    %c0_242 = arith.constant 0 : index
    %719 = vector.load %arg25[%c0_241, %c0_242] : memref<16x8xf32, #tpu.memory_space<vmem>>, vector<16x8xf32>
    %c0_243 = arith.constant 0 : index
    %c0_244 = arith.constant 0 : index
    %c0_245 = arith.constant 0 : index
    %720 = vector.load %arg22[%c0_243, %c0_244, %c0_245] : memref<2x8x8xbf16, #tpu.memory_space<vmem>>, vector<1x8x8xbf16>
    %721 = vector.shape_cast %720 : vector<1x8x8xbf16> to vector<8x8xbf16>
    %722 = arith.truncf %719 : vector<16x8xf32> to vector<16x8xbf16>
    %cst_246 = arith.constant dense<0.000000e+00> : vector<16x8xf32>
    %723 = tpu.matmul %722, %721, %cst_246 {dimension_numbers = #tpu.dot_dimension_numbers<[1], [0], [0], [1], [0, 0, 1, 1], [], []>} : vector<16x8xbf16>, vector<8x8xbf16>, vector<16x8xf32> -> vector<16x8xf32>
    %c0_247 = arith.constant 0 : index
    %c0_248 = arith.constant 0 : index
    %724 = vector.load %arg26[%c0_247, %c0_248] : memref<16x8xf32, #tpu.memory_space<vmem>>, vector<16x8xf32>
    %c1_249 = arith.constant 1 : index
    %c0_250 = arith.constant 0 : index
    %c0_251 = arith.constant 0 : index
    %725 = vector.load %arg22[%c1_249, %c0_250, %c0_251] : memref<2x8x8xbf16, #tpu.memory_space<vmem>>, vector<1x8x8xbf16>
    %726 = vector.shape_cast %725 : vector<1x8x8xbf16> to vector<8x8xbf16>
    %727 = arith.truncf %724 : vector<16x8xf32> to vector<16x8xbf16>
    %cst_252 = arith.constant dense<0.000000e+00> : vector<16x8xf32>
    %728 = tpu.matmul %727, %726, %cst_252 {dimension_numbers = #tpu.dot_dimension_numbers<[1], [0], [0], [1], [0, 0, 1, 1], [], []>} : vector<16x8xbf16>, vector<8x8xbf16>, vector<16x8xf32> -> vector<16x8xf32>
    %729 = arith.addf %723, %728 : vector<16x8xf32>
    %c0_253 = arith.constant 0 : index
    %c0_254 = arith.constant 0 : index
    %730 = vector.load %arg23[%c0_253, %c0_254] : memref<1x8xf32, #tpu.memory_space<vmem>>, vector<1x8xf32>
    %731 = vector.broadcast %730 : vector<1x8xf32> to vector<16x8xf32>
    %732 = arith.addf %729, %731 : vector<16x8xf32>
    %c0_255 = arith.constant 0 : index
    %c0_256 = arith.constant 0 : index
    %733 = vector.load %arg24[%c0_255, %c0_256] : memref<16x8xf32, #tpu.memory_space<vmem>>, vector<16x8xf32>
    tpu.vector_store %arg24[%c0_255, %c0_256], %732 {strides = array<i32>} : memref<16x8xf32, #tpu.memory_space<vmem>>, vector<16x8xf32>,
    return
  }
}

</mosaic_0001>

<bundles_post_ra>
// kernel: bert_ner_bi_rnn_crf_forward.1
= control target key start
LH: loop header
LB: loop body
LE: loop exit
PB: predicated region body
PF: predicated region fallthrough
CT: control target
= control target key end

     0   :  { %vm84_vm0 = vcmask 261120   ;;  %v3896_v14 = vmov 0.0   ;;  %vm3897_vm1 = vmmov 0   ;;  %s4785_s29 = smov 120   ;;  %vm204_vm2 = vcmask 64512   ;;  %s4782_s26 = smov 72   ;;  %s4743_s0 = inlined_call_operand.vmem [shape: f32[16,32], index: 0, kind: input, shape index: {}]   ;;  %s4744_s4 = inlined_call_operand.vmem [shape: bf16[2,32,96], index: 4, kind: input, shape index: {}]   ;;  %s4745_s2 = inlined_call_operand.vmem [shape: f32[1,32], index: 2, kind: input, shape index: {}]   ;;  %s4746_s3 = inlined_call_operand.vmem [shape: f32[1,32], index: 3, kind: input, shape index: {}]   ;;  %s4747_s5 = inlined_call_operand.vmem [shape: f32[2,1,96], index: 5, kind: input, shape index: {}]   ;;  %s4748_s1 = inlined_call_operand.vmem [shape: f32[16,16], index: 1, kind: input, shape index: {}]   ;;  %s4749_s6 = inlined_call_operand.vmem [shape: bf16[2,32,32], index: 6, kind: input, shape index: {}]   ;;  %s4750_s7 = inlined_call_operand.vmem [shape: f32[2,1,32], index: 7, kind: input, shape index: {}]   ;;  %s4751_s10 = inlined_call_operand.vmem [shape: bf16[2,32,64], index: 10, kind: input, shape index: {}]   ;;  %s4752_s8 = inlined_call_operand.vmem [shape: f32[2,1,32], index: 8, kind: input, shape index: {}]   ;;  %s4753_s9 = inlined_call_operand.vmem [shape: f32[2,1,32], index: 9, kind: input, shape index: {}]   ;;  %s4754_s12 = inlined_call_operand.vmem [shape: bf16[2,64,32], index: 12, kind: input, shape index: {}]   ;;  %s4755_s11 = inlined_call_operand.vmem [shape: f32[2,1,64], index: 11, kind: input, shape index: {}]   ;;  %s4756_s13 = inlined_call_operand.vmem [shape: f32[2,1,32], index: 13, kind: input, shape index: {}]   ;;  %s4757_s14 = inlined_call_operand.vmem [shape: f32[2,1,32], index: 14, kind: input, shape index: {}]   ;;  %s4758_s15 = inlined_call_operand.vmem [shape: f32[2,1,32], index: 15, kind: input, shape index: {}]   ;;  %s4759_s16 = inlined_call_operand.vmem [shape: bf16[32,8], index: 16, kind: input, shape index: {}]   ;;  %s4760_s18 = inlined_call_operand.vmem [shape: bf16[2,8,48], index: 18, kind: input, shape index: {}]   ;;  %s4761_s19 = inlined_call_operand.vmem [shape: bf16[16,48], index: 19, kind: input, shape index: {}]   ;;  %s4762_s17 = inlined_call_operand.vmem [shape: f32[1,8], index: 17, kind: input, shape index: {}]   ;;  %s4763_s20 = inlined_call_operand.vmem [shape: f32[1,48], index: 20, kind: input, shape index: {}]   ;;  %s4764_s21 = inlined_call_operand.vmem [shape: f32[1,48], index: 21, kind: input, shape index: {}]   ;;  %s4765_s22 = inlined_call_operand.vmem [shape: bf16[2,8,8], index: 22, kind: input, shape index: {}]   ;;  %s4766_s23 = inlined_call_operand.vmem [shape: f32[1,8], index: 23, kind: input, shape index: {}]   ;;  %s4767_s24 = inlined_call_operand.vmem [shape: f32[16,8], index: 24, kind: output, shape index: {}]  }
   0x1   :  { %4788 = sst [smem:[#allocation4_spill]] %s4743_s0  ;;  %3440 = vmatprep.subr.bf16.mxu0 %v3896_v14  ;;  %3444 = vmatprep.mubr.msk.bf16.mxu0 %vm3897_vm1, %v3896_v14  ;;  %vm256_vm3 = vcmask 130048   ;;  %vm457_vm4 = vcmask 1043456   ;;  %s4775_s30 = smov 48   ;;  %vm1078_vm5 = vcmask 523264   ;;  %vm2480_vm6 = vcmask 58368  }
   0x2   :  { %4789 = sst [smem:[#allocation5_spill]] %s4744_s4  ;;  %3448 = vmatprep.subr.bf16.mxu1 %v3896_v14  ;;  %3450 = vmatprep.mubr.msk.bf16.mxu1 %vm3897_vm1, %v3896_v14  ;;  %s4781_s4 = smov 80   ;;  %vm2570_vm7 = vcmask 60418   ;;  %vm2658_vm8 = vcmask 62468   ;;  %vm2746_vm9 = vcmask 64518  }
   0x3   :  { %4790 = sst [smem:[#allocation6_spill]] %s4745_s2  ;;  %s4786_s2 = smov 96  }
   0x4   :  { %4791 = sst [smem:[#allocation7_spill]] %s4746_s3  ;;  %s4776_s25 = smov 40  }
   0x5   :  { %4792 = sst [smem:[#allocation8_spill]] %s4747_s5  ;;  %s4783_s5 = smov 64  }
   0x6   :  { %4793 = sst [smem:[#allocation9_spill]] %s4748_s1 }
   0x7   :  { %4794 = sst [smem:[#allocation10_spill]] %s4749_s6  ;;  %s3898_s6 = smov 88  }
   0x8   :  { %4795 = sst [smem:[#allocation11_spill]] %s4750_s7  ;;  %s4777_s7 = smov 104  }
   0x9   :  { %4796 = sst [smem:[#allocation12_spill]] %s4751_s10 }
   0xa   :  { %s4797_s27 = sld [smem:[#allocation4_spill]] }
   0xb   :  { %s4798_s0 = sld [smem:[#allocation5_spill]] }
   0xc   :  { %s4799_s10 = sld [smem:[#allocation6_spill]] }
   0xd   :  { %s4800_s1 = sld [smem:[#allocation7_spill]] }
   0xe   :  { %s4801_s28 = sld [smem:[#allocation8_spill]] }
   0xf   :  { %s4802_s3 = sld [smem:[#allocation9_spill]] }
  0x10   :  { %v80_v0 = vld [vmem:[%s4797_s27] sm:$0xff]  ;;  %v81_v1 = vld [vmem:[%s4797_s27 + $0x8] sm:$0xff]  ;;  %s4784_s27 = smov 56  }
  0x11   :  { %v85_v2 = vsel %vm84_vm0, %v80_v0, 0.0  ;;  %v88_v3 = vsel %vm84_vm0, %v81_v1, 0.0  ;;  %v3735_v15 = vld [vmem:[%s4798_s0 + $0x8] sm:$0xff]   ;;  %v3736_v16 = vld [vmem:[%s4798_s0] sm:$0xff]  }
  0x12   :  { %86 = vadd.xlane.f32.xlu0 %v85_v2  ;;  %3441 = vmatpush3.bf16.msra.mxu0 %v3735_v15  ;;  %v3222_v25 = vld [vmem:[%s4799_s10] ss:$0 sm:$0xff]  ;;  %s4803_s10 = sld [smem:[#allocation10_spill]] }
  0x13   :  { %3442 = vmatprep.subr.bf16.mxu0 %v3896_v14  ;;  %v3223_v29 = vld [vmem:[%s4800_s1] ss:$0 sm:$0xff]  ;;  %s4779_s1 = smov 112  }
  0x14   :  { %v3224_v35 = vld [vmem:[%s4801_s28] ss:$0 sm:$0xff] }
  0x15   :  { %v4100_v48 = vld [vmem:[%s4802_s3] sm:$0xff]  ;;  %v4106_v53 = vld [vmem:[%s4802_s3 + $0x8] sm:$0xff] }
  0x16   :  { %89 = vadd.xlane.f32.xlu0 %v88_v3  ;;  %3443 = vmatpush3.bf16.msra.mxu0 %v3736_v16 }
  0x17   :  { %3454 = vmatprep.subr.bf16.mxu0 %v3896_v14 }
  0x9b   :  { %v87_v4 = vpop.xlane.xlu0 %86 }
  0x9c   :  { %v92_v5 = vmul.f32 0.03125, %v87_v4 }
  0x9e   :  { %v94_v6 = vsub.f32 %v80_v0, %v92_v5 }
  0x9f   :  { %v90_v7 = vpop.xlane.xlu0 %89 }
  0xa0   :  { %v93_v8 = vmul.f32 0.03125, %v90_v7  ;;  %v96_v9 = vmul.f32 %v94_v6, %v94_v6 }
  0xa2   :  { %v95_v10 = vsub.f32 %v81_v1, %v93_v8  ;;  %v98_v11 = vsel %vm84_vm0, %v96_v9, 0.0 }
  0xa3   :  { %99 = vadd.xlane.f32.xlu1 %v98_v11 }
  0xa4   :  { %v97_v12 = vmul.f32 %v95_v10, %v95_v10 }
  0xa6   :  { %v101_v13 = vsel %vm84_vm0, %v97_v12, 0.0 }
  0xa7   :  { %102 = vadd.xlane.f32.xlu1 %v101_v13 }
 0x12c   :  { %v100_v17 = vpop.xlane.xlu1 %99 }
 0x12d   :  { %v104_v18 = vmul.f32 0.03125, %v100_v17 }
 0x12f   :  { %v106_v19 = vadd.f32 1e-12, %v104_v18 }
 0x130   :  { %v103_v20 = vpop.xlane.xlu1 %102 }
 0x131   :  { %3754 = vrsqrt.f32 %v106_v19  ;;  %v105_v21 = vmul.f32 0.03125, %v103_v20 }
 0x133   :  { %v107_v22 = vadd.f32 1e-12, %v105_v21 }
 0x135   :  { %3756 = vrsqrt.f32 %v107_v22 }
 0x13e   :  { %v3755_v23 = vpop.eup %3754 }
 0x13f   :  { %v110_v24 = vmul.f32 %v3755_v23, %v94_v6 }
 0x141   :  { %v118_v28 = vmul.f32 %v3222_v25, %v110_v24 }
 0x142   :  { %v3757_v26 = vpop.eup %3756 }
 0x143   :  { %v111_v27 = vmul.f32 %v3757_v26, %v95_v10  ;;  %v4066_v31 = vadd.f32 %v3223_v29, %v118_v28 }
 0x145   :  { %v119_v30 = vmul.f32 %v3222_v25, %v111_v27 }
 0x147   :  { %v4068_v32 = vadd.f32 %v3223_v29, %v119_v30 }
 0x149   :  { %v132_v33 = vpack.c.bf16 %v4068_v32, %v4066_v31 }
 0x14b   :  { %3445 = vmatmul.mubr.msk.bf16.vlgmr.msra.gmra.mxu0 %vm84_vm0, %v132_v33 }
 0x14c   :  { %3456 = vmatprep.mubr.msk.bf16.mxu0 %vm3897_vm1, %v3896_v14 }
 0x20b   :  { %v189_v34 = vpop.f32.mrf.mxu0 }
 0x20c   :  { %v190_v38 = vadd.f32 %v3224_v35, %v189_v34 }
 0x20d   :  { %v3446_v36 = vpop.f32.mrf.mxu0 }
 0x20f   :  { %v192_v37 = vpop.f32.mrf.mxu0 }
 0x210   :  { %v193_v39 = vadd.f32 %v3224_v35, %v192_v37 }
 0x211   :  { %v3447_v40 = vpop.f32.mrf.mxu0 }
 0x212   :  { %v4078_v41 = vpack.c.bf16 %v193_v39, %v190_v38 }
 0x214   :  { %330 = vrot.lane.b32.xlu1 %v4078_v41, %s3898_s6  ;;  %202 = vrot.lane.b32.xlu0 %v4078_v41, %s4786_s2 }
 0x218   :  { %328 = vrot.lane.b32.xlu1 %v4078_v41, %s4785_s29 }
 0x286   :  { %v203_v42 = vpop.permute.xlu0 %202  ;;  %v331_v44 = vpop.permute.xlu1 %330 }
 0x287   :  { %v209_v43 = vsel %vm204_vm2, %v203_v42, 0  ;;  %v336_v45 = vsel %vm204_vm2, %v331_v44, 0 }
 0x288   :  { %3449 = vmatpush3.bf16.xpose.msra.mxu1 %v209_v43 }
 0x289   :  { %3460 = vmatprep.subr.bf16.mxu1 %v3896_v14 }
 0x28a   :  { %v329_v46 = vpop.permute.xlu1 %328 }
 0x28f   :  { %3451 = vmatmul.mubr.msk.bf16.vlgmr.msra.gmra.mxu1 %vm204_vm2, %v4078_v41 }
 0x290   :  { %3461 = vmatpush3.bf16.xpose.msra.mxu1 %v336_v45  ;;  %3462 = vmatprep.mubr.msk.bf16.mxu1 %vm3897_vm1, %v3896_v14 }
 0x291   :  { %3472 = vmatprep.subr.bf16.mxu1 %v3896_v14 }
 0x297   :  { %3463 = vmatmul.mubr.msk.bf16.vlgmr.msra.gmra.mxu1 %vm204_vm2, %v329_v46 }
 0x298   :  { %3474 = vmatprep.mubr.msk.bf16.mxu1 %vm3897_vm1, %v3896_v14 }
 0x34f   :  { %v245_v47 = vpop.f32.mrf.mxu1 }
 0x350   :  { %v252_v49 = vmul.f32 0.35355338, %v245_v47 }
 0x351   :  { %v3452_v50 = vpop.f32.mrf.mxu1 }
 0x352   :  { %v254_v51 = vadd.f32 %v252_v49, %v4100_v48 }
 0x353   :  { %v248_v52 = vpop.f32.mrf.mxu1 }
 0x354   :  { %v253_v54 = vmul.f32 0.35355338, %v248_v52  ;;  %v257_v55 = vsel %vm256_vm3, %v254_v51, -inf  ;;  %v198_v52 = vld [vmem:[%s4803_s10 + $0x4] sm:$0xf] }
 0x355   :  { %258 = vmax.xlane.f32.xlu1 %v257_v55  ;;  %v3453_v56 = vpop.f32.mrf.mxu1 }
 0x356   :  { %v255_v57 = vadd.f32 %v253_v54, %v4106_v53  ;;  %v459_v54 = vsel %vm457_vm4, %v198_v52, 0 }
 0x357   :  { %v372_v58 = vpop.f32.mrf.mxu1  ;;  %3473 = vmatpush3.bf16.msra.mxu1 %v459_v54 }
 0x358   :  { %v379_v59 = vmul.f32 0.35355338, %v372_v58  ;;  %v260_v60 = vsel %vm256_vm3, %v255_v57, -inf  ;;  %3484 = vmatprep.subr.bf16.mxu1 %v3896_v14 }
 0x359   :  { %261 = vmax.xlane.f32.xlu0 %v260_v60  ;;  %v3464_v61 = vpop.f32.mrf.mxu1 }
 0x35a   :  { %v381_v62 = vadd.f32 %v379_v59, %v4100_v48 }
 0x35b   :  { %v375_v63 = vpop.f32.mrf.mxu1 }
 0x35c   :  { %v380_v0 = vmul.f32 0.35355338, %v375_v63  ;;  %v383_v1 = vsel %vm256_vm3, %v381_v62, -inf }
 0x35d   :  { %384 = vmax.xlane.f32.xlu0 %v383_v1  ;;  %v3465_v2 = vpop.f32.mrf.mxu1 }
 0x35e   :  { %v382_v3 = vadd.f32 %v380_v0, %v4106_v53 }
 0x360   :  { %v386_v4 = vsel %vm256_vm3, %v382_v3, -inf }
 0x361   :  { %387 = vmax.xlane.f32.xlu0 %v386_v4 }
 0x366   :  { %280 = vrot.lane.b32.xlu1 %v4078_v41, %s4783_s5  ;;  %s4811_s5 = smov 80  }
 0x3de   :  { %v259_v5 = vpop.xlane.xlu1 %258 }
 0x3df   :  { %v263_v6 = vsub.f32 %v254_v51, %v259_v5 }
 0x3e1   :  { %v265_v7 = vmul.f32 1.442695, %v263_v6 }
 0x3e2   :  { %v281_v8 = vpop.permute.xlu1 %280  ;;  %v262_v9 = vpop.xlane.xlu0 %261 }
 0x3e3   :  { %3758 = vpow2.f32 %v265_v7  ;;  %v264_v10 = vsub.f32 %v255_v57, %v262_v9  ;;  %3455 = vmatpush3.bf16.msra.mxu0 %v281_v8 }
 0x3e4   :  { %3466 = vmatprep.subr.bf16.mxu0 %v3896_v14 }
 0x3e5   :  { %v267_v11 = vmul.f32 1.442695, %v264_v10 }
 0x3e6   :  { %v385_v12 = vpop.xlane.xlu0 %384 }
 0x3e7   :  { %3760 = vpow2.f32 %v267_v11  ;;  %v389_v13 = vsub.f32 %v381_v62, %v385_v12 }
 0x3e9   :  { %v391_v15 = vmul.f32 1.442695, %v389_v13 }
 0x3ea   :  { %v388_v16 = vpop.xlane.xlu0 %387 }
 0x3eb   :  { %3762 = vpow2.f32 %v391_v15  ;;  %v390_v17 = vsub.f32 %v382_v3, %v388_v16 }
 0x3ed   :  { %v393_v18 = vmul.f32 1.442695, %v390_v17 }
 0x3ef   :  { %3764 = vpow2.f32 %v393_v18 }
 0x3f0   :  { %v3759_v19 = vpop.eup %3758 }
 0x3f1   :  { %v269_v20 = vsel %vm256_vm3, %v3759_v19, 0.0 }
 0x3f2   :  { %270 = vadd.xlane.f32.xlu1 %v269_v20 }
 0x3f4   :  { %v3761_v21 = vpop.eup %3760 }
 0x3f5   :  { %v272_v22 = vsel %vm256_vm3, %v3761_v21, 0.0 }
 0x3f6   :  { %273 = vadd.xlane.f32.xlu0 %v272_v22 }
 0x3f8   :  { %v3763_v23 = vpop.eup %3762 }
 0x3f9   :  { %v395_v24 = vsel %vm256_vm3, %v3763_v23, 0.0 }
 0x3fa   :  { %396 = vadd.xlane.f32.xlu1 %v395_v24 }
 0x3fc   :  { %v3765_v25 = vpop.eup %3764 }
 0x3fd   :  { %v398_v26 = vsel %vm256_vm3, %v3765_v25, 0.0 }
 0x3fe   :  { %399 = vadd.xlane.f32.xlu0 %v398_v26 }
 0x40b   :  { %504 = vrot.lane.b32.xlu1 %v4078_v41, %s4781_s4  ;;  %s4807_s4 = smov 120  }
 0x40f   :  { %502 = vrot.lane.b32.xlu1 %v4078_v41, %s4779_s1  ;;  %s4806_s1 = smov 96  }
 0x413   :  { %630 = vrot.lane.b32.xlu1 %v4078_v41, %s4782_s26  ;;  %s4810_s26 = smov 72  }
 0x414   :  { %406 = vrot.lane.b32.xlu0 %v4078_v41, %s4784_s27  ;;  %s4812_s27 = smov 112  }
 0x418   :  { %628 = vrot.lane.b32.xlu0 %v4078_v41, %s4777_s7  ;;  %s4805_s7 = sld [smem:[#allocation12_spill]] }
 0x47b   :  { %v271_v27 = vpop.xlane.xlu1 %270 }
 0x47c   :  { %3766 = vrcp.f32 %v271_v27 }
 0x47f   :  { %v274_v28 = vpop.xlane.xlu0 %273 }
 0x480   :  { %3768 = vrcp.f32 %v274_v28 }
 0x483   :  { %v397_v29 = vpop.xlane.xlu1 %396 }
 0x484   :  { %3770 = vrcp.f32 %v397_v29 }
 0x487   :  { %v400_v30 = vpop.xlane.xlu0 %399  ;;  %v505_v40 = vpop.permute.xlu1 %504 }
 0x488   :  { %3772 = vrcp.f32 %v400_v30  ;;  %v510_v47 = vsel %vm204_vm2, %v505_v40, 0 }
 0x489   :  { %v3767_v33 = vpop.eup %3766 }
 0x48a   :  { %v277_v35 = vmul.f32 %v3767_v33, %v3759_v19 }
 0x48b   :  { %v407_v38 = vpop.permute.xlu0 %406  ;;  %v503_v46 = vpop.permute.xlu1 %502 }
 0x48d   :  { %v3769_v34 = vpop.eup %3768 }
 0x48e   :  { %v278_v36 = vmul.f32 %v3769_v34, %v3761_v21 }
 0x48f   :  { %v631_v49 = vpop.permute.xlu1 %630  ;;  %v629_v51 = vpop.permute.xlu0 %628 }
 0x490   :  { %v279_v37 = vpack.c.bf16 %v278_v36, %v277_v35  ;;  %v636_v50 = vsel %vm204_vm2, %v631_v49, 0 }
 0x491   :  { %v3771_v39 = vpop.eup %3770 }
 0x492   :  { %3457 = vmatmul.mubr.msk.bf16.vlgmr.msra.gmra.mxu0 %vm256_vm3, %v279_v37  ;;  %v403_v43 = vmul.f32 %v3771_v39, %v3763_v23 }
 0x493   :  { %3467 = vmatpush3.bf16.msra.mxu0 %v407_v38  ;;  %3468 = vmatprep.mubr.msk.bf16.mxu0 %vm3897_vm1, %v3896_v14 }
 0x494   :  { %3478 = vmatprep.subr.bf16.mxu0 %v3896_v14 }
 0x495   :  { %v3773_v42 = vpop.eup %3772 }
 0x496   :  { %v404_v44 = vmul.f32 %v3773_v42, %v3765_v25 }
 0x498   :  { %v405_v45 = vpack.c.bf16 %v404_v44, %v403_v43 }
 0x49a   :  { %3469 = vmatmul.mubr.msk.bf16.vlgmr.msra.gmra.mxu0 %vm256_vm3, %v405_v45 }
 0x49b   :  { %3479 = vmatpush3.bf16.xpose.msra.mxu0 %v510_v47  ;;  %3480 = vmatprep.mubr.msk.bf16.mxu0 %vm3897_vm1, %v3896_v14 }
 0x49c   :  { %3490 = vmatprep.subr.bf16.mxu0 %v3896_v14 }
 0x4a2   :  { %3481 = vmatmul.mubr.msk.bf16.vlgmr.msra.gmra.mxu0 %vm204_vm2, %v503_v46 }
 0x4a3   :  { %3491 = vmatpush3.bf16.xpose.msra.mxu0 %v636_v50  ;;  %3492 = vmatprep.mubr.msk.bf16.mxu0 %vm3897_vm1, %v3896_v14 }
 0x4a4   :  { %3502 = vmatprep.subr.bf16.mxu0 %v3896_v14 }
 0x4aa   :  { %3493 = vmatmul.mubr.msk.bf16.vlgmr.msra.gmra.mxu0 %vm204_vm2, %v629_v51 }
 0x4ab   :  { %3504 = vmatprep.mubr.msk.bf16.mxu0 %vm3897_vm1, %v3896_v14 }
 0x552   :  { %v4154_v55 = vpop.f32.mrf.mxu0 }
 0x554   :  { %v3458_v56 = vpop.f32.mrf.mxu0 }
 0x556   :  { %v4156_v57 = vpop.f32.mrf.mxu0 }
 0x557   :  { %v327_v58 = vpack.c.bf16 %v4156_v57, %v4154_v55  ;;  %v199_v57 = vld [vmem:[%s4803_s10 + $0x8] sm:$0xf] }
 0x558   :  { %v3459_v59 = vpop.f32.mrf.mxu0 }
 0x55a   :  { %v446_v60 = vpop.f32.mrf.mxu0 }
 0x55c   :  { %v3470_v61 = vpop.f32.mrf.mxu0 }
 0x55e   :  { %v449_v62 = vpop.f32.mrf.mxu0 }
 0x55f   :  { %v453_v63 = vpack.c.bf16 %v449_v62, %v446_v60 }
 0x560   :  { %v3471_v0 = vpop.f32.mrf.mxu0 }
 0x561   :  { %3475 = vmatmul.mubr.msk.bf16.vlgmr.msra.gmra.mxu1 %vm204_vm2, %v453_v63 }
 0x562   :  { %v546_v1 = vpop.f32.mrf.mxu0  ;;  %3486 = vmatprep.mubr.msk.bf16.mxu1 %vm3897_vm1, %v3896_v14 }
 0x563   :  { %v553_v2 = vmul.f32 0.35355338, %v546_v1 }
 0x564   :  { %v3482_v3 = vpop.f32.mrf.mxu0 }
 0x565   :  { %v555_v4 = vadd.f32 %v553_v2, %v4100_v48  ;;  %v197_v2 = vld [vmem:[%s4803_s10] sm:$0xf] }
 0x566   :  { %v549_v5 = vpop.f32.mrf.mxu0 }
 0x567   :  { %v554_v6 = vmul.f32 0.35355338, %v549_v5  ;;  %v557_v7 = vsel %vm256_vm3, %v555_v4, -inf }
 0x568   :  { %558 = vmax.xlane.f32.xlu1 %v557_v7  ;;  %v3483_v8 = vpop.f32.mrf.mxu0  ;;  %v200_v7 = vld [vmem:[%s4803_s10 + $0xc] sm:$0xf] }
 0x569   :  { %v556_v9 = vadd.f32 %v554_v6, %v4106_v53  ;;  %v805_v6 = vsel %vm457_vm4, %v197_v2, 0  ;;  %v758_v8 = vsel %vm457_vm4, %v200_v7, 0 }
 0x56a   :  { %v672_v10 = vpop.f32.mrf.mxu0  ;;  %3503 = vmatpush3.bf16.msra.mxu0 %v758_v8 }
 0x56b   :  { %v679_v11 = vmul.f32 0.35355338, %v672_v10  ;;  %v560_v12 = vsel %vm256_vm3, %v556_v9, -inf  ;;  %3514 = vmatprep.subr.bf16.mxu0 %v3896_v14 }
 0x56c   :  { %561 = vmax.xlane.f32.xlu0 %v560_v12  ;;  %v3494_v13 = vpop.f32.mrf.mxu0 }
 0x56d   :  { %v681_v15 = vadd.f32 %v679_v11, %v4100_v48 }
 0x56e   :  { %v675_v16 = vpop.f32.mrf.mxu0 }
 0x56f   :  { %v680_v17 = vmul.f32 0.35355338, %v675_v16  ;;  %v683_v18 = vsel %vm256_vm3, %v681_v15, -inf  ;;  %v852_v16 = vsel %vm457_vm4, %v199_v57, 0  ;;  %v3740_v57 = vld [vmem:[%s4754_s12 + $0x10] sm:$0xff]  }
 0x570   :  { %684 = vmax.xlane.f32.xlu0 %v683_v18  ;;  %v3495_v19 = vpop.f32.mrf.mxu0 }
 0x571   :  { %v682_v20 = vadd.f32 %v680_v17, %v4106_v53 }
 0x573   :  { %v686_v21 = vsel %vm256_vm3, %v682_v20, -inf }
 0x574   :  { %687 = vmax.xlane.f32.xlu0 %v686_v21 }
 0x5f1   :  { %v559_v22 = vpop.xlane.xlu1 %558 }
 0x5f2   :  { %v563_v23 = vsub.f32 %v555_v4, %v559_v22 }
 0x5f4   :  { %v565_v24 = vmul.f32 1.442695, %v563_v23 }
 0x5f5   :  { %v562_v25 = vpop.xlane.xlu0 %561 }
 0x5f6   :  { %3774 = vpow2.f32 %v565_v24  ;;  %v564_v26 = vsub.f32 %v556_v9, %v562_v25 }
 0x5f8   :  { %v567_v27 = vmul.f32 1.442695, %v564_v26 }
 0x5f9   :  { %v685_v28 = vpop.xlane.xlu0 %684 }
 0x5fa   :  { %3776 = vpow2.f32 %v567_v27  ;;  %v689_v29 = vsub.f32 %v681_v15, %v685_v28 }
 0x5fc   :  { %v691_v30 = vmul.f32 1.442695, %v689_v29 }
 0x5fd   :  { %v688_v33 = vpop.xlane.xlu0 %687 }
 0x5fe   :  { %3778 = vpow2.f32 %v691_v30  ;;  %v690_v34 = vsub.f32 %v682_v20, %v688_v33 }
 0x600   :  { %v693_v35 = vmul.f32 1.442695, %v690_v34 }
 0x602   :  { %3780 = vpow2.f32 %v693_v35 }
 0x603   :  { %v3775_v36 = vpop.eup %3774 }
 0x604   :  { %v569_v37 = vsel %vm256_vm3, %v3775_v36, 0.0 }
 0x605   :  { %570 = vadd.xlane.f32.xlu1 %v569_v37 }
 0x607   :  { %v3777_v38 = vpop.eup %3776 }
 0x608   :  { %v572_v39 = vsel %vm256_vm3, %v3777_v38, 0.0 }
 0x609   :  { %573 = vadd.xlane.f32.xlu0 %v572_v39 }
 0x60b   :  { %v3779_v40 = vpop.eup %3778 }
 0x60c   :  { %v695_v42 = vsel %vm256_vm3, %v3779_v40, 0.0 }
 0x60d   :  { %696 = vadd.xlane.f32.xlu1 %v695_v42 }
 0x60f   :  { %v3781_v43 = vpop.eup %3780 }
 0x610   :  { %v698_v44 = vsel %vm256_vm3, %v3781_v43, 0.0 }
 0x611   :  { %699 = vadd.xlane.f32.xlu0 %v698_v44 }
 0x61e   :  { %580 = vrot.lane.b32.xlu1 %v4078_v41, %s4775_s30  ;;  %s4804_s30 = sld [smem:[#allocation11_spill]] }
 0x621   :  { %v4177_v45 = vpop.f32.mrf.mxu1 }
 0x623   :  { %v3476_v46 = vpop.f32.mrf.mxu1 }
 0x624   :  { %v3240_v33 = vld [vmem:[%s4804_s30] ss:$0 sm:$0xff] }
 0x625   :  { %v4179_v47 = vpop.f32.mrf.mxu1 }
 0x627   :  { %v3477_v49 = vpop.f32.mrf.mxu1  ;;  %706 = vrot.lane.b32.xlu0 %v4078_v41, %s4776_s25 }
 0x68e   :  { %v571_v50 = vpop.xlane.xlu1 %570 }
 0x68f   :  { %3782 = vrcp.f32 %v571_v50 }
 0x692   :  { %v574_v51 = vpop.xlane.xlu0 %573 }
 0x693   :  { %3784 = vrcp.f32 %v574_v51 }
 0x696   :  { %v697_v52 = vpop.xlane.xlu1 %696 }
 0x697   :  { %3786 = vrcp.f32 %v697_v52 }
 0x69a   :  { %v581_v54 = vpop.permute.xlu1 %580  ;;  %v700_v56 = vpop.xlane.xlu0 %699 }
 0x69b   :  { %3788 = vrcp.f32 %v700_v56  ;;  %3485 = vmatpush3.bf16.msra.mxu1 %v581_v54 }
 0x69c   :  { %3496 = vmatprep.subr.bf16.mxu1 %v3896_v14  ;;  %v3783_v59 = vpop.eup %3782 }
 0x69d   :  { %v577_v61 = vmul.f32 %v3783_v59, %v3775_v36 }
 0x69e   :  { %v707_v0 = vpop.permute.xlu0 %706 }
 0x6a0   :  { %v3785_v60 = vpop.eup %3784 }
 0x6a1   :  { %v578_v62 = vmul.f32 %v3785_v60, %v3777_v38 }
 0x6a3   :  { %v579_v63 = vpack.c.bf16 %v578_v62, %v577_v61  ;;  %v3738_v61 = vld [vmem:[%s4805_s7] sm:$0xff]  }
 0x6a4   :  { %v3787_v41 = vpop.eup %3786 }
 0x6a5   :  { %3487 = vmatmul.mubr.msk.bf16.vlgmr.msra.gmra.mxu1 %vm256_vm3, %v579_v63  ;;  %v703_v3 = vmul.f32 %v3787_v41, %v3779_v40 }
 0x6a6   :  { %3497 = vmatpush3.bf16.msra.mxu1 %v707_v0  ;;  %3498 = vmatprep.mubr.msk.bf16.mxu1 %vm3897_vm1, %v3896_v14 }
 0x6a7   :  { %3508 = vmatprep.subr.bf16.mxu1 %v3896_v14 }
 0x6a8   :  { %v3789_v1 = vpop.eup %3788 }
 0x6a9   :  { %v704_v4 = vmul.f32 %v3789_v1, %v3781_v43 }
 0x6ab   :  { %v705_v5 = vpack.c.bf16 %v704_v4, %v703_v3 }
 0x6ad   :  { %3499 = vmatmul.mubr.msk.bf16.vlgmr.msra.gmra.mxu1 %vm256_vm3, %v705_v5  ;;  %v3241_v5 = vld [vmem:[%s4752_s8] ss:$0 sm:$0xff] }
 0x6ae   :  { %3509 = vmatpush3.bf16.msra.mxu1 %v805_v6  ;;  %3510 = vmatprep.mubr.msk.bf16.mxu1 %vm3897_vm1, %v3896_v14 }
 0x6af   :  { %3520 = vmatprep.subr.bf16.mxu1 %v3896_v14 }
 0x6b5   :  { %3511 = vmatmul.mubr.msk.bf16.vlgmr.msra.gmra.mxu1 %vm204_vm2, %v327_v58 }
 0x6b6   :  { %3524 = vmatprep.mubr.msk.bf16.mxu1 %vm3897_vm1, %v3896_v14 }
 0x765   :  { %v620_v9 = vpop.f32.mrf.mxu1 }
 0x767   :  { %v3488_v10 = vpop.f32.mrf.mxu1 }
 0x769   :  { %v623_v11 = vpop.f32.mrf.mxu1 }
 0x76a   :  { %v627_v21 = vpack.c.bf16 %v623_v11, %v620_v9  ;;  %v3242_v9 = vld [vmem:[%s4753_s9] ss:$0 sm:$0xff] }
 0x76b   :  { %v3489_v12 = vpop.f32.mrf.mxu1 }
 0x76d   :  { %v746_v13 = vpop.f32.mrf.mxu1 }
 0x76f   :  { %v3500_v55 = vpop.f32.mrf.mxu1 }
 0x770   :  { %v3739_v55 = vld [vmem:[%s4754_s12 + $0x18] sm:$0xff]  }
 0x771   :  { %v749_v58 = vpop.f32.mrf.mxu1 }
 0x772   :  { %v753_v15 = vpack.c.bf16 %v749_v58, %v746_v13  ;;  %v3741_v58 = vld [vmem:[%s4754_s12 + $0x8] sm:$0xff]  }
 0x773   :  { %v3501_v17 = vpop.f32.mrf.mxu1 }
 0x774   :  { %3505 = vmatmul.mubr.msk.bf16.vlgmr.msra.gmra.mxu0 %vm204_vm2, %v753_v15  ;;  %v3742_v15 = vld [vmem:[%s4754_s12] sm:$0xff]  }
 0x775   :  { %v841_v18 = vpop.f32.mrf.mxu1  ;;  %3515 = vmatpush3.bf16.msra.mxu0 %v852_v16  ;;  %3516 = vmatprep.mubr.msk.bf16.mxu0 %vm3897_vm1, %v3896_v14  ;;  %v3243_v16 = vld [vmem:[%s4755_s11] ss:$0 sm:$0xff] }
 0x776   :  { %3528 = vmatprep.subr.bf16.mxu0 %v3896_v14  ;;  %v842_v28 = vadd.f32 %v841_v18, %v4177_v45 }
 0x777   :  { %v3512_v19 = vpop.f32.mrf.mxu1 }
 0x779   :  { %v844_v20 = vpop.f32.mrf.mxu1 }
 0x77a   :  { %v845_v36 = vadd.f32 %v844_v20, %v4179_v47 }
 0x77b   :  { %v3513_v22 = vpop.f32.mrf.mxu1 }
 0x77c   :  { %3517 = vmatmul.mubr.msk.bf16.vlgmr.msra.gmra.mxu0 %vm204_vm2, %v627_v21 }
 0x77d   :  { %3536 = vmatprep.mubr.msk.bf16.mxu0 %vm3897_vm1, %v3896_v14  ;;  %3529 = vmatpush3.bf16.msra.mxu0 %v3739_v55  ;;  %v3253_v55 = vld [vmem:[%s4757_s14] ss:$0 sm:$0xff] }
 0x77e   :  { %3530 = vmatprep.subr.bf16.mxu0 %v3896_v14 }
 0x781   :  { %3531 = vmatpush3.bf16.msra.mxu0 %v3740_v57 }
 0x782   :  { %3532 = vmatprep.subr.bf16.mxu0 %v3896_v14 }
 0x785   :  { %3533 = vmatpush3.bf16.msra.mxu0 %v3741_v58 }
 0x786   :  { %3534 = vmatprep.subr.bf16.mxu0 %v3896_v14 }
 0x789   :  { %3535 = vmatpush3.bf16.msra.mxu0 %v3742_v15 }
 0x78a   :  { %3554 = vmatprep.subr.bf16.mxu0 %v3896_v14 }
 0x834   :  { %v794_v23 = vpop.f32.mrf.mxu0 }
 0x836   :  { %v3506_v24 = vpop.f32.mrf.mxu0 }
 0x838   :  { %v797_v25 = vpop.f32.mrf.mxu0 }
 0x83a   :  { %v3507_v26 = vpop.f32.mrf.mxu0 }
 0x83c   :  { %v888_v27 = vpop.f32.mrf.mxu0 }
 0x83d   :  { %v889_v29 = vadd.f32 %v888_v27, %v794_v23 }
 0x83e   :  { %v3518_v30 = vpop.f32.mrf.mxu0 }
 0x83f   :  { %v895_v34 = vadd.f32 %v889_v29, %v842_v28 }
 0x840   :  { %v891_v35 = vpop.f32.mrf.mxu0 }
 0x841   :  { %v892_v37 = vadd.f32 %v891_v35, %v797_v25  ;;  %v904_v38 = vadd.f32 %v3240_v33, %v895_v34 }
 0x842   :  { %v3519_v39 = vpop.f32.mrf.mxu0 }
 0x843   :  { %v896_v40 = vadd.f32 %v892_v37, %v845_v36  ;;  %v906_v42 = vadd.f32 %v904_v38, %v4066_v31 }
 0x845   :  { %v910_v43 = vsel %vm84_vm0, %v906_v42, 0.0  ;;  %v905_v44 = vadd.f32 %v3240_v33, %v896_v40 }
 0x846   :  { %911 = vadd.xlane.f32.xlu1 %v910_v43 }
 0x847   :  { %v907_v45 = vadd.f32 %v905_v44, %v4068_v32  ;;  %v3737_v32 = vld [vmem:[%s4805_s7 + $0x8] sm:$0xff]  }
 0x848   :  { %3521 = vmatpush3.bf16.msra.mxu1 %v3737_v32 }
 0x849   :  { %v913_v46 = vsel %vm84_vm0, %v907_v45, 0.0  ;;  %3522 = vmatprep.subr.bf16.mxu1 %v3896_v14 }
 0x84a   :  { %914 = vadd.xlane.f32.xlu0 %v913_v46 }
 0x84c   :  { %3523 = vmatpush3.bf16.msra.mxu1 %v3738_v61 }
 0x84d   :  { %3540 = vmatprep.subr.bf16.mxu1 %v3896_v14 }
 0x8cf   :  { %v912_v49 = vpop.xlane.xlu1 %911 }
 0x8d0   :  { %v916_v50 = vmul.f32 0.03125, %v912_v49 }
 0x8d2   :  { %v918_v51 = vsub.f32 %v906_v42, %v916_v50 }
 0x8d3   :  { %v915_v52 = vpop.xlane.xlu0 %914 }
 0x8d4   :  { %v917_v47 = vmul.f32 0.03125, %v915_v52  ;;  %v920_v54 = vmul.f32 %v918_v51, %v918_v51 }
 0x8d6   :  { %v919_v56 = vsub.f32 %v907_v45, %v917_v47  ;;  %v922_v59 = vsel %vm84_vm0, %v920_v54, 0.0  ;;  %v3247_v45 = vld [vmem:[%s4756_s13] ss:$0 sm:$0xff] }
 0x8d7   :  { %923 = vadd.xlane.f32.xlu1 %v922_v59 }
 0x8d8   :  { %v921_v31 = vmul.f32 %v919_v56, %v919_v56 }
 0x8da   :  { %v925_v60 = vsel %vm84_vm0, %v921_v31, 0.0 }
 0x8db   :  { %926 = vadd.xlane.f32.xlu0 %v925_v60 }
 0x960   :  { %v924_v62 = vpop.xlane.xlu1 %923 }
 0x961   :  { %v928_v63 = vmul.f32 0.03125, %v924_v62 }
 0x963   :  { %v930_v0 = vadd.f32 1e-12, %v928_v63 }
 0x964   :  { %v927_v41 = vpop.xlane.xlu0 %926 }
 0x965   :  { %3790 = vrsqrt.f32 %v930_v0  ;;  %v929_v1 = vmul.f32 0.03125, %v927_v41 }
 0x967   :  { %v931_v2 = vadd.f32 1e-12, %v929_v1 }
 0x969   :  { %3792 = vrsqrt.f32 %v931_v2 }
 0x972   :  { %v3791_v3 = vpop.eup %3790 }
 0x973   :  { %v934_v4 = vmul.f32 %v3791_v3, %v918_v51 }
 0x975   :  { %v942_v8 = vmul.f32 %v3241_v5, %v934_v4  ;;  %v3743_v4 = vld [vmem:[%s4798_s0 + $0x18] sm:$0xff]  }
 0x976   :  { %v3793_v6 = vpop.eup %3792 }
 0x977   :  { %v935_v7 = vmul.f32 %v3793_v6, %v919_v56  ;;  %v950_v11 = vadd.f32 %v3242_v9, %v942_v8 }
 0x979   :  { %v943_v10 = vmul.f32 %v3241_v5, %v935_v7  ;;  %v3744_v5 = vld [vmem:[%s4798_s0 + $0x10] sm:$0xff]   ;;  %s4813_s0 = smov 104  }
 0x97b   :  { %v951_v12 = vadd.f32 %v3242_v9, %v943_v10 }
 0x97d   :  { %v956_v13 = vpack.c.bf16 %v951_v12, %v950_v11 }
 0x97f   :  { %3525 = vmatmul.mubr.msk.bf16.vlgmr.msra.gmra.mxu1 %vm84_vm0, %v956_v13 }
 0x980   :  { %3544 = vmatprep.mubr.msk.bf16.mxu1 %vm3897_vm1, %v3896_v14  ;;  %3541 = vmatpush3.bf16.msra.mxu1 %v3743_v4 }
 0x981   :  { %3542 = vmatprep.subr.bf16.mxu1 %v3896_v14 }
 0x984   :  { %3543 = vmatpush3.bf16.msra.mxu1 %v3744_v5 }
 0x985   :  { %3548 = vmatprep.subr.bf16.mxu1 %v3896_v14 }
 0xa3f   :  { %v1013_v17 = vpop.f32.mrf.mxu1 }
 0xa40   :  { %v1014_v18 = vadd.f32 %v3243_v16, %v1013_v17 }
 0xa41   :  { %v3526_v19 = vpop.f32.mrf.mxu1 }
 0xa42   :  { %v1022_v20 = vmul.f32 0.044715, %v1014_v18  ;;  %v1020_v38 = vmul.f32 0.5, %v1014_v18 }
 0xa43   :  { %v1016_v21 = vpop.f32.mrf.mxu1 }
 0xa44   :  { %v1024_v22 = vmul.f32 %v1022_v20, %v1014_v18  ;;  %v1017_v23 = vadd.f32 %v3243_v16, %v1016_v21  ;;  %v3254_v16 = vld [vmem:[%s4758_s15] ss:$0 sm:$0xff] }
 0xa45   :  { %v3527_v24 = vpop.f32.mrf.mxu1 }
 0xa46   :  { %v1026_v25 = vmul.f32 %v1024_v22, %v1014_v18  ;;  %v1023_v26 = vmul.f32 0.044715, %v1017_v23  ;;  %v1021_v39 = vmul.f32 0.5, %v1017_v23  ;;  %v3260_v22 = vld [vmem:[%s4801_s28 + $0x1] ss:$0 sm:$0xff]  ;;  %s4808_s28 = smov 56  }
 0xa48   :  { %v1028_v27 = vadd.f32 %v1026_v25, %v1014_v18  ;;  %v1025_v28 = vmul.f32 %v1023_v26, %v1017_v23 }
 0xa4a   :  { %v1030_v29 = vmul.f32 0.7978846, %v1028_v27  ;;  %v1027_v30 = vmul.f32 %v1025_v28, %v1017_v23 }
 0xa4c   :  { %3794 = vtanh.f32 %v1030_v29  ;;  %v1029_v33 = vadd.f32 %v1027_v30, %v1017_v23 }
 0xa4e   :  { %v1031_v34 = vmul.f32 0.7978846, %v1029_v33 }
 0xa50   :  { %3796 = vtanh.f32 %v1031_v34 }
 0xa59   :  { %v3795_v35 = vpop.eup %3794 }
 0xa5a   :  { %v1034_v36 = vadd.f32 1.0, %v3795_v35 }
 0xa5c   :  { %v1036_v42 = vmul.f32 %v1034_v36, %v1020_v38 }
 0xa5d   :  { %v3797_v37 = vpop.eup %3796 }
 0xa5e   :  { %v1035_v40 = vadd.f32 1.0, %v3797_v37 }
 0xa60   :  { %v1037_v43 = vmul.f32 %v1035_v40, %v1021_v39 }
 0xa62   :  { %v1046_v44 = vpack.c.bf16 %v1037_v43, %v1036_v42 }
 0xa64   :  { %3537 = vmatmul.mubr.msk.bf16.vlgmr.msra.gmra.mxu0 %vm1078_vm5, %v1046_v44 }
 0xa65   :  { %3556 = vmatprep.mubr.msk.bf16.mxu0 %vm3897_vm1, %v3896_v14 }
 0xb24   :  { %v1116_v46 = vpop.f32.mrf.mxu0 }
 0xb25   :  { %v1117_v49 = vadd.f32 %v3247_v45, %v1116_v46 }
 0xb26   :  { %v3538_v50 = vpop.f32.mrf.mxu0 }
 0xb27   :  { %v1123_v51 = vadd.f32 %v1117_v49, %v950_v11 }
 0xb28   :  { %v1119_v52 = vpop.f32.mrf.mxu0 }
 0xb29   :  { %v1120_v47 = vadd.f32 %v3247_v45, %v1119_v52  ;;  %v1127_v54 = vsel %vm84_vm0, %v1123_v51, 0.0 }
 0xb2a   :  { %1128 = vadd.xlane.f32.xlu1 %v1127_v54  ;;  %v3539_v56 = vpop.f32.mrf.mxu0 }
 0xb2b   :  { %v1124_v59 = vadd.f32 %v1120_v47, %v951_v12 }
 0xb2d   :  { %v1130_v31 = vsel %vm84_vm0, %v1124_v59, 0.0 }
 0xb2e   :  { %1131 = vadd.xlane.f32.xlu0 %v1130_v31 }
 0xbb3   :  { %v1129_v60 = vpop.xlane.xlu1 %1128 }
 0xbb4   :  { %v1133_v32 = vmul.f32 0.03125, %v1129_v60 }
 0xbb6   :  { %v1135_v61 = vsub.f32 %v1123_v51, %v1133_v32 }
 0xbb7   :  { %v1132_v62 = vpop.xlane.xlu0 %1131 }
 0xbb8   :  { %v1134_v63 = vmul.f32 0.03125, %v1132_v62  ;;  %v1137_v0 = vmul.f32 %v1135_v61, %v1135_v61 }
 0xbba   :  { %v1136_v41 = vsub.f32 %v1124_v59, %v1134_v63  ;;  %v1139_v1 = vsel %vm84_vm0, %v1137_v0, 0.0 }
 0xbbb   :  { %1140 = vadd.xlane.f32.xlu1 %v1139_v1 }
 0xbbc   :  { %v1138_v2 = vmul.f32 %v1136_v41, %v1136_v41 }
 0xbbe   :  { %v1142_v3 = vsel %vm84_vm0, %v1138_v2, 0.0 }
 0xbbf   :  { %1143 = vadd.xlane.f32.xlu0 %v1142_v3 }
 0xc44   :  { %v1141_v6 = vpop.xlane.xlu1 %1140 }
 0xc45   :  { %v1145_v7 = vmul.f32 0.03125, %v1141_v6 }
 0xc47   :  { %v1147_v8 = vadd.f32 1e-12, %v1145_v7 }
 0xc48   :  { %v1144_v9 = vpop.xlane.xlu0 %1143 }
 0xc49   :  { %3798 = vrsqrt.f32 %v1147_v8  ;;  %v1146_v10 = vmul.f32 0.03125, %v1144_v9 }
 0xc4b   :  { %v1148_v11 = vadd.f32 1e-12, %v1146_v10 }
 0xc4d   :  { %3800 = vrsqrt.f32 %v1148_v11 }
 0xc56   :  { %v3799_v12 = vpop.eup %3798 }
 0xc57   :  { %v1151_v13 = vmul.f32 %v3799_v12, %v1135_v61 }
 0xc59   :  { %v1159_v15 = vmul.f32 %v3253_v55, %v1151_v13 }
 0xc5a   :  { %v3801_v57 = vpop.eup %3800 }
 0xc5b   :  { %v1152_v58 = vmul.f32 %v3801_v57, %v1136_v41  ;;  %v4289_v18 = vadd.f32 %v3254_v16, %v1159_v15 }
 0xc5d   :  { %v1160_v17 = vmul.f32 %v3253_v55, %v1152_v58 }
 0xc5f   :  { %v4291_v19 = vadd.f32 %v3254_v16, %v1160_v17 }
 0xc61   :  { %v1174_v20 = vpack.c.bf16 %v4291_v19, %v4289_v18 }
 0xc63   :  { %3545 = vmatmul.mubr.msk.bf16.vlgmr.msra.gmra.mxu1 %vm84_vm0, %v1174_v20 }
 0xc64   :  { %3550 = vmatprep.mubr.msk.bf16.mxu1 %vm3897_vm1, %v3896_v14 }
 0xd23   :  { %v1232_v21 = vpop.f32.mrf.mxu1 }
 0xd24   :  { %v1233_v25 = vadd.f32 %v3260_v22, %v1232_v21 }
 0xd25   :  { %v3546_v23 = vpop.f32.mrf.mxu1 }
 0xd27   :  { %v1235_v24 = vpop.f32.mrf.mxu1 }
 0xd28   :  { %v1236_v26 = vadd.f32 %v3260_v22, %v1235_v24 }
 0xd29   :  { %v3547_v27 = vpop.f32.mrf.mxu1 }
 0xd2a   :  { %v4301_v28 = vpack.c.bf16 %v1236_v26, %v1233_v25 }
 0xd2c   :  { %1372 = vrot.lane.b32.xlu0 %v4301_v28, %s3898_s6  ;;  %1246 = vrot.lane.b32.xlu1 %v4301_v28, %s4806_s1  ;;  %s4809_s6 = smov 64  }
 0xd30   :  { %1370 = vrot.lane.b32.xlu1 %v4301_v28, %s4807_s4 }
 0xd9e   :  { %v1247_v29 = vpop.permute.xlu1 %1246  ;;  %v1373_v33 = vpop.permute.xlu0 %1372 }
 0xd9f   :  { %v1252_v30 = vsel %vm204_vm2, %v1247_v29, 0  ;;  %v1378_v34 = vsel %vm204_vm2, %v1373_v33, 0 }
 0xda0   :  { %3549 = vmatpush3.bf16.xpose.msra.mxu1 %v1252_v30 }
 0xda1   :  { %3560 = vmatprep.subr.bf16.mxu1 %v3896_v14 }
 0xda2   :  { %v1371_v35 = vpop.permute.xlu1 %1370 }
 0xda7   :  { %3551 = vmatmul.mubr.msk.bf16.vlgmr.msra.gmra.mxu1 %vm204_vm2, %v4301_v28 }
 0xda8   :  { %3561 = vmatpush3.bf16.xpose.msra.mxu1 %v1378_v34  ;;  %3562 = vmatprep.mubr.msk.bf16.mxu1 %vm3897_vm1, %v3896_v14 }
 0xda9   :  { %3572 = vmatprep.subr.bf16.mxu1 %v3896_v14 }
 0xdaf   :  { %3563 = vmatmul.mubr.msk.bf16.vlgmr.msra.gmra.mxu1 %vm204_vm2, %v1371_v35 }
 0xdb0   :  { %3574 = vmatprep.mubr.msk.bf16.mxu1 %vm3897_vm1, %v3896_v14 }
 0xe67   :  { %v1288_v36 = vpop.f32.mrf.mxu1 }
 0xe68   :  { %v1295_v37 = vmul.f32 0.35355338, %v1288_v36 }
 0xe69   :  { %v3552_v38 = vpop.f32.mrf.mxu1 }
 0xe6a   :  { %v1297_v39 = vadd.f32 %v1295_v37, %v4100_v48  ;;  %v3265_v38 = vld [vmem:[%s4803_s10 + $0x14] sm:$0xf] }
 0xe6b   :  { %v1291_v40 = vpop.f32.mrf.mxu1 }
 0xe6c   :  { %v1296_v42 = vmul.f32 0.35355338, %v1291_v40  ;;  %v1299_v43 = vsel %vm256_vm3, %v1297_v39, -inf }
 0xe6d   :  { %1300 = vmax.xlane.f32.xlu1 %v1299_v43  ;;  %v3553_v44 = vpop.f32.mrf.mxu1 }
 0xe6e   :  { %v1298_v45 = vadd.f32 %v1296_v42, %v4106_v53 }
 0xe6f   :  { %v1414_v46 = vpop.f32.mrf.mxu1 }
 0xe70   :  { %v1421_v49 = vmul.f32 0.35355338, %v1414_v46  ;;  %v1302_v50 = vsel %vm256_vm3, %v1298_v45, -inf }
 0xe71   :  { %1303 = vmax.xlane.f32.xlu0 %v1302_v50  ;;  %v3564_v51 = vpop.f32.mrf.mxu1 }
 0xe72   :  { %v1423_v52 = vadd.f32 %v1421_v49, %v4100_v48 }
 0xe73   :  { %v1417_v47 = vpop.f32.mrf.mxu1 }
 0xe74   :  { %v1422_v54 = vmul.f32 0.35355338, %v1417_v47  ;;  %v1425_v56 = vsel %vm256_vm3, %v1423_v52, -inf }
 0xe75   :  { %1426 = vmax.xlane.f32.xlu0 %v1425_v56  ;;  %v3565_v59 = vpop.f32.mrf.mxu1 }
 0xe76   :  { %v1424_v31 = vadd.f32 %v1422_v54, %v4106_v53  ;;  %v3894_v59 = vld [vmem:[%s4802_s3] sm:$0xff] }
 0xe78   :  { %v1428_v60 = vsel %vm256_vm3, %v1424_v31, -inf }
 0xe79   :  { %1429 = vmax.xlane.f32.xlu1 %v1428_v60 }
 0xef6   :  { %v1301_v32 = vpop.xlane.xlu1 %1300 }
 0xef7   :  { %v1305_v61 = vsub.f32 %v1297_v39, %v1301_v32  ;;  %v1500_v39 = vsel %vm457_vm4, %v3265_v38, 0 }
 0xef8   :  { %3573 = vmatpush3.bf16.msra.mxu1 %v1500_v39 }
 0xef9   :  { %v1307_v62 = vmul.f32 1.442695, %v1305_v61  ;;  %3584 = vmatprep.subr.bf16.mxu1 %v3896_v14 }
 0xefa   :  { %v1304_v63 = vpop.xlane.xlu0 %1303 }
 0xefb   :  { %3802 = vpow2.f32 %v1307_v62  ;;  %v1306_v0 = vsub.f32 %v1298_v45, %v1304_v63  ;;  %v3895_v63 = vld [vmem:[%s4802_s3 + $0x8] sm:$0xff]  ;;  %s4814_s3 = smov 40  }
 0xefd   :  { %v1309_v41 = vmul.f32 1.442695, %v1306_v0 }
 0xefe   :  { %v1427_v1 = vpop.xlane.xlu0 %1426 }
 0xeff   :  { %3804 = vpow2.f32 %v1309_v41  ;;  %v1431_v48 = vsub.f32 %v1423_v52, %v1427_v1 }
 0xf01   :  { %v1433_v2 = vmul.f32 1.442695, %v1431_v48 }
 0xf02   :  { %v1430_v8 = vpop.xlane.xlu1 %1429 }
 0xf03   :  { %3806 = vpow2.f32 %v1433_v2  ;;  %v1432_v9 = vsub.f32 %v1424_v31, %v1430_v8 }
 0xf05   :  { %v1435_v10 = vmul.f32 1.442695, %v1432_v9 }
 0xf07   :  { %3808 = vpow2.f32 %v1435_v10 }
 0xf08   :  { %v3803_v3 = vpop.eup %3802 }
 0xf09   :  { %v1311_v4 = vsel %vm256_vm3, %v3803_v3, 0.0 }
 0xf0a   :  { %1312 = vadd.xlane.f32.xlu0 %v1311_v4 }
 0xf0c   :  { %v3805_v53 = vpop.eup %3804 }
 0xf0d   :  { %v1314_v5 = vsel %vm256_vm3, %v3805_v53, 0.0 }
 0xf0e   :  { %1315 = vadd.xlane.f32.xlu1 %v1314_v5 }
 0xf10   :  { %v3807_v6 = vpop.eup %3806 }
 0xf11   :  { %v1437_v7 = vsel %vm256_vm3, %v3807_v6, 0.0 }
 0xf12   :  { %1438 = vadd.xlane.f32.xlu0 %v1437_v7 }
 0xf14   :  { %v3809_v11 = vpop.eup %3808 }
 0xf15   :  { %v1440_v12 = vsel %vm256_vm3, %v3809_v11, 0.0 }
 0xf1f   :  { %1448 = vrot.lane.b32.xlu1 %v4301_v28, %s4808_s28 }
 0xf28   :  { %1322 = vrot.lane.b32.xlu0 %v4301_v28, %s4809_s6 }
 0xf2c   :  { %1671 = vrot.lane.b32.xlu0 %v4301_v28, %s4810_s26  ;;  %s4815_s26 = smov 48  }
 0xf43   :  { %1441 = vadd.xlane.f32.xlu1 %v1440_v12 }
 0xf54   :  { %1545 = vrot.lane.b32.xlu1 %v4301_v28, %s4811_s5 }
 0xf58   :  { %1543 = vrot.lane.b32.xlu1 %v4301_v28, %s4812_s27 }
 0xf5c   :  { %1669 = vrot.lane.b32.xlu1 %v4301_v28, %s4813_s0 }
 0xf93   :  { %v1313_v13 = vpop.xlane.xlu0 %1312 }
 0xf94   :  { %3810 = vrcp.f32 %v1313_v13 }
 0xf97   :  { %v1316_v55 = vpop.xlane.xlu1 %1315 }
 0xf98   :  { %3812 = vrcp.f32 %v1316_v55 }
 0xf9b   :  { %v1439_v57 = vpop.xlane.xlu0 %1438  ;;  %v1449_v22 = vpop.permute.xlu1 %1448 }
 0xf9c   :  { %3814 = vrcp.f32 %v1439_v57 }
 0xf9f   :  { %v1323_v58 = vpop.permute.xlu0 %1322 }
 0xfa0   :  { %3555 = vmatpush3.bf16.msra.mxu0 %v1323_v58 }
 0xfa1   :  { %3566 = vmatprep.subr.bf16.mxu0 %v3896_v14  ;;  %v3811_v15 = vpop.eup %3810 }
 0xfa2   :  { %v1319_v17 = vmul.f32 %v3811_v15, %v3803_v3 }
 0xfa3   :  { %v1672_v34 = vpop.permute.xlu0 %1671 }
 0xfa4   :  { %v1677_v36 = vsel %vm204_vm2, %v1672_v34, 0 }
 0xfa5   :  { %v3813_v16 = vpop.eup %3812 }
 0xfa6   :  { %v1320_v20 = vmul.f32 %v3813_v16, %v3805_v53 }
 0xfa8   :  { %v1321_v21 = vpack.c.bf16 %v1320_v20, %v1319_v17 }
 0xfa9   :  { %v3815_v24 = vpop.eup %3814 }
 0xfaa   :  { %3557 = vmatmul.mubr.msk.bf16.vlgmr.msra.gmra.mxu0 %vm256_vm3, %v1321_v21  ;;  %v1445_v26 = vmul.f32 %v3815_v24, %v3807_v6 }
 0xfab   :  { %3567 = vmatpush3.bf16.msra.mxu0 %v1449_v22  ;;  %3568 = vmatprep.mubr.msk.bf16.mxu0 %vm3897_vm1, %v3896_v14 }
 0xfac   :  { %3578 = vmatprep.subr.bf16.mxu0 %v3896_v14 }
 0xfcc   :  { %v1442_v23 = vpop.xlane.xlu1 %1441 }
 0xfcd   :  { %3816 = vrcp.f32 %v1442_v23 }
 0xfd0   :  { %v1546_v29 = vpop.permute.xlu1 %1545 }
 0xfd1   :  { %v1551_v33 = vsel %vm204_vm2, %v1546_v29, 0 }
 0xfd4   :  { %v1544_v35 = vpop.permute.xlu1 %1543 }
 0xfd8   :  { %v1670_v37 = vpop.permute.xlu1 %1669 }
 0xfda   :  { %v3817_v25 = vpop.eup %3816 }
 0xfdb   :  { %v1446_v27 = vmul.f32 %v3817_v25, %v3809_v11 }
 0xfdd   :  { %v1447_v30 = vpack.c.bf16 %v1446_v27, %v1445_v26 }
 0xfdf   :  { %3569 = vmatmul.mubr.msk.bf16.vlgmr.msra.gmra.mxu0 %vm256_vm3, %v1447_v30 }
 0xfe0   :  { %3579 = vmatpush3.bf16.xpose.msra.mxu0 %v1551_v33  ;;  %3580 = vmatprep.mubr.msk.bf16.mxu0 %vm3897_vm1, %v3896_v14 }
 0xfe1   :  { %3590 = vmatprep.subr.bf16.mxu0 %v3896_v14 }
 0xfe7   :  { %3581 = vmatmul.mubr.msk.bf16.vlgmr.msra.gmra.mxu0 %vm204_vm2, %v1544_v35 }
 0xfe8   :  { %3591 = vmatpush3.bf16.xpose.msra.mxu0 %v1677_v36  ;;  %3592 = vmatprep.mubr.msk.bf16.mxu0 %vm3897_vm1, %v3896_v14 }
 0xfe9   :  { %3602 = vmatprep.subr.bf16.mxu0 %v3896_v14 }
 0xfef   :  { %3593 = vmatmul.mubr.msk.bf16.vlgmr.msra.gmra.mxu0 %vm204_vm2, %v1670_v37 }
 0xff0   :  { %3604 = vmatprep.mubr.msk.bf16.mxu0 %vm3897_vm1, %v3896_v14 }
0x106a   :  { %v4367_v40 = vpop.f32.mrf.mxu0 }
0x106c   :  { %v3558_v42 = vpop.f32.mrf.mxu0 }
0x106e   :  { %v4369_v43 = vpop.f32.mrf.mxu0 }
0x106f   :  { %v1369_v44 = vpack.c.bf16 %v4369_v43, %v4367_v40  ;;  %v3266_v43 = vld [vmem:[%s4803_s10 + $0x18] sm:$0xf] }
0x1070   :  { %v3559_v45 = vpop.f32.mrf.mxu0 }
0x109f   :  { %v1488_v46 = vpop.f32.mrf.mxu0 }
0x10a1   :  { %v3570_v49 = vpop.f32.mrf.mxu0 }
0x10a3   :  { %v1491_v50 = vpop.f32.mrf.mxu0 }
0x10a4   :  { %v1495_v51 = vpack.c.bf16 %v1491_v50, %v1488_v46 }
0x10a5   :  { %v3571_v52 = vpop.f32.mrf.mxu0 }
0x10a6   :  { %3575 = vmatmul.mubr.msk.bf16.vlgmr.msra.gmra.mxu1 %vm204_vm2, %v1495_v51 }
0x10a7   :  { %v1587_v47 = vpop.f32.mrf.mxu0  ;;  %3586 = vmatprep.mubr.msk.bf16.mxu1 %vm3897_vm1, %v3896_v14 }
0x10a8   :  { %v1594_v54 = vmul.f32 0.35355338, %v1587_v47 }
0x10a9   :  { %v3582_v56 = vpop.f32.mrf.mxu0 }
0x10aa   :  { %v1596_v31 = vadd.f32 %v3894_v59, %v1594_v54  ;;  %v3264_v54 = vld [vmem:[%s4803_s10 + $0x10] sm:$0xf] }
0x10ab   :  { %v1590_v60 = vpop.f32.mrf.mxu0 }
0x10ac   :  { %v1595_v32 = vmul.f32 0.35355338, %v1590_v60  ;;  %v1598_v61 = vsel %vm256_vm3, %v1596_v31, -inf  ;;  %v1846_v60 = vsel %vm457_vm4, %v3264_v54, 0 }
0x10ad   :  { %1599 = vmax.xlane.f32.xlu0 %v1598_v61  ;;  %v3583_v62 = vpop.f32.mrf.mxu0 }
0x10ae   :  { %v1597_v0 = vadd.f32 %v3895_v63, %v1595_v32  ;;  %v3267_v32 = vld [vmem:[%s4803_s10 + $0x1c] sm:$0xf] }
0x10af   :  { %v1713_v41 = vpop.f32.mrf.mxu0  ;;  %v1799_v61 = vsel %vm457_vm4, %v3267_v32, 0  ;;  %v3285_v32 = vld [vmem:[%s4753_s9 + $0x1] ss:$0 sm:$0xff] }
0x10b0   :  { %v1720_v1 = vmul.f32 0.35355338, %v1713_v41  ;;  %v1601_v48 = vsel %vm256_vm3, %v1597_v0, -inf  ;;  %3603 = vmatpush3.bf16.msra.mxu0 %v1799_v61 }
0x10b1   :  { %1602 = vmax.xlane.f32.xlu1 %v1601_v48  ;;  %v3594_v2 = vpop.f32.mrf.mxu0  ;;  %3614 = vmatprep.subr.bf16.mxu0 %v3896_v14 }
0x10b2   :  { %v1722_v3 = vadd.f32 %v3894_v59, %v1720_v1  ;;  %v1893_v2 = vsel %vm457_vm4, %v3266_v43, 0  ;;  %v3750_v43 = vld [vmem:[%s4754_s12 + $0x20] sm:$0xff]  }
0x10b3   :  { %v1716_v4 = vpop.f32.mrf.mxu0 }
0x10b4   :  { %v1721_v53 = vmul.f32 0.35355338, %v1716_v4  ;;  %v1724_v5 = vsel %vm256_vm3, %v1722_v3, -inf }
0x10b5   :  { %1725 = vmax.xlane.f32.xlu0 %v1724_v5  ;;  %v3595_v6 = vpop.f32.mrf.mxu0 }
0x10b6   :  { %v1723_v7 = vadd.f32 %v3895_v63, %v1721_v53 }
0x10b8   :  { %v1727_v8 = vsel %vm256_vm3, %v1723_v7, -inf }
0x10b9   :  { %1728 = vmax.xlane.f32.xlu0 %v1727_v8 }
0x1136   :  { %v1600_v9 = vpop.xlane.xlu0 %1599 }
0x1137   :  { %v1604_v10 = vsub.f32 %v1596_v31, %v1600_v9 }
0x1139   :  { %v1606_v11 = vmul.f32 1.442695, %v1604_v10 }
0x113a   :  { %v1603_v12 = vpop.xlane.xlu1 %1602 }
0x113b   :  { %3818 = vpow2.f32 %v1606_v11  ;;  %v1605_v13 = vsub.f32 %v1597_v0, %v1603_v12 }
0x113d   :  { %v1608_v55 = vmul.f32 1.442695, %v1605_v13 }
0x113e   :  { %v1726_v57 = vpop.xlane.xlu0 %1725 }
0x113f   :  { %3820 = vpow2.f32 %v1608_v55  ;;  %v1730_v58 = vsub.f32 %v1722_v3, %v1726_v57 }
0x1141   :  { %v1732_v15 = vmul.f32 1.442695, %v1730_v58  ;;  %v3281_v58 = vld [vmem:[%s4804_s30 + $0x1] ss:$0 sm:$0xff] }
0x1142   :  { %v1729_v16 = vpop.xlane.xlu0 %1728 }
0x1143   :  { %3822 = vpow2.f32 %v1732_v15  ;;  %v1731_v17 = vsub.f32 %v1723_v7, %v1729_v16 }
0x1145   :  { %v1734_v20 = vmul.f32 1.442695, %v1731_v17 }
0x1147   :  { %3824 = vpow2.f32 %v1734_v20 }
0x1148   :  { %v3819_v21 = vpop.eup %3818 }
0x1149   :  { %v1610_v22 = vsel %vm256_vm3, %v3819_v21, 0.0 }
0x114a   :  { %1611 = vadd.xlane.f32.xlu0 %v1610_v22 }
0x114c   :  { %v3821_v23 = vpop.eup %3820 }
0x114d   :  { %v1613_v24 = vsel %vm256_vm3, %v3821_v23, 0.0 }
0x114e   :  { %1614 = vadd.xlane.f32.xlu1 %v1613_v24 }
0x1150   :  { %v3823_v25 = vpop.eup %3822 }
0x1151   :  { %v1736_v26 = vsel %vm256_vm3, %v3823_v25, 0.0 }
0x1152   :  { %1737 = vadd.xlane.f32.xlu0 %v1736_v26 }
0x1154   :  { %v3825_v27 = vpop.eup %3824 }
0x1155   :  { %v1739_v29 = vsel %vm256_vm3, %v3825_v27, 0.0 }
0x1156   :  { %1740 = vadd.xlane.f32.xlu1 %v1739_v29 }
0x1166   :  { %v4390_v30 = vpop.f32.mrf.mxu1 }
0x1167   :  { %1747 = vrot.lane.b32.xlu1 %v4301_v28, %s4814_s3 }
0x1168   :  { %v3576_v33 = vpop.f32.mrf.mxu1  ;;  %1621 = vrot.lane.b32.xlu0 %v4301_v28, %s4815_s26 }
0x116a   :  { %v4396_v34 = vpop.f32.mrf.mxu1 }
0x116c   :  { %v3577_v35 = vpop.f32.mrf.mxu1 }
0x11d3   :  { %v1612_v36 = vpop.xlane.xlu0 %1611 }
0x11d4   :  { %3826 = vrcp.f32 %v1612_v36 }
0x11d7   :  { %v1615_v37 = vpop.xlane.xlu1 %1614 }
0x11d8   :  { %3828 = vrcp.f32 %v1615_v37 }
0x11db   :  { %v1738_v38 = vpop.xlane.xlu0 %1737 }
0x11dc   :  { %3830 = vrcp.f32 %v1738_v38 }
0x11df   :  { %v1741_v39 = vpop.xlane.xlu1 %1740  ;;  %v1622_v42 = vpop.permute.xlu0 %1621 }
0x11e0   :  { %3832 = vrcp.f32 %v1741_v39  ;;  %3585 = vmatpush3.bf16.msra.mxu1 %v1622_v42 }
0x11e1   :  { %3596 = vmatprep.subr.bf16.mxu1 %v3896_v14  ;;  %v3827_v45 = vpop.eup %3826 }
0x11e2   :  { %v1618_v49 = vmul.f32 %v3827_v45, %v3819_v21  ;;  %v3746_v45 = vld [vmem:[%s4805_s7 + $0x10] sm:$0xff]  }
0x11e3   :  { %v1748_v51 = vpop.permute.xlu1 %1747 }
0x11e5   :  { %v3829_v46 = vpop.eup %3828 }
0x11e6   :  { %v1619_v50 = vmul.f32 %v3829_v46, %v3821_v23 }
0x11e8   :  { %v1620_v28 = vpack.c.bf16 %v1619_v50, %v1618_v49 }
0x11e9   :  { %v3831_v52 = vpop.eup %3830 }
0x11ea   :  { %3587 = vmatmul.mubr.msk.bf16.vlgmr.msra.gmra.mxu1 %vm256_vm3, %v1620_v28  ;;  %v1744_v56 = vmul.f32 %v3831_v52, %v3823_v25 }
0x11eb   :  { %3597 = vmatpush3.bf16.msra.mxu1 %v1748_v51  ;;  %3598 = vmatprep.mubr.msk.bf16.mxu1 %vm3897_vm1, %v3896_v14 }
0x11ec   :  { %3608 = vmatprep.subr.bf16.mxu1 %v3896_v14 }
0x11ed   :  { %v3833_v47 = vpop.eup %3832 }
0x11ee   :  { %v1745_v59 = vmul.f32 %v3833_v47, %v3825_v27 }
0x11f0   :  { %v1746_v31 = vpack.c.bf16 %v1745_v59, %v1744_v56  ;;  %v3284_v56 = vld [vmem:[%s4752_s8 + $0x1] ss:$0 sm:$0xff] }
0x11f2   :  { %3599 = vmatmul.mubr.msk.bf16.vlgmr.msra.gmra.mxu1 %vm256_vm3, %v1746_v31 }
0x11f3   :  { %3609 = vmatpush3.bf16.msra.mxu1 %v1846_v60  ;;  %3610 = vmatprep.mubr.msk.bf16.mxu1 %vm3897_vm1, %v3896_v14 }
0x11f4   :  { %3620 = vmatprep.subr.bf16.mxu1 %v3896_v14 }
0x11fa   :  { %3611 = vmatmul.mubr.msk.bf16.vlgmr.msra.gmra.mxu1 %vm204_vm2, %v1369_v44 }
0x11fb   :  { %3624 = vmatprep.mubr.msk.bf16.mxu1 %vm3897_vm1, %v3896_v14 }
0x12aa   :  { %v1661_v62 = vpop.f32.mrf.mxu1 }
0x12ac   :  { %v3588_v63 = vpop.f32.mrf.mxu1 }
0x12ae   :  { %v1664_v0 = vpop.f32.mrf.mxu1 }
0x12af   :  { %v1668_v6 = vpack.c.bf16 %v1664_v0, %v1661_v62 }
0x12b0   :  { %v3589_v41 = vpop.f32.mrf.mxu1 }
0x12b1   :  { %v3747_v41 = vld [vmem:[%s4754_s12 + $0x38] sm:$0xff]  }
0x12b2   :  { %v1787_v1 = vpop.f32.mrf.mxu1 }
0x12b4   :  { %v3600_v40 = vpop.f32.mrf.mxu1 }
0x12b5   :  { %v3749_v40 = vld [vmem:[%s4754_s12 + $0x28] sm:$0xff]  }
0x12b6   :  { %v1790_v44 = vpop.f32.mrf.mxu1 }
0x12b7   :  { %v1794_v48 = vpack.c.bf16 %v1790_v44, %v1787_v1  ;;  %v3748_v1 = vld [vmem:[%s4754_s12 + $0x30] sm:$0xff]   ;;  %v3291_v44 = vld [vmem:[%s4755_s11 + $0x1] ss:$0 sm:$0xff] }
0x12b8   :  { %v3601_v3 = vpop.f32.mrf.mxu1 }
0x12b9   :  { %3605 = vmatmul.mubr.msk.bf16.vlgmr.msra.gmra.mxu0 %vm204_vm2, %v1794_v48 }
0x12ba   :  { %v1882_v4 = vpop.f32.mrf.mxu1  ;;  %3615 = vmatpush3.bf16.msra.mxu0 %v1893_v2  ;;  %3616 = vmatprep.mubr.msk.bf16.mxu0 %vm3897_vm1, %v3896_v14 }
0x12bb   :  { %3628 = vmatprep.subr.bf16.mxu0 %v3896_v14  ;;  %v1883_v13 = vadd.f32 %v1882_v4, %v4390_v30 }
0x12bc   :  { %v3612_v53 = vpop.f32.mrf.mxu1 }
0x12be   :  { %v1885_v5 = vpop.f32.mrf.mxu1 }
0x12bf   :  { %v1886_v17 = vadd.f32 %v1885_v5, %v4396_v34 }
0x12c0   :  { %v3613_v7 = vpop.f32.mrf.mxu1 }
0x12c1   :  { %3617 = vmatmul.mubr.msk.bf16.vlgmr.msra.gmra.mxu0 %vm204_vm2, %v1668_v6 }
0x12c2   :  { %3636 = vmatprep.mubr.msk.bf16.mxu0 %vm3897_vm1, %v3896_v14  ;;  %3629 = vmatpush3.bf16.msra.mxu0 %v3747_v41 }
0x12c3   :  { %3630 = vmatprep.subr.bf16.mxu0 %v3896_v14 }
0x12c6   :  { %3631 = vmatpush3.bf16.msra.mxu0 %v3748_v1 }
0x12c7   :  { %3632 = vmatprep.subr.bf16.mxu0 %v3896_v14 }
0x12ca   :  { %3633 = vmatpush3.bf16.msra.mxu0 %v3749_v40  ;;  %v3313_v40 = vld [vmem:[%s4758_s15 + $0x1] ss:$0 sm:$0xff] }
0x12cb   :  { %3634 = vmatprep.subr.bf16.mxu0 %v3896_v14 }
0x12ce   :  { %3635 = vmatpush3.bf16.msra.mxu0 %v3750_v43 }
0x12cf   :  { %3654 = vmatprep.subr.bf16.mxu0 %v3896_v14 }
0x1379   :  { %v1835_v8 = vpop.f32.mrf.mxu0 }
0x137b   :  { %v3606_v9 = vpop.f32.mrf.mxu0 }
0x137d   :  { %v1838_v10 = vpop.f32.mrf.mxu0 }
0x137f   :  { %v3607_v11 = vpop.f32.mrf.mxu0 }
0x1381   :  { %v1929_v12 = vpop.f32.mrf.mxu0 }
0x1382   :  { %v1930_v55 = vadd.f32 %v1929_v12, %v1835_v8 }
0x1383   :  { %v3618_v57 = vpop.f32.mrf.mxu0 }
0x1384   :  { %v1936_v15 = vadd.f32 %v1930_v55, %v1883_v13 }
0x1385   :  { %v1932_v16 = vpop.f32.mrf.mxu0 }
0x1386   :  { %v1933_v20 = vadd.f32 %v1932_v16, %v1838_v10  ;;  %v1946_v21 = vadd.f32 %v3281_v58, %v1936_v15 }
0x1387   :  { %v3619_v22 = vpop.f32.mrf.mxu0 }
0x1388   :  { %v1937_v23 = vadd.f32 %v1933_v20, %v1886_v17  ;;  %v1948_v24 = vadd.f32 %v1946_v21, %v4289_v18 }
0x138a   :  { %v1954_v25 = vsel %vm84_vm0, %v1948_v24, 0.0  ;;  %v1947_v26 = vadd.f32 %v3281_v58, %v1937_v23 }
0x138b   :  { %1955 = vadd.xlane.f32.xlu1 %v1954_v25  ;;  %v3304_v25 = vld [vmem:[%s4756_s13 + $0x1] ss:$0 sm:$0xff] }
0x138c   :  { %v1949_v27 = vadd.f32 %v1947_v26, %v4291_v19  ;;  %v3745_v19 = vld [vmem:[%s4805_s7 + $0x18] sm:$0xff]  }
0x138d   :  { %3621 = vmatpush3.bf16.msra.mxu1 %v3745_v19 }
0x138e   :  { %v1957_v29 = vsel %vm84_vm0, %v1949_v27, 0.0  ;;  %3622 = vmatprep.subr.bf16.mxu1 %v3896_v14 }
0x138f   :  { %1958 = vadd.xlane.f32.xlu0 %v1957_v29 }
0x1391   :  { %3623 = vmatpush3.bf16.msra.mxu1 %v3746_v45 }
0x1392   :  { %3640 = vmatprep.subr.bf16.mxu1 %v3896_v14 }
0x1414   :  { %v1956_v30 = vpop.xlane.xlu1 %1955 }
0x1415   :  { %v1960_v33 = vmul.f32 0.03125, %v1956_v30 }
0x1417   :  { %v1962_v35 = vsub.f32 %v1948_v24, %v1960_v33 }
0x1418   :  { %v1959_v36 = vpop.xlane.xlu0 %1958 }
0x1419   :  { %v1961_v34 = vmul.f32 0.03125, %v1959_v36  ;;  %v1964_v37 = vmul.f32 %v1962_v35, %v1962_v35 }
0x141b   :  { %v1963_v38 = vsub.f32 %v1949_v27, %v1961_v34  ;;  %v1966_v39 = vsel %vm84_vm0, %v1964_v37, 0.0 }
0x141c   :  { %1967 = vadd.xlane.f32.xlu0 %v1966_v39 }
0x141d   :  { %v1965_v18 = vmul.f32 %v1963_v38, %v1963_v38 }
0x141f   :  { %v1969_v42 = vsel %vm84_vm0, %v1965_v18, 0.0 }
0x1420   :  { %1970 = vadd.xlane.f32.xlu1 %v1969_v42 }
0x14a5   :  { %v1968_v46 = vpop.xlane.xlu0 %1967 }
0x14a6   :  { %v1972_v49 = vmul.f32 0.03125, %v1968_v46 }
0x14a8   :  { %v1974_v50 = vadd.f32 1e-12, %v1972_v49 }
0x14a9   :  { %v1971_v28 = vpop.xlane.xlu1 %1970 }
0x14aa   :  { %3834 = vrsqrt.f32 %v1974_v50  ;;  %v1973_v51 = vmul.f32 0.03125, %v1971_v28 }
0x14ac   :  { %v1975_v52 = vadd.f32 1e-12, %v1973_v51 }
0x14ae   :  { %3836 = vrsqrt.f32 %v1975_v52  ;;  %v3751_v52 = vld [vmem:[%s4759_s16 + $0x8] sm:$0xff]  }
0x14b7   :  { %v3835_v47 = vpop.eup %3834 }
0x14b8   :  { %v1978_v54 = vmul.f32 %v3835_v47, %v1962_v35  ;;  %v3752_v47 = vld [vmem:[%s4759_s16] sm:$0xff]  }
0x14ba   :  { %v1986_v60 = vmul.f32 %v3284_v56, %v1978_v54 }
0x14bb   :  { %v3837_v59 = vpop.eup %3836 }
0x14bc   :  { %v1979_v31 = vmul.f32 %v3837_v59, %v1963_v38  ;;  %v1994_v62 = vadd.f32 %v3285_v32, %v1986_v60 }
0x14be   :  { %v1987_v61 = vmul.f32 %v3284_v56, %v1979_v31 }
0x14c0   :  { %v1995_v63 = vadd.f32 %v3285_v32, %v1987_v61 }
0x14c2   :  { %v2001_v0 = vpack.c.bf16 %v1995_v63, %v1994_v62 }
0x14c4   :  { %3625 = vmatmul.mubr.msk.bf16.vlgmr.msra.gmra.mxu1 %vm84_vm0, %v2001_v0 }
0x14c5   :  { %3644 = vmatprep.mubr.msk.bf16.mxu1 %vm3897_vm1, %v3896_v14  ;;  %3641 = vmatpush3.bf16.msra.mxu1 %v3751_v52 }
0x14c6   :  { %3642 = vmatprep.subr.bf16.mxu1 %v3896_v14 }
0x14c9   :  { %3643 = vmatpush3.bf16.msra.mxu1 %v3752_v47 }
0x14ca   :  { %3648 = vmatprep.subr.bf16.mxu1 %v3896_v14 }
0x1584   :  { %v2059_v48 = vpop.f32.mrf.mxu1 }
0x1585   :  { %v2060_v2 = vadd.f32 %v3291_v44, %v2059_v48 }
0x1586   :  { %v3626_v3 = vpop.f32.mrf.mxu1 }
0x1587   :  { %v2068_v4 = vmul.f32 0.044715, %v2060_v2  ;;  %v2066_v17 = vmul.f32 0.5, %v2060_v2  ;;  %v2287_v3 = vld [vmem:[%s4760_s18] sm:$0xf] }
0x1588   :  { %v2062_v53 = vpop.f32.mrf.mxu1 }
0x1589   :  { %v2070_v5 = vmul.f32 %v2068_v4, %v2060_v2  ;;  %v2063_v6 = vadd.f32 %v3291_v44, %v2062_v53  ;;  %v2299_v4 = vsel %vm457_vm4, %v2287_v3, 0  ;;  %v3320_v53 = vld [vmem:[%s4760_s18 + $0x4] sm:$0xf] }
0x158a   :  { %v3627_v7 = vpop.f32.mrf.mxu1 }
0x158b   :  { %v2072_v8 = vmul.f32 %v2070_v5, %v2060_v2  ;;  %v2069_v9 = vmul.f32 0.044715, %v2063_v6  ;;  %v2067_v20 = vmul.f32 0.5, %v2063_v6  ;;  %v2345_v5 = vsel %vm457_vm4, %v3320_v53, 0  ;;  %v3314_v7 = vld [vmem:[%s4762_s17] ss:$0 sm:$0xff] }
0x158d   :  { %v2074_v10 = vadd.f32 %v2072_v8, %v2060_v2  ;;  %v2071_v11 = vmul.f32 %v2069_v9, %v2063_v6 }
0x158f   :  { %v2076_v12 = vmul.f32 0.7978846, %v2074_v10  ;;  %v2073_v13 = vmul.f32 %v2071_v11, %v2063_v6 }
0x1591   :  { %3838 = vtanh.f32 %v2076_v12  ;;  %v2075_v55 = vadd.f32 %v2073_v13, %v2063_v6  ;;  %v4523_v13 = vld [vmem:[%s4761_s19] sm:$0xff]  }
0x1593   :  { %v2077_v57 = vmul.f32 0.7978846, %v2075_v55 }
0x1595   :  { %3840 = vtanh.f32 %v2077_v57  ;;  %v3909_v57 = vmov 0  }
0x159e   :  { %v3839_v58 = vpop.eup %3838 }
0x159f   :  { %v2080_v15 = vadd.f32 1.0, %v3839_v58 }
0x15a1   :  { %v2082_v22 = vmul.f32 %v2080_v15, %v2066_v17 }
0x15a2   :  { %v3841_v16 = vpop.eup %3840 }
0x15a3   :  { %v2081_v21 = vadd.f32 1.0, %v3841_v16  ;;  %v3318_v16 = vld [vmem:[%s4763_s20] ss:$0 sm:$0xff]  ;;  %s3910_s20 = smov 32  }
0x15a5   :  { %v2083_v23 = vmul.f32 %v2081_v21, %v2067_v20 }
0x15a7   :  { %v2093_v24 = vpack.c.bf16 %v2083_v23, %v2082_v22 }
0x15a9   :  { %3637 = vmatmul.mubr.msk.bf16.vlgmr.msra.gmra.mxu0 %vm1078_vm5, %v2093_v24 }
0x15aa   :  { %3656 = vmatprep.mubr.msk.bf16.mxu0 %vm3897_vm1, %v3896_v14  ;;  %3655 = vmatpush3.bf16.msra.mxu0 %v2345_v5 }
0x15ab   :  { %3666 = vmatprep.subr.bf16.mxu0 %v3896_v14 }
0x1669   :  { %v2163_v26 = vpop.f32.mrf.mxu0 }
0x166a   :  { %v2164_v27 = vadd.f32 %v3304_v25, %v2163_v26 }
0x166b   :  { %v3638_v29 = vpop.f32.mrf.mxu0 }
0x166c   :  { %v2170_v30 = vadd.f32 %v2164_v27, %v1994_v62 }
0x166d   :  { %v2166_v33 = vpop.f32.mrf.mxu0 }
0x166e   :  { %v2167_v35 = vadd.f32 %v3304_v25, %v2166_v33  ;;  %v2176_v36 = vsel %vm84_vm0, %v2170_v30, 0.0 }
0x166f   :  { %2177 = vadd.xlane.f32.xlu0 %v2176_v36  ;;  %v3639_v34 = vpop.f32.mrf.mxu0 }
0x1670   :  { %v2171_v37 = vadd.f32 %v2167_v35, %v1995_v63  ;;  %v3312_v63 = vld [vmem:[%s4757_s14 + $0x1] ss:$0 sm:$0xff]  ;;  %v4545_v35 = vld [vmem:[%s4764_s21] ss:$0 sm:$0xff] }
0x1672   :  { %v2179_v38 = vsel %vm84_vm0, %v2171_v37, 0.0 }
0x1673   :  { %2180 = vadd.xlane.f32.xlu1 %v2179_v38 }
0x16f8   :  { %v2178_v39 = vpop.xlane.xlu0 %2177 }
0x16f9   :  { %v2182_v18 = vmul.f32 0.03125, %v2178_v39 }
0x16fb   :  { %v2184_v42 = vsub.f32 %v2170_v30, %v2182_v18 }
0x16fc   :  { %v2181_v19 = vpop.xlane.xlu1 %2180 }
0x16fd   :  { %v2183_v45 = vmul.f32 0.03125, %v2181_v19  ;;  %v2186_v46 = vmul.f32 %v2184_v42, %v2184_v42 }
0x16ff   :  { %v2185_v49 = vsub.f32 %v2171_v37, %v2183_v45  ;;  %v2188_v50 = vsel %vm84_vm0, %v2186_v46, 0.0 }
0x1700   :  { %2189 = vadd.xlane.f32.xlu0 %v2188_v50 }
0x1701   :  { %v2187_v28 = vmul.f32 %v2185_v49, %v2185_v49 }
0x1703   :  { %v2191_v51 = vsel %vm84_vm0, %v2187_v28, 0.0 }
0x1704   :  { %2192 = vadd.xlane.f32.xlu1 %v2191_v51 }
0x1789   :  { %v2190_v54 = vpop.xlane.xlu0 %2189 }
0x178a   :  { %v2194_v56 = vmul.f32 0.03125, %v2190_v54 }
0x178c   :  { %v2196_v59 = vadd.f32 1e-12, %v2194_v56 }
0x178d   :  { %v2193_v31 = vpop.xlane.xlu1 %2192 }
0x178e   :  { %3842 = vrsqrt.f32 %v2196_v59  ;;  %v2195_v60 = vmul.f32 0.03125, %v2193_v31 }
0x1790   :  { %v2197_v32 = vadd.f32 1e-12, %v2195_v60 }
0x1792   :  { %3844 = vrsqrt.f32 %v2197_v32 }
0x179b   :  { %v3843_v61 = vpop.eup %3842 }
0x179c   :  { %v2200_v62 = vmul.f32 %v3843_v61, %v2184_v42 }
0x179e   :  { %v2208_v1 = vmul.f32 %v3312_v63, %v2200_v62 }
0x179f   :  { %v3845_v0 = vpop.eup %3844 }
0x17a0   :  { %v2201_v41 = vmul.f32 %v3845_v0, %v2185_v49  ;;  %v2216_v44 = vadd.f32 %v3313_v40, %v2208_v1 }
0x17a2   :  { %v2209_v43 = vmul.f32 %v3312_v63, %v2201_v41 }
0x17a4   :  { %v2217_v48 = vadd.f32 %v3313_v40, %v2209_v43 }
0x17a6   :  { %v2222_v2 = vpack.c.bf16 %v2217_v48, %v2216_v44 }
0x17a8   :  { %3645 = vmatmul.mubr.msk.bf16.vlgmr.msra.gmra.mxu1 %vm84_vm0, %v2222_v2 }
0x17a9   :  { %3650 = vmatprep.mubr.msk.bf16.mxu1 %vm3897_vm1, %v3896_v14  ;;  %3649 = vmatpush3.bf16.msra.mxu1 %v2299_v4 }
0x17aa   :  { %3660 = vmatprep.subr.bf16.mxu1 %v3896_v14 }
0x1868   :  { %v2279_v6 = vpop.f32.mrf.mxu1 }
0x1869   :  { %v2280_v10 = vadd.f32 %v3314_v7, %v2279_v6 }
0x186a   :  { %v3646_v8 = vpop.f32.mrf.mxu1 }
0x186c   :  { %v2282_v9 = vpop.f32.mrf.mxu1 }
0x186d   :  { %v2283_v11 = vadd.f32 %v3314_v7, %v2282_v9 }
0x186e   :  { %v3647_v12 = vpop.f32.mrf.mxu1 }
0x186f   :  { %v2286_v55 = vpack.c.bf16 %v2283_v11, %v2280_v10 }
0x1871   :  { %3651 = vmatmul.mubr.msk.bf16.vlgmr.msra.gmra.mxu1 %vm204_vm2, %v2286_v55  ;;  %3657 = vmatmul.mubr.msk.bf16.vlgmr.msra.gmra.mxu0 %vm204_vm2, %v2286_v55 }
0x1872   :  { %3661 = vmatpush3.bf16.msra.mxu1 %v4523_v13  ;;  %3662 = vmatprep.mubr.msk.bf16.mxu1 %vm3897_vm1, %v3896_v14 }
0x1873   :  { %3667 = vmatpush3.bf16.msra.mxu0 %v4523_v13  ;;  %3668 = vmatprep.mubr.msk.bf16.mxu0 %vm3897_vm1, %v3896_v14 }
0x1874   :  { %3672 = vmatprep.subr.bf16.mxu1 %v3896_v14  ;;  %3678 = vmatprep.subr.bf16.mxu0 %v3896_v14 }
0x1879   :  { %3663 = vmatmul.mubr.bf16.vlgmr.msra.gmra.mxu1 %v3909_v57 }
0x187a   :  { %3673 = vmatpush3.bf16.msra.mxu1 %v4523_v13  ;;  %3674 = vmatprep.mubr.msk.bf16.mxu1 %vm3897_vm1, %v3896_v14 }
0x187b   :  { %3684 = vmatprep.subr.bf16.mxu1 %v3896_v14 }
0x1931   :  { %v2335_v58 = vpop.f32.mrf.mxu1  ;;  %v2381_v15 = vpop.f32.mrf.mxu0 }
0x1932   :  { %v2336_v21 = vadd.f32 %v3318_v16, %v2335_v58  ;;  %v2753_v22 = vrot.slane %v2381_v15, 6  ;;  %v2841_v25 = vrot.slane %v2381_v15, 2 }
0x1933   :  { %v3652_v17 = vpop.f32.mrf.mxu1  ;;  %v3658_v20 = vpop.f32.mrf.mxu0 }
0x1935   :  { %v2338_v23 = vpop.f32.mrf.mxu1  ;;  %v2384_v24 = vpop.f32.mrf.mxu0 }
0x1936   :  { %v2339_v26 = vadd.f32 %v3318_v16, %v2338_v23  ;;  %v2392_v27 = vrot.slane %v2384_v24, 6  ;;  %v2486_v29 = vrot.slane %v2384_v24, 2 }
0x1937   :  { %v3653_v30 = vpop.f32.mrf.mxu1  ;;  %v3659_v33 = vpop.f32.mrf.mxu0 }
0x1938   :  { %v4547_v36 = vadd.f32 %v2753_v22, %v2339_v26  ;;  %v4549_v34 = vadd.f32 %v2841_v25, %v2339_v26  ;;  %v4551_v37 = vadd.f32 %v2392_v27, %v2336_v21  ;;  %v4553_v38 = vadd.f32 %v2486_v29, %v2336_v21 }
0x1939   :  { %v2444_v39 = vpop.f32.mrf.mxu1 }
0x193a   :  { %v2445_v18 = vadd.f32 %v4545_v35, %v2444_v39 }
0x193b   :  { %v3664_v42 = vpop.f32.mrf.mxu1 }
0x193c   :  { %2458 = vrot.lane.b32.xlu0 %v2445_v18, %s4806_s1  ;;  %v2450_v46 = vadd.f32 %v2445_v18, %v4551_v37 }
0x193d   :  { %v2447_v19 = vpop.f32.mrf.mxu1 }
0x193e   :  { %v3324_v49 = vmul.f32 -1.442695, %v2450_v46 }
0x193f   :  { %v3665_v45 = vpop.f32.mrf.mxu1 }
0x1940   :  { %3846 = vpow2.f32 %v3324_v49 }
0x194d   :  { %v3847_v50 = vpop.eup %3846 }
0x194e   :  { %v2454_v28 = vadd.f32 1.0, %v3847_v50 }
0x1950   :  { %3848 = vrcp.f32 %v2454_v28 }
0x195d   :  { %v3849_v51 = vpop.eup %3848 }
0x195e   :  { %v2468_v31 = vsub.f32 1.0, %v3849_v51  ;;  %v2474_v32 = vmul.f32 0.0, %v3849_v51 }
0x19ae   :  { %v2459_v52 = vpop.permute.xlu0 %2458 }
0x19af   :  { %v2461_v47 = vmul.f32 %v3849_v51, %v2459_v52 }
0x19b1   :  { %2463 = vrot.lane.b32.xlu1 %v2461_v47, %s3910_s20 }
0x1a23   :  { %v2464_v54 = vpop.permute.xlu1 %2463 }
0x1a24   :  { %v2466_v56 = vadd.f32 %v2464_v54, %v4551_v37 }
0x1a26   :  { %3850 = vtanh.f32 %v2466_v56 }
0x1a33   :  { %v3851_v59 = vpop.eup %3850 }
0x1a34   :  { %2470 = vrot.lane.b32.xlu1 %v3851_v59, %s4812_s27 }
0x1aa6   :  { %v2471_v60 = vpop.permute.xlu1 %2470 }
0x1aa7   :  { %v2473_v61 = vmul.f32 %v2471_v60, %v2468_v31 }
0x1aa9   :  { %v4561_v62 = vadd.f32 %v2474_v32, %v2473_v61 }
0x1aab   :  { %v2489_v63 = vpack.c.bf16 %v4561_v62, %v4561_v62  ;;  %v2562_v12 = vrot.slane %v4561_v62, 6 }
0x1aad   :  { %2491 = vrot.lane.b32.xlu1 %v2489_v63, %s4812_s27 }
0x1b1f   :  { %v2492_v0 = vpop.permute.xlu1 %2491 }
0x1b20   :  { %3669 = vmatmul.mubr.msk.bf16.vlgmr.msra.gmra.mxu0 %vm256_vm3, %v2492_v0 }
0x1b21   :  { %3679 = vmatpush3.bf16.msra.mxu0 %v4523_v13  ;;  %3680 = vmatprep.mubr.msk.bf16.mxu0 %vm3897_vm1, %v3896_v14 }
0x1b22   :  { %3690 = vmatprep.subr.bf16.mxu0 %v3896_v14 }
0x1be0   :  { %v2530_v41 = vpop.f32.mrf.mxu0 }
0x1be1   :  { %v2531_v1 = vadd.f32 %v4545_v35, %v2530_v41 }
0x1be2   :  { %v3670_v40 = vpop.f32.mrf.mxu0 }
0x1be3   :  { %v2537_v43 = vrot.slane %v2531_v1, 6 }
0x1be4   :  { %v2533_v44 = vpop.f32.mrf.mxu0 }
0x1be5   :  { %2546 = vrot.lane.b32.xlu0 %v2537_v43, %s4806_s1  ;;  %v2539_v2 = vadd.f32 %v2537_v43, %v4553_v38 }
0x1be6   :  { %v3671_v48 = vpop.f32.mrf.mxu0 }
0x1be7   :  { %v3326_v3 = vmul.f32 -1.442695, %v2539_v2 }
0x1be9   :  { %3852 = vpow2.f32 %v3326_v3 }
0x1bf6   :  { %v3853_v4 = vpop.eup %3852 }
0x1bf7   :  { %v2543_v53 = vadd.f32 1.0, %v3853_v4 }
0x1bf9   :  { %3854 = vrcp.f32 %v2543_v53 }
0x1c06   :  { %v3855_v5 = vpop.eup %3854 }
0x1c07   :  { %v2556_v11 = vsub.f32 1.0, %v3855_v5  ;;  %v2564_v57 = vmul.f32 %v3855_v5, %v2562_v12 }
0x1c57   :  { %v2547_v6 = vpop.permute.xlu0 %2546 }
0x1c58   :  { %v2549_v7 = vmul.f32 %v3855_v5, %v2547_v6 }
0x1c5a   :  { %2551 = vrot.lane.b32.xlu1 %v2549_v7, %s3910_s20 }
0x1ccc   :  { %v2552_v8 = vpop.permute.xlu1 %2551 }
0x1ccd   :  { %v2554_v9 = vadd.f32 %v2552_v8, %v4553_v38 }
0x1ccf   :  { %3856 = vtanh.f32 %v2554_v9 }
0x1cdc   :  { %v3857_v10 = vpop.eup %3856 }
0x1cdd   :  { %2558 = vrot.lane.b32.xlu0 %v3857_v10, %s4812_s27 }
0x1d4f   :  { %v2559_v55 = vpop.permute.xlu0 %2558 }
0x1d50   :  { %v2561_v58 = vmul.f32 %v2559_v55, %v2556_v11 }
0x1d52   :  { %v4578_v15 = vadd.f32 %v2564_v57, %v2561_v58 }
0x1d54   :  { %v2576_v16 = vpack.c.bf16 %v4578_v15, %v4578_v15  ;;  %v2650_v50 = vrot.slane %v4578_v15, 6 }
0x1d56   :  { %v2578_v17 = vrot.slane %v2576_v16, 1 }
0x1d58   :  { %2579 = vrot.lane.b32.xlu1 %v2578_v17, %s4812_s27 }
0x1dca   :  { %v2580_v20 = vpop.permute.xlu1 %2579 }
0x1dcb   :  { %3675 = vmatmul.mubr.msk.bf16.vlgmr.msra.gmra.mxu1 %vm256_vm3, %v2580_v20 }
0x1dcc   :  { %3685 = vmatpush3.bf16.msra.mxu1 %v4523_v13  ;;  %3686 = vmatprep.mubr.msk.bf16.mxu1 %vm3897_vm1, %v3896_v14 }
0x1dcd   :  { %3696 = vmatprep.subr.bf16.mxu1 %v3896_v14 }
0x1e8b   :  { %v2618_v21 = vpop.f32.mrf.mxu1 }
0x1e8c   :  { %v2619_v22 = vadd.f32 %v4545_v35, %v2618_v21 }
0x1e8d   :  { %v3676_v23 = vpop.f32.mrf.mxu1 }
0x1e8e   :  { %v2625_v24 = vrot.slane %v2619_v22, 4 }
0x1e8f   :  { %v2621_v25 = vpop.f32.mrf.mxu1 }
0x1e90   :  { %2634 = vrot.lane.b32.xlu0 %v2625_v24, %s4806_s1  ;;  %v2627_v27 = vadd.f32 %v2625_v24, %v4551_v37 }
0x1e91   :  { %v3677_v26 = vpop.f32.mrf.mxu1 }
0x1e92   :  { %v3328_v29 = vmul.f32 -1.442695, %v2627_v27 }
0x1e94   :  { %3858 = vpow2.f32 %v3328_v29 }
0x1ea1   :  { %v3859_v30 = vpop.eup %3858 }
0x1ea2   :  { %v2631_v33 = vadd.f32 1.0, %v3859_v30 }
0x1ea4   :  { %3860 = vrcp.f32 %v2631_v33 }
0x1eb1   :  { %v3861_v39 = vpop.eup %3860 }
0x1eb2   :  { %v2644_v49 = vsub.f32 1.0, %v3861_v39  ;;  %v2652_v51 = vmul.f32 %v3861_v39, %v2650_v50 }
0x1f02   :  { %v2635_v18 = vpop.permute.xlu0 %2634 }
0x1f03   :  { %v2637_v42 = vmul.f32 %v3861_v39, %v2635_v18 }
0x1f05   :  { %2639 = vrot.lane.b32.xlu1 %v2637_v42, %s3910_s20 }
0x1f77   :  { %v2640_v19 = vpop.permute.xlu1 %2639 }
0x1f78   :  { %v2642_v45 = vadd.f32 %v2640_v19, %v4551_v37 }
0x1f7a   :  { %3862 = vtanh.f32 %v2642_v45 }
0x1f87   :  { %v3863_v46 = vpop.eup %3862 }
0x1f88   :  { %2646 = vrot.lane.b32.xlu0 %v3863_v46, %s4812_s27 }
0x1ffa   :  { %v2647_v28 = vpop.permute.xlu0 %2646 }
0x1ffb   :  { %v2649_v52 = vmul.f32 %v2647_v28, %v2644_v49 }
0x1ffd   :  { %v4595_v47 = vadd.f32 %v2652_v51, %v2649_v52 }
0x1fff   :  { %v2664_v54 = vpack.c.bf16 %v4595_v47, %v4595_v47  ;;  %v2738_v5 = vrot.slane %v4595_v47, 6 }
0x2001   :  { %v2666_v56 = vrot.slane %v2664_v54, 2 }
0x2003   :  { %2667 = vrot.lane.b32.xlu1 %v2666_v56, %s4812_s27 }
0x2075   :  { %v2668_v59 = vpop.permute.xlu1 %2667 }
0x2076   :  { %3681 = vmatmul.mubr.msk.bf16.vlgmr.msra.gmra.mxu0 %vm256_vm3, %v2668_v59 }
0x2077   :  { %3691 = vmatpush3.bf16.msra.mxu0 %v4523_v13  ;;  %3692 = vmatprep.mubr.msk.bf16.mxu0 %vm3897_vm1, %v3896_v14 }
0x2078   :  { %3702 = vmatprep.subr.bf16.mxu0 %v3896_v14 }
0x2136   :  { %v2706_v37 = vpop.f32.mrf.mxu0 }
0x2137   :  { %v2707_v31 = vadd.f32 %v4545_v35, %v2706_v37 }
0x2138   :  { %v3682_v60 = vpop.f32.mrf.mxu0 }
0x2139   :  { %v2713_v32 = vrot.slane %v2707_v31, 2 }
0x213a   :  { %v2709_v61 = vpop.f32.mrf.mxu0 }
0x213b   :  { %2722 = vrot.lane.b32.xlu0 %v2713_v32, %s4806_s1  ;;  %v2715_v0 = vadd.f32 %v2713_v32, %v4553_v38 }
0x213c   :  { %v3683_v63 = vpop.f32.mrf.mxu0 }
0x213d   :  { %v3330_v41 = vmul.f32 -1.442695, %v2715_v0 }
0x213f   :  { %3864 = vpow2.f32 %v3330_v41 }
0x214c   :  { %v3865_v1 = vpop.eup %3864 }
0x214d   :  { %v2719_v40 = vadd.f32 1.0, %v3865_v1 }
0x214f   :  { %3866 = vrcp.f32 %v2719_v40 }
0x215c   :  { %v3867_v43 = vpop.eup %3866 }
0x215d   :  { %v2732_v53 = vsub.f32 1.0, %v3867_v43  ;;  %v2740_v7 = vmul.f32 %v3867_v43, %v2738_v5 }
0x21ad   :  { %v2723_v44 = vpop.permute.xlu0 %2722 }
0x21ae   :  { %v2725_v48 = vmul.f32 %v3867_v43, %v2723_v44 }
0x21b0   :  { %2727 = vrot.lane.b32.xlu1 %v2725_v48, %s3910_s20 }
0x2222   :  { %v2728_v2 = vpop.permute.xlu1 %2727 }
0x2223   :  { %v2730_v3 = vadd.f32 %v2728_v2, %v4553_v38 }
0x2225   :  { %3868 = vtanh.f32 %v2730_v3 }
0x2232   :  { %v3869_v4 = vpop.eup %3868 }
0x2233   :  { %2734 = vrot.lane.b32.xlu0 %v3869_v4, %s4812_s27 }
0x22a5   :  { %v2735_v6 = vpop.permute.xlu0 %2734 }
0x22a6   :  { %v2737_v8 = vmul.f32 %v2735_v6, %v2732_v53 }
0x22a8   :  { %v4612_v9 = vadd.f32 %v2740_v7, %v2737_v8 }
0x22aa   :  { %v2756_v10 = vpack.c.bf16 %v4612_v9, %v4612_v9  ;;  %v2828_v33 = vrot.slane %v4612_v9, 6 }
0x22ac   :  { %v2758_v11 = vrot.slane %v2756_v10, 3 }
0x22ae   :  { %2759 = vrot.lane.b32.xlu1 %v2758_v11, %s4812_s27 }
0x2320   :  { %v2760_v12 = vpop.permute.xlu1 %2759 }
0x2321   :  { %3687 = vmatmul.mubr.msk.bf16.vlgmr.msra.gmra.mxu1 %vm256_vm3, %v2760_v12 }
0x2322   :  { %3697 = vmatpush3.bf16.msra.mxu1 %v4523_v13  ;;  %3698 = vmatprep.mubr.msk.bf16.mxu1 %vm3897_vm1, %v3896_v14 }
0x2323   :  { %3708 = vmatprep.subr.bf16.mxu1 %v3896_v14 }
0x23e1   :  { %v2798_v38 = vpop.f32.mrf.mxu1 }
0x23e2   :  { %v2799_v55 = vadd.f32 %v4545_v35, %v2798_v38 }
0x23e3   :  { %v3688_v57 = vpop.f32.mrf.mxu1 }
0x23e4   :  { %2812 = vrot.lane.b32.xlu0 %v2799_v55, %s4806_s1  ;;  %v2804_v17 = vadd.f32 %v2799_v55, %v4547_v36 }
0x23e5   :  { %v2801_v58 = vpop.f32.mrf.mxu1 }
0x23e6   :  { %v3332_v20 = vmul.f32 -1.442695, %v2804_v17 }
0x23e7   :  { %v3689_v16 = vpop.f32.mrf.mxu1 }
0x23e8   :  { %3870 = vpow2.f32 %v3332_v20 }
0x23f5   :  { %v3871_v21 = vpop.eup %3870 }
0x23f6   :  { %v2808_v22 = vadd.f32 1.0, %v3871_v21 }
0x23f8   :  { %3872 = vrcp.f32 %v2808_v22 }
0x2405   :  { %v3873_v23 = vpop.eup %3872 }
0x2406   :  { %v2822_v30 = vsub.f32 1.0, %v3873_v23  ;;  %v2830_v18 = vmul.f32 %v3873_v23, %v2828_v33 }
0x2456   :  { %v2813_v24 = vpop.permute.xlu0 %2812 }
0x2457   :  { %v2815_v25 = vmul.f32 %v3873_v23, %v2813_v24 }
0x2459   :  { %2817 = vrot.lane.b32.xlu1 %v2815_v25, %s3910_s20 }
0x24cb   :  { %v2818_v26 = vpop.permute.xlu1 %2817 }
0x24cc   :  { %v2820_v27 = vadd.f32 %v2818_v26, %v4547_v36 }
0x24ce   :  { %3874 = vtanh.f32 %v2820_v27 }
0x24db   :  { %v3875_v29 = vpop.eup %3874 }
0x24dc   :  { %2824 = vrot.lane.b32.xlu0 %v3875_v29, %s4812_s27 }
0x254e   :  { %v2825_v39 = vpop.permute.xlu0 %2824 }
0x254f   :  { %v2827_v42 = vmul.f32 %v2825_v39, %v2822_v30 }
0x2551   :  { %v4629_v19 = vadd.f32 %v2830_v18, %v2827_v42 }
0x2553   :  { %v2844_v45 = vpack.c.bf16 %v4629_v19, %v4629_v19  ;;  %v2917_v1 = vrot.slane %v4629_v19, 6 }
0x2555   :  { %2846 = vrot.lane.b32.xlu1 %v2844_v45, %s4812_s27 }
0x25c7   :  { %v2847_v46 = vpop.permute.xlu1 %2846 }
0x25c8   :  { %3693 = vmatmul.mubr.msk.bf16.vlgmr.msra.gmra.mxu0 %vm256_vm3, %v2847_v46 }
0x25c9   :  { %3703 = vmatpush3.bf16.msra.mxu0 %v4523_v13  ;;  %3704 = vmatprep.mubr.msk.bf16.mxu0 %vm3897_vm1, %v3896_v14 }
0x25ca   :  { %3714 = vmatprep.subr.bf16.mxu0 %v3896_v14 }
0x2688   :  { %v2885_v49 = vpop.f32.mrf.mxu0 }
0x2689   :  { %v2886_v50 = vadd.f32 %v4545_v35, %v2885_v49 }
0x268a   :  { %v3694_v28 = vpop.f32.mrf.mxu0 }
0x268b   :  { %v2892_v51 = vrot.slane %v2886_v50, 6 }
0x268c   :  { %v2888_v52 = vpop.f32.mrf.mxu0 }
0x268d   :  { %2901 = vrot.lane.b32.xlu0 %v2892_v51, %s4806_s1  ;;  %v2894_v56 = vadd.f32 %v2892_v51, %v4549_v34 }
0x268e   :  { %v3695_v54 = vpop.f32.mrf.mxu0 }
0x268f   :  { %v3334_v59 = vmul.f32 -1.442695, %v2894_v56 }
0x2691   :  { %3876 = vpow2.f32 %v3334_v59 }
0x269e   :  { %v3877_v37 = vpop.eup %3876 }
0x269f   :  { %v2898_v13 = vadd.f32 1.0, %v3877_v37 }
0x26a1   :  { %3878 = vrcp.f32 %v2898_v13 }
0x26ae   :  { %v3879_v31 = vpop.eup %3878 }
0x26af   :  { %v2911_v41 = vsub.f32 1.0, %v3879_v31  ;;  %v2919_v43 = vmul.f32 %v3879_v31, %v2917_v1 }
0x26ff   :  { %v2902_v60 = vpop.permute.xlu0 %2901 }
0x2700   :  { %v2904_v32 = vmul.f32 %v3879_v31, %v2902_v60 }
0x2702   :  { %2906 = vrot.lane.b32.xlu1 %v2904_v32, %s3910_s20 }
0x2774   :  { %v2907_v61 = vpop.permute.xlu1 %2906 }
0x2775   :  { %v2909_v63 = vadd.f32 %v2907_v61, %v4549_v34 }
0x2777   :  { %3880 = vtanh.f32 %v2909_v63 }
0x2784   :  { %v3881_v0 = vpop.eup %3880 }
0x2785   :  { %2913 = vrot.lane.b32.xlu0 %v3881_v0, %s4812_s27 }
0x27f7   :  { %v2914_v40 = vpop.permute.xlu0 %2913 }
0x27f8   :  { %v2916_v44 = vmul.f32 %v2914_v40, %v2911_v41 }
0x27fa   :  { %v4646_v48 = vadd.f32 %v2919_v43, %v2916_v44 }
0x27fc   :  { %v2930_v2 = vpack.c.bf16 %v4646_v48, %v4646_v48  ;;  %v3004_v23 = vrot.slane %v4646_v48, 6 }
0x27fe   :  { %v2932_v3 = vrot.slane %v2930_v2, 1 }
0x2800   :  { %2933 = vrot.lane.b32.xlu1 %v2932_v3, %s4812_s27 }
0x2872   :  { %v2934_v4 = vpop.permute.xlu1 %2933 }
0x2873   :  { %3699 = vmatmul.mubr.msk.bf16.vlgmr.msra.gmra.mxu1 %vm256_vm3, %v2934_v4 }
0x2874   :  { %3710 = vmatprep.mubr.msk.bf16.mxu1 %vm3897_vm1, %v3896_v14 }
0x2933   :  { %v2972_v53 = vpop.f32.mrf.mxu1 }
0x2934   :  { %v2973_v5 = vadd.f32 %v4545_v35, %v2972_v53 }
0x2935   :  { %v3700_v6 = vpop.f32.mrf.mxu1 }
0x2936   :  { %v2979_v7 = vrot.slane %v2973_v5, 4 }
0x2937   :  { %v2975_v8 = vpop.f32.mrf.mxu1 }
0x2938   :  { %2988 = vrot.lane.b32.xlu0 %v2979_v7, %s4806_s1  ;;  %v2981_v11 = vadd.f32 %v2979_v7, %v4547_v36 }
0x2939   :  { %v3701_v10 = vpop.f32.mrf.mxu1 }
0x293a   :  { %v3336_v12 = vmul.f32 -1.442695, %v2981_v11 }
0x293c   :  { %3882 = vpow2.f32 %v3336_v12 }
0x2949   :  { %v3883_v38 = vpop.eup %3882 }
0x294a   :  { %v2985_v55 = vadd.f32 1.0, %v3883_v38 }
0x294c   :  { %3884 = vrcp.f32 %v2985_v55 }
0x2959   :  { %v3885_v57 = vpop.eup %3884 }
0x295a   :  { %v2998_v22 = vsub.f32 1.0, %v3885_v57  ;;  %v3006_v25 = vmul.f32 %v3885_v57, %v3004_v23 }
0x29aa   :  { %v2989_v58 = vpop.permute.xlu0 %2988 }
0x29ab   :  { %v2991_v16 = vmul.f32 %v3885_v57, %v2989_v58  ;;  %v3342_v58 = vld [vmem:[%s4766_s23] ss:$0 sm:$0xff] }
0x29ad   :  { %2993 = vrot.lane.b32.xlu1 %v2991_v16, %s3910_s20 }
0x2a1f   :  { %v2994_v17 = vpop.permute.xlu1 %2993 }
0x2a20   :  { %v2996_v20 = vadd.f32 %v2994_v17, %v4547_v36 }
0x2a22   :  { %3886 = vtanh.f32 %v2996_v20 }
0x2a2f   :  { %v3887_v21 = vpop.eup %3886 }
0x2a30   :  { %3000 = vrot.lane.b32.xlu0 %v3887_v21, %s4812_s27 }
0x2aa2   :  { %v3001_v24 = vpop.permute.xlu0 %3000 }
0x2aa3   :  { %v3003_v26 = vmul.f32 %v3001_v24, %v2998_v22 }
0x2aa5   :  { %v4661_v27 = vadd.f32 %v3006_v25, %v3003_v26 }
0x2aa7   :  { %v3017_v29 = vpack.c.bf16 %v4661_v27, %v4661_v27  ;;  %v3091_v63 = vrot.slane %v4661_v27, 6 }
0x2aa9   :  { %v3019_v30 = vrot.slane %v3017_v29, 2 }
0x2aab   :  { %3020 = vrot.lane.b32.xlu1 %v3019_v30, %s4812_s27 }
0x2b1d   :  { %v3021_v33 = vpop.permute.xlu1 %3020 }
0x2b1e   :  { %3705 = vmatmul.mubr.msk.bf16.vlgmr.msra.gmra.mxu0 %vm256_vm3, %v3021_v33 }
0x2b1f   :  { %3716 = vmatprep.mubr.msk.bf16.mxu0 %vm3897_vm1, %v3896_v14 }
0x2bde   :  { %v3059_v36 = vpop.f32.mrf.mxu0 }
0x2bdf   :  { %v3060_v39 = vadd.f32 %v4545_v35, %v3059_v36 }
0x2be0   :  { %v3706_v18 = vpop.f32.mrf.mxu0 }
0x2be1   :  { %v3066_v42 = vrot.slane %v3060_v39, 2 }
0x2be2   :  { %v3062_v45 = vpop.f32.mrf.mxu0 }
0x2be3   :  { %3075 = vrot.lane.b32.xlu0 %v3066_v42, %s4806_s1  ;;  %v3068_v49 = vadd.f32 %v3066_v42, %v4549_v34 }
0x2be4   :  { %v3707_v46 = vpop.f32.mrf.mxu0 }
0x2be5   :  { %v3338_v50 = vmul.f32 -1.442695, %v3068_v49 }
0x2be7   :  { %3888 = vpow2.f32 %v3338_v50 }
0x2bf4   :  { %v3889_v28 = vpop.eup %3888 }
0x2bf5   :  { %v3072_v51 = vadd.f32 1.0, %v3889_v28 }
0x2bf7   :  { %3890 = vrcp.f32 %v3072_v51 }
0x2c04   :  { %v3891_v52 = vpop.eup %3890 }
0x2c05   :  { %v3093_v41 = vmul.f32 %v3891_v52, %v3091_v63 }
0x2c55   :  { %v3076_v54 = vpop.permute.xlu0 %3075 }
0x2c56   :  { %v3078_v56 = vmul.f32 %v3891_v52, %v3076_v54 }
0x2c58   :  { %3080 = vrot.lane.b32.xlu1 %v3078_v56, %s3910_s20 }
0x2c5c   :  { %2477 = vrot.lane.b32.xlu1 %v4561_v62, %s4812_s27 }
0x2c60   :  { %2567 = vrot.lane.b32.xlu1 %v4578_v15, %s4812_s27 }
0x2c64   :  { %2655 = vrot.lane.b32.xlu1 %v4595_v47, %s4812_s27 }
0x2c68   :  { %2743 = vrot.lane.b32.xlu1 %v4612_v9, %s4812_s27 }
0x2c6c   :  { %2833 = vrot.lane.b32.xlu1 %v4629_v19, %s4812_s27 }
0x2c70   :  { %2922 = vrot.lane.b32.xlu1 %v4646_v48, %s4812_s27 }
0x2c74   :  { %3009 = vrot.lane.b32.xlu1 %v4661_v27, %s4812_s27 }
0x2cca   :  { %v3081_v14 = vpop.permute.xlu1 %3080 }
0x2ccb   :  { %v3083_v35 = vadd.f32 %v3081_v14, %v4549_v34 }
0x2ccd   :  { %3892 = vtanh.f32 %v3083_v35 }
0x2cce   :  { %v2478_v59 = vpop.permute.xlu1 %2477 }
0x2ccf   :  { %2481 = vst.msk [vmem:[#allocation2] sm:$0x3] %vm2480_vm6, %v2478_v59 }
0x2cd2   :  { %v2568_v37 = vpop.permute.xlu1 %2567 }
0x2cd3   :  { %2571 = vst.msk [vmem:[#allocation2] sm:$0xc] %vm2570_vm7, %v2568_v37 }
0x2cd6   :  { %v2656_v13 = vpop.permute.xlu1 %2655 }
0x2cd7   :  { %2659 = vst.msk [vmem:[#allocation2] sm:$0x30] %vm2658_vm8, %v2656_v13 }
0x2cda   :  { %v3893_v31 = vpop.eup %3892  ;;  %v2744_v60 = vpop.permute.xlu1 %2743 }
0x2cdb   :  { %2747 = vst.msk [vmem:[#allocation2] sm:$0xc0] %vm2746_vm9, %v2744_v60  ;;  %3087 = vrot.lane.b32.xlu0 %v3893_v31, %s4812_s27 }
0x2cde   :  { %v2834_v34 = vpop.permute.xlu1 %2833 }
0x2cdf   :  { %2836 = vst.msk [vmem:[#allocation2 + $0x8] sm:$0x3] %vm2480_vm6, %v2834_v34  ;;  %2482 = vrot.lane.b32.xlu0 %v4561_v62, %s4813_s0  ;;  %v3339_v62 = vld [vmem:[%s4765_s22 + $0x4] sm:$0xf] }
0x2ce2   :  { %v2923_v32 = vpop.permute.xlu1 %2922  ;;  %v3104_v7 = vld [vmem:[#allocation2] sm:$0xff] }
0x2ce3   :  { %2925 = vst.msk [vmem:[#allocation2 + $0x8] sm:$0xc] %vm2570_vm7, %v2923_v32  ;;  %2572 = vrot.lane.b32.xlu0 %v4578_v15, %s4813_s0  ;;  %v3106_v15 = vld [vmem:[%s4765_s22] sm:$0xf] }
0x2ce6   :  { %v3010_v61 = vpop.permute.xlu1 %3009 }
0x2ce7   :  { %3012 = vst.msk [vmem:[#allocation2 + $0x8] sm:$0x30] %vm2658_vm8, %v3010_v61  ;;  %2660 = vrot.lane.b32.xlu0 %v4595_v47, %s4813_s0  ;;  %v3117_v47 = vsel %vm457_vm4, %v3339_v62, 0 }
0x2ce8   :  { %3709 = vmatpush3.bf16.msra.mxu1 %v3117_v47 }
0x2ceb   :  { %2748 = vrot.lane.b32.xlu0 %v4612_v9, %s4813_s0  ;;  %v3164_v9 = vsel %vm457_vm4, %v3106_v15, 0 }
0x2cec   :  { %3715 = vmatpush3.bf16.msra.mxu0 %v3164_v9 }
0x2cef   :  { %2837 = vrot.lane.b32.xlu0 %v4629_v19, %s4813_s0  ;;  %v3085_v19 = vsub.f32 1.0, %v3891_v52 }
0x2cf3   :  { %2926 = vrot.lane.b32.xlu0 %v4646_v48, %s4813_s0 }
0x2cf7   :  { %3013 = vrot.lane.b32.xlu0 %v4661_v27, %s4813_s0 }
0x2d4d   :  { %v3088_v0 = vpop.permute.xlu0 %3087 }
0x2d4e   :  { %v3090_v1 = vmul.f32 %v3088_v0, %v3085_v19 }
0x2d50   :  { %v3094_v40 = vadd.f32 %v3093_v41, %v3090_v1 }
0x2d51   :  { %v2483_v43 = vpop.permute.xlu0 %2482 }
0x2d52   :  { %2485 = vst.msk [vmem:[#allocation3 + $0xe] sm:$0x3] %vm2480_vm6, %v2483_v43  ;;  %3100 = vrot.lane.b32.xlu0 %v3094_v40, %s4813_s0  ;;  %3096 = vrot.lane.b32.xlu1 %v3094_v40, %s4812_s27 }
0x2d55   :  { %v2573_v44 = vpop.permute.xlu0 %2572 }
0x2d56   :  { %2575 = vst.msk [vmem:[#allocation3 + $0xa] sm:$0xc] %vm2570_vm7, %v2573_v44 }
0x2d59   :  { %v2661_v48 = vpop.permute.xlu0 %2660 }
0x2d5a   :  { %2663 = vst.msk [vmem:[#allocation3 + $0x6] sm:$0x30] %vm2658_vm8, %v2661_v48 }
0x2d5d   :  { %v2749_v2 = vpop.permute.xlu0 %2748 }
0x2d5e   :  { %2751 = vst.msk [vmem:[#allocation3 + $0x2] sm:$0xc0] %vm2746_vm9, %v2749_v2 }
0x2d61   :  { %v2838_v3 = vpop.permute.xlu0 %2837 }
0x2d62   :  { %2840 = vst.msk [vmem:[#allocation3 + $0x6] sm:$0x3] %vm2480_vm6, %v2838_v3 }
0x2d65   :  { %v2927_v4 = vpop.permute.xlu0 %2926  ;;  %v3109_v10 = vld [vmem:[#allocation3 + $0x8] sm:$0xff] }
0x2d66   :  { %2929 = vst.msk [vmem:[#allocation3 + $0x2] sm:$0xc] %vm2570_vm7, %v2927_v4 }
0x2d69   :  { %v3014_v53 = vpop.permute.xlu0 %3013 }
0x2d6a   :  { %3016 = vst.msk [vmem:[#allocation3 - $0x2] sm:$0x30] %vm2658_vm8, %v3014_v53 }
0x2dc4   :  { %v3101_v5 = vpop.permute.xlu0 %3100  ;;  %v3097_v6 = vpop.permute.xlu1 %3096 }
0x2dc5   :  { %3103 = vst.msk [vmem:[#allocation3 - $0x6] sm:$0xc0] %vm2746_vm9, %v3101_v5  ;;  %3099 = vst.msk [vmem:[#allocation2 + $0x8] sm:$0xc0] %vm2746_vm9, %v3097_v6 }
0x2dcc   :  { %v3108_v8 = vld [vmem:[#allocation3] sm:$0xff]  ;;  %v3105_v11 = vld [vmem:[#allocation2 + $0x8] sm:$0xff] }
0x2dcd   :  { %v3112_v12 = vpack.c.bf16 %v3109_v10, %v3108_v8  ;;  %v3107_v38 = vpack.c.bf16 %v3105_v11, %v3104_v7 }
0x2dcf   :  { %3711 = vmatmul.mubr.msk.bf16.vlgmr.msra.gmra.mxu1 %vm204_vm2, %v3112_v12  ;;  %3717 = vmatmul.mubr.msk.bf16.vlgmr.msra.gmra.mxu0 %vm204_vm2, %v3107_v38 }
0x2e8f   :  { %v3153_v55 = vpop.f32.mrf.mxu1  ;;  %v3200_v57 = vpop.f32.mrf.mxu0 }
0x2e90   :  { %v3201_v16 = vadd.f32 %v3200_v57, %v3153_v55 }
0x2e91   :  { %v3712_v17 = vpop.f32.mrf.mxu1  ;;  %v3718_v20 = vpop.f32.mrf.mxu0 }
0x2e92   :  { %v3214_v21 = vadd.f32 %v3342_v58, %v3201_v16 }
0x2e93   :  { %v3156_v22 = vpop.f32.mrf.mxu1  ;;  %v3203_v23 = vpop.f32.mrf.mxu0 }
0x2e94   :  { %3216 = vst.msk [vmem:[%s4767_s24] sm:$0xff] %vm204_vm2, %v3214_v21  ;;  %v3204_v24 = vadd.f32 %v3203_v23, %v3156_v22 }
0x2e95   :  { %v3713_v25 = vpop.f32.mrf.mxu1  ;;  %v3719_v26 = vpop.f32.mrf.mxu0 }
0x2e96   :  { %v3215_v27 = vadd.f32 %v3342_v58, %v3204_v24 }
0x2e98   :  { %3217 = vst.msk [vmem:[%s4767_s24 + $0x8] sm:$0xff] %vm204_vm2, %v3215_v27 }

</bundles_post_ra>
